<compile_context>
chip_gen: v7x
topology: tpu7x:2x2x1
jax: 0.10.0
libtpu: 0.0.40
codegen_flags: <defaults>
</compile_context>

<pallas_src>
import jax
import jax.numpy as jnp
from jax.experimental import pallas as pl
from jax.experimental.pallas import tpu as pltpu

_EPS = 1e-5
_LANE = 128
_TARGET_ROWS = 256             # approx rows per grid step (will be rounded)
_VMEM_LIMIT = 32 * 1024 * 1024


def _round_up(x, m):
    return (x + m - 1) // m * m


# ----------------------------- Pallas kernels -----------------------------

def _affine_relu_kernel(x_ref, scale_ref, shift_ref, out_ref):
    # BN folded to a per-channel affine: y = max(x*scale + shift, 0)
    out_ref[...] = jnp.maximum(x_ref[...] * scale_ref[...] + shift_ref[...], 0.0)


# ----------------------------- wrappers -----------------------------------

def conv_bn_relu(x_nhwc, w_hwio, gamma, beta):
    """3x3 'same' conv (bias-free) -> training-mode BN -> ReLU, on NHWC input."""
    N, H, W, Cin = x_nhwc.shape
    Cout = w_hwio.shape[-1]
    Wp = W + 2                          # horizontally haloed width
    Kv = 3 * Cin                        # the 3 vertical (dy) taps stacked
    Cp = _round_up(Cout, _LANE)
    NHrows = N * H

    # Row-group tile: tr image rows per grid step, sized so the flattened
    # (tr * Wp) sublane count is ~_TARGET_ROWS and a multiple of 8.
    base = max(1, _TARGET_ROWS // Wp)
    tr = next(t for t in range(base, base + 8) if (t * Wp) % 8 == 0)
    NHp = _round_up(NHrows, tr)
    B = tr * Wp                         # rows per block (multiple of 8)
    total_rows = NHp * Wp
    grid = (NHp // tr,)

    # --- JAX glue: vertical tap stack (3x, not 9x) with horizontal halo ----
    xpad = jnp.pad(x_nhwc, ((0, 0), (1, 1), (1, 1), (0, 0)))
    taps = jnp.concatenate([xpad[:, dy:dy + H, :, :] for dy in range(3)], axis=-1)
    patches = taps.reshape(NHrows, Wp, Kv)
    if NHp != NHrows:
        # zero rows: bias-free conv output is 0 there, so BN sums unaffected.
        patches = jnp.pad(patches, ((0, NHp - NHrows), (0, 0), (0, 0)))
    patches = patches.reshape(total_rows, Kv)

    # Weights grouped by dx: w_groups[dx][dy*Cin + c, o] = w[dy, dx, c, o].
    w_groups = jnp.stack([w_hwio[:, dx, :, :].reshape(Kv, Cout) for dx in range(3)])
    w_groups = jnp.pad(w_groups, ((0, 0), (0, 0), (0, Cp - Cout)))

    # Per-row "is a real (non-border) column" mask for the BN statistics.
    pcol = jnp.tile(jnp.arange(Wp, dtype=jnp.int32), tr)
    mask = ((pcol >= 1) & (pcol <= W)).astype(jnp.float32).reshape(B, 1)

    def conv_stats_kernel(p_ref, w_ref, m_ref, out_ref, sum_ref, sq_ref):
        # p_ref:  (B, Kv)      vertically-stacked taps, rows = (image row, padded col)
        # w_ref:  (3, Kv, Cp)  weights grouped by dx
        # m_ref:  (B, 1)       1.0 on real columns, 0.0 on the 2 border columns
        # out_ref:(B, Cp)      conv output tile (lane-dense; border cols garbage)
        # sum_ref/sq_ref: (1, Cp) resident accumulators (same block every step)
        i = pl.program_id(0)
        v = p_ref[...]
        # out[p] = v[p-1]·w0 + v[p]·w1 + v[p+1]·w2  (roll wrap only hits
        # discarded border columns).
        acc = jnp.dot(v, w_ref[1], preferred_element_type=jnp.float32)
        acc = acc + jnp.dot(pltpu.roll(v, 1, axis=0), w_ref[0],
                            preferred_element_type=jnp.float32)
        acc = acc + jnp.dot(pltpu.roll(v, B - 1, axis=0), w_ref[2],
                            preferred_element_type=jnp.float32)
        out_ref[...] = acc

        @pl.when(i == 0)
        def _init():
            sum_ref[...] = jnp.zeros_like(sum_ref)
            sq_ref[...] = jnp.zeros_like(sq_ref)

        masked = acc * m_ref[...]
        sum_ref[...] += jnp.sum(masked, axis=0, keepdims=True)
        sq_ref[...] += jnp.sum(masked * acc, axis=0, keepdims=True)

    conv_out, csum, csq = pl.pallas_call(
        conv_stats_kernel,
        out_shape=(jax.ShapeDtypeStruct((total_rows, Cp), jnp.float32),
                   jax.ShapeDtypeStruct((1, Cp), jnp.float32),
                   jax.ShapeDtypeStruct((1, Cp), jnp.float32)),
        grid=grid,
        in_specs=[
            pl.BlockSpec((B, Kv), lambda i: (i, 0)),
            pl.BlockSpec((3, Kv, Cp), lambda i: (0, 0, 0)),   # weights resident
            pl.BlockSpec((B, 1), lambda i: (0, 0)),           # mask resident
        ],
        out_specs=(
            pl.BlockSpec((B, Cp), lambda i: (i, 0)),
            pl.BlockSpec((1, Cp), lambda i: (0, 0)),           # resident accumulator
            pl.BlockSpec((1, Cp), lambda i: (0, 0)),           # resident accumulator
        ),
        compiler_params=pltpu.CompilerParams(
            dimension_semantics=("arbitrary",),                # stats accumulate
            vmem_limit_bytes=_VMEM_LIMIT),
    )(patches, w_groups, mask)

    # Fold BN (biased variance, eps=1e-5, batch stats over N*H*W real pixels)
    # into per-channel scale/shift — C-sized glue math.
    cnt = jnp.float32(N * H * W)
    mean = csum / cnt
    var = jnp.maximum(csq / cnt - mean * mean, 0.0)
    gamma_p = jnp.pad(gamma, (0, Cp - Cout)).reshape(1, Cp)
    beta_p = jnp.pad(beta, (0, Cp - Cout)).reshape(1, Cp)
    scale = gamma_p * jax.lax.rsqrt(var + _EPS)
    shift = beta_p - mean * scale

    y = pl.pallas_call(
        _affine_relu_kernel,
        out_shape=jax.ShapeDtypeStruct((total_rows, Cp), jnp.float32),
        grid=grid,
        in_specs=[
            pl.BlockSpec((B, Cp), lambda i: (i, 0)),
            pl.BlockSpec((1, Cp), lambda i: (0, 0)),
            pl.BlockSpec((1, Cp), lambda i: (0, 0)),
        ],
        out_specs=pl.BlockSpec((B, Cp), lambda i: (i, 0)),
        compiler_params=pltpu.CompilerParams(
            dimension_semantics=("parallel",),
            vmem_limit_bytes=_VMEM_LIMIT),
    )(conv_out, scale, shift)

    # Drop border columns / padded rows / padded channels.
    y = y.reshape(NHp, Wp, Cp)[:NHrows, 1:W + 1, :Cout]
    return y.reshape(N, H, W, Cout)


@jax.jit
def inconv_forward(x_nchw, params):
    """inconv.forward: (N, Cin, H, W) -> (N, Cout, H, W)."""
    x = jnp.transpose(x_nchw, (0, 2, 3, 1)).astype(jnp.float32)   # NCHW -> NHWC
    # Conv bias is omitted in the kernel path: it cancels in training-mode BN.
    h = conv_bn_relu(x, params["w1"], params["g1"], params["beta1"])
    h = conv_bn_relu(h, params["w2"], params["g2"], params["beta2"])
    return jnp.transpose(h, (0, 3, 1, 2))                         # NHWC -> NCHW


# --------------------------- pure-JAX reference ----------------------------

def _ref_forward(x_nchw, p):
    x = jnp.transpose(x_nchw, (0, 2, 3, 1)).astype(jnp.float32)

    def conv(x, w, b):
        y = jax.lax.conv_general_dilated(
            x, w, window_strides=(1, 1), padding="SAME",
            dimension_numbers=("NHWC", "HWIO", "NHWC"))
        return y + b.reshape(1, 1, 1, -1)

    def bn_relu(x, g, be):
        mean = jnp.mean(x, axis=(0, 1, 2), keepdims=True)
        var = jnp.var(x, axis=(0, 1, 2), keepdims=True)
        y = (x - mean) * jax.lax.rsqrt(var + _EPS) * g.reshape(1, 1, 1, -1) \
            + be.reshape(1, 1, 1, -1)
        return jnp.maximum(y, 0.0)

    h = bn_relu(conv(x, p["w1"], p["b1"]), p["g1"], p["beta1"])
    h = bn_relu(conv(h, p["w2"], p["b2"]), p["g2"], p["beta2"])
    return jnp.transpose(h, (0, 3, 1, 2))


# --------------------------------- main ------------------------------------

if __name__ == "__main__":
    N, IN_CH, OUT_CH, H, W = 2, 4, 8, 16, 16

    key = jax.random.PRNGKey(0)
    k_x, k_w1, k_b1, k_w2, k_b2 = jax.random.split(key, 5)

    # Deterministic synthetic parameters (Conv2d weights stored HWIO;
    # BatchNorm2d default init: gamma=1, beta=0).  Biases are kept in the
    # reference (PyTorch semantics) but cancel under training-mode BN.
    params = {
        "w1": jax.random.normal(k_w1, (3, 3, IN_CH, OUT_CH), jnp.float32) * 0.1,
        "b1": jax.random.normal(k_b1, (OUT_CH,), jnp.float32) * 0.1,
        "g1": jnp.ones((OUT_CH,), jnp.float32),
        "beta1": jnp.zeros((OUT_CH,), jnp.float32),
        "w2": jax.random.normal(k_w2, (3, 3, OUT_CH, OUT_CH), jnp.float32) * 0.1,
        "b2": jax.random.normal(k_b2, (OUT_CH,), jnp.float32) * 0.1,
        "g2": jnp.ones((OUT_CH,), jnp.float32),
        "beta2": jnp.zeros((OUT_CH,), jnp.float32),
    }

    x = jax.random.normal(k_x, (N, IN_CH, H, W), jnp.float32)

    out = inconv_forward(x, params)
    out = jax.block_until_ready(out)
    assert out.shape == (N, OUT_CH, H, W), out.shape

    ref = jax.block_until_ready(_ref_forward(x, params))
    assert jnp.allclose(out, ref, rtol=1e-3, atol=1e-3), \
        float(jnp.max(jnp.abs(out - ref)))

    print("KERNEL_OK")
</pallas_src>

<mosaic_0001>
module attributes {stable_mosaic.version = 11 : i64} {
  func.func @conv_stats_kernel(%arg0: i32, %arg1: memref<288x12xf32, #tpu.memory_space<vmem>>, %arg2: memref<3x12x128xf32, #tpu.memory_space<vmem>>, %arg3: memref<288x1xf32, #tpu.memory_space<vmem>>, %arg4: memref<288x128xf32, #tpu.memory_space<vmem>>, %arg5: memref<1x128xf32, #tpu.memory_space<vmem>>, %arg6: memref<1x128xf32, #tpu.memory_space<vmem>>) attributes {dimension_semantics = [#tpu.dimension_semantics<arbitrary>], iteration_bounds = array<i64: 2>, scalar_prefetch = 0 : i64, scratch_operands = 0 : i64, tpu.core_type = #tpu.core_type<tc>, window_params = [{transform_indices = @transform_0, window_bounds = array<i64: 288, 12>}, {pipeline_mode = #tpu.pipeline_mode<synchronous>, transform_indices = @transform_1, window_bounds = array<i64: 3, 12, 128>}, {pipeline_mode = #tpu.pipeline_mode<synchronous>, transform_indices = @transform_2, window_bounds = array<i64: 288, 1>}, {transform_indices = @transform_3, window_bounds = array<i64: 288, 128>}, {pipeline_mode = #tpu.pipeline_mode<synchronous>, transform_indices = @transform_4, window_bounds = array<i64: 1, 128>}, {pipeline_mode = #tpu.pipeline_mode<synchronous>, transform_indices = @transform_5, window_bounds = array<i64: 1, 128>}]} {
    %c0 = arith.constant 0 : index
    %c0_0 = arith.constant 0 : index
    %0 = vector.load %arg1[%c0, %c0_0] : memref<288x12xf32, #tpu.memory_space<vmem>>, vector<288x12xf32>
    %c1 = arith.constant 1 : index
    %c0_1 = arith.constant 0 : index
    %c0_2 = arith.constant 0 : index
    %1 = vector.load %arg2[%c1, %c0_1, %c0_2] : memref<3x12x128xf32, #tpu.memory_space<vmem>>, vector<1x12x128xf32>
    %2 = vector.shape_cast %1 : vector<1x12x128xf32> to vector<12x128xf32>
    %cst = arith.constant dense<0.000000e+00> : vector<288x128xf32>
    %3 = tpu.matmul %0, %2, %cst {dimension_numbers = #tpu.dot_dimension_numbers<[1], [0], [0], [1], [0, 0, 1, 1], [], []>} : vector<288x12xf32>, vector<12x128xf32>, vector<288x128xf32> -> vector<288x128xf32>
    %c1_i32 = arith.constant 1 : i32
    %4 = tpu.dynamic_rotate %0 by %c1_i32 dim 0 : vector<288x12xf32>, i32 -> vector<288x12xf32>
    %c0_3 = arith.constant 0 : index
    %c0_4 = arith.constant 0 : index
    %c0_5 = arith.constant 0 : index
    %5 = vector.load %arg2[%c0_3, %c0_4, %c0_5] : memref<3x12x128xf32, #tpu.memory_space<vmem>>, vector<1x12x128xf32>
    %6 = vector.shape_cast %5 : vector<1x12x128xf32> to vector<12x128xf32>
    %cst_6 = arith.constant dense<0.000000e+00> : vector<288x128xf32>
    %7 = tpu.matmul %4, %6, %cst_6 {dimension_numbers = #tpu.dot_dimension_numbers<[1], [0], [0], [1], [0, 0, 1, 1], [], []>} : vector<288x12xf32>, vector<12x128xf32>, vector<288x128xf32> -> vector<288x128xf32>
    %8 = arith.addf %3, %7 : vector<288x128xf32>
    %c287_i32 = arith.constant 287 : i32
    %9 = tpu.dynamic_rotate %0 by %c287_i32 dim 0 : vector<288x12xf32>, i32 -> vector<288x12xf32>
    %c2 = arith.constant 2 : index
    %c0_7 = arith.constant 0 : index
    %c0_8 = arith.constant 0 : index
    %10 = vector.load %arg2[%c2, %c0_7, %c0_8] : memref<3x12x128xf32, #tpu.memory_space<vmem>>, vector<1x12x128xf32>
    %11 = vector.shape_cast %10 : vector<1x12x128xf32> to vector<12x128xf32>
    %cst_9 = arith.constant dense<0.000000e+00> : vector<288x128xf32>
    %12 = tpu.matmul %9, %11, %cst_9 {dimension_numbers = #tpu.dot_dimension_numbers<[1], [0], [0], [1], [0, 0, 1, 1], [], []>} : vector<288x12xf32>, vector<12x128xf32>, vector<288x128xf32> -> vector<288x128xf32>
    %13 = arith.addf %8, %12 : vector<288x128xf32>
    %c0_10 = arith.constant 0 : index
    %c0_11 = arith.constant 0 : index
    %14 = vector.load %arg4[%c0_10, %c0_11] : memref<288x128xf32, #tpu.memory_space<vmem>>, vector<288x128xf32>
    tpu.vector_store %arg4[%c0_10, %c0_11], %13 {strides = array<i32>} : memref<288x128xf32, #tpu.memory_space<vmem>>, vector<288x128xf32>,
    %c0_i32 = arith.constant 0 : i32
    %15 = arith.cmpi eq, %arg0, %c0_i32 : i32
    %16 = arith.extui %15 : i1 to i32
    %c0_i32_12 = arith.constant 0 : i32
    %17 = arith.cmpi ne, %16, %c0_i32_12 : i32
    scf.if %17 {
      %cst_25 = arith.constant 0.000000e+00 : f32
      %32 = vector.broadcast %cst_25 : f32 to vector<1x128xf32>
      %c0_26 = arith.constant 0 : index
      %c0_27 = arith.constant 0 : index
      %33 = vector.load %arg5[%c0_26, %c0_27] : memref<1x128xf32, #tpu.memory_space<vmem>>, vector<1x128xf32>
      tpu.vector_store %arg5[%c0_26, %c0_27], %32 {strides = array<i32>} : memref<1x128xf32, #tpu.memory_space<vmem>>, vector<1x128xf32>,
      %cst_28 = arith.constant 0.000000e+00 : f32
      %34 = vector.broadcast %cst_28 : f32 to vector<1x128xf32>
      %c0_29 = arith.constant 0 : index
      %c0_30 = arith.constant 0 : index
      %35 = vector.load %arg6[%c0_29, %c0_30] : memref<1x128xf32, #tpu.memory_space<vmem>>, vector<1x128xf32>
      tpu.vector_store %arg6[%c0_29, %c0_30], %34 {strides = array<i32>} : memref<1x128xf32, #tpu.memory_space<vmem>>, vector<1x128xf32>,
    } else {
    }
    %c0_13 = arith.constant 0 : index
    %c0_14 = arith.constant 0 : index
    %18 = vector.load %arg3[%c0_13, %c0_14] : memref<288x1xf32, #tpu.memory_space<vmem>>, vector<288x1xf32>
    %19 = vector.broadcast %18 : vector<288x1xf32> to vector<288x128xf32>
    %20 = arith.mulf %13, %19 : vector<288x128xf32>
    %c0_15 = arith.constant 0 : index
    %c0_16 = arith.constant 0 : index
    %21 = vector.load %arg5[%c0_15, %c0_16] : memref<1x128xf32, #tpu.memory_space<vmem>>, vector<1x128xf32>
    %cst_17 = arith.constant dense<0.000000e+00> : vector<128xf32>
    %22 = vector.multi_reduction <add>, %20, %cst_17 [0] : vector<288x128xf32> to vector<128xf32>
    %23 = vector.shape_cast %22 : vector<128xf32> to vector<1x128xf32>
    %24 = arith.addf %21, %23 : vector<1x128xf32>
    %c0_18 = arith.constant 0 : index
    %c0_19 = arith.constant 0 : index
    %25 = vector.load %arg5[%c0_18, %c0_19] : memref<1x128xf32, #tpu.memory_space<vmem>>, vector<1x128xf32>
    tpu.vector_store %arg5[%c0_18, %c0_19], %24 {strides = array<i32>} : memref<1x128xf32, #tpu.memory_space<vmem>>, vector<1x128xf32>,
    %c0_20 = arith.constant 0 : index
    %c0_21 = arith.constant 0 : index
    %26 = vector.load %arg6[%c0_20, %c0_21] : memref<1x128xf32, #tpu.memory_space<vmem>>, vector<1x128xf32>
    %27 = arith.mulf %20, %13 : vector<288x128xf32>
    %cst_22 = arith.constant dense<0.000000e+00> : vector<128xf32>
    %28 = vector.multi_reduction <add>, %27, %cst_22 [0] : vector<288x128xf32> to vector<128xf32>
    %29 = vector.shape_cast %28 : vector<128xf32> to vector<1x128xf32>
    %30 = arith.addf %26, %29 : vector<1x128xf32>
    %c0_23 = arith.constant 0 : index
    %c0_24 = arith.constant 0 : index
    %31 = vector.load %arg6[%c0_23, %c0_24] : memref<1x128xf32, #tpu.memory_space<vmem>>, vector<1x128xf32>
    tpu.vector_store %arg6[%c0_23, %c0_24], %30 {strides = array<i32>} : memref<1x128xf32, #tpu.memory_space<vmem>>, vector<1x128xf32>,
    return
  }
  func.func @transform_0(%arg0: i32) -> (i32, i32) {
    %c0_i32 = arith.constant 0 : i32
    %c0_i32_0 = arith.constant 0 : i32
    return %arg0, %c0_i32 : i32, i32
  }
  func.func @transform_1(%arg0: i32) -> (i32, i32, i32) {
    %c0_i32 = arith.constant 0 : i32
    %c0_i32_0 = arith.constant 0 : i32
    %c0_i32_1 = arith.constant 0 : i32
    %c0_i32_2 = arith.constant 0 : i32
    return %c0_i32, %c0_i32_0, %c0_i32_1 : i32, i32, i32
  }
  func.func @transform_2(%arg0: i32) -> (i32, i32) {
    %c0_i32 = arith.constant 0 : i32
    %c0_i32_0 = arith.constant 0 : i32
    %c0_i32_1 = arith.constant 0 : i32
    return %c0_i32, %c0_i32_0 : i32, i32
  }
  func.func @transform_3(%arg0: i32) -> (i32, i32) {
    %c0_i32 = arith.constant 0 : i32
    %c0_i32_0 = arith.constant 0 : i32
    return %arg0, %c0_i32 : i32, i32
  }
  func.func @transform_4(%arg0: i32) -> (i32, i32) {
    %c0_i32 = arith.constant 0 : i32
    %c0_i32_0 = arith.constant 0 : i32
    %c0_i32_1 = arith.constant 0 : i32
    return %c0_i32, %c0_i32_0 : i32, i32
  }
  func.func @transform_5(%arg0: i32) -> (i32, i32) {
    %c0_i32 = arith.constant 0 : i32
    %c0_i32_0 = arith.constant 0 : i32
    %c0_i32_1 = arith.constant 0 : i32
    return %c0_i32, %c0_i32_0 : i32, i32
  }
}

module attributes {stable_mosaic.version = 11 : i64} {
  func.func @_affine_relu_kernel(%arg0: i32, %arg1: memref<288x128xf32, #tpu.memory_space<vmem>>, %arg2: memref<1x128xf32, #tpu.memory_space<vmem>>, %arg3: memref<1x128xf32, #tpu.memory_space<vmem>>, %arg4: memref<288x128xf32, #tpu.memory_space<vmem>>) attributes {dimension_semantics = [#tpu.dimension_semantics<parallel>], iteration_bounds = array<i64: 2>, scalar_prefetch = 0 : i64, scratch_operands = 0 : i64, tpu.core_type = #tpu.core_type<tc>, window_params = [{transform_indices = @transform_0, window_bounds = array<i64: 288, 128>}, {pipeline_mode = #tpu.pipeline_mode<synchronous>, transform_indices = @transform_1, window_bounds = array<i64: 1, 128>}, {pipeline_mode = #tpu.pipeline_mode<synchronous>, transform_indices = @transform_2, window_bounds = array<i64: 1, 128>}, {transform_indices = @transform_3, window_bounds = array<i64: 288, 128>}]} {
    %c0 = arith.constant 0 : index
    %c0_0 = arith.constant 0 : index
    %0 = vector.load %arg1[%c0, %c0_0] : memref<288x128xf32, #tpu.memory_space<vmem>>, vector<288x128xf32>
    %c0_1 = arith.constant 0 : index
    %c0_2 = arith.constant 0 : index
    %1 = vector.load %arg2[%c0_1, %c0_2] : memref<1x128xf32, #tpu.memory_space<vmem>>, vector<1x128xf32>
    %2 = vector.broadcast %1 : vector<1x128xf32> to vector<288x128xf32>
    %3 = arith.mulf %0, %2 : vector<288x128xf32>
    %c0_3 = arith.constant 0 : index
    %c0_4 = arith.constant 0 : index
    %4 = vector.load %arg3[%c0_3, %c0_4] : memref<1x128xf32, #tpu.memory_space<vmem>>, vector<1x128xf32>
    %5 = vector.broadcast %4 : vector<1x128xf32> to vector<288x128xf32>
    %6 = arith.addf %3, %5 : vector<288x128xf32>
    %cst = arith.constant 0.000000e+00 : f32
    %7 = vector.broadcast %cst : f32 to vector<288x128xf32>
    %8 = arith.maximumf %6, %7 : vector<288x128xf32>
    %c0_5 = arith.constant 0 : index
    %c0_6 = arith.constant 0 : index
    %9 = vector.load %arg4[%c0_5, %c0_6] : memref<288x128xf32, #tpu.memory_space<vmem>>, vector<288x128xf32>
    tpu.vector_store %arg4[%c0_5, %c0_6], %8 {strides = array<i32>} : memref<288x128xf32, #tpu.memory_space<vmem>>, vector<288x128xf32>,
    return
  }
  func.func @transform_0(%arg0: i32) -> (i32, i32) {
    %c0_i32 = arith.constant 0 : i32
    %c0_i32_0 = arith.constant 0 : i32
    return %arg0, %c0_i32 : i32, i32
  }
  func.func @transform_1(%arg0: i32) -> (i32, i32) {
    %c0_i32 = arith.constant 0 : i32
    %c0_i32_0 = arith.constant 0 : i32
    %c0_i32_1 = arith.constant 0 : i32
    return %c0_i32, %c0_i32_0 : i32, i32
  }
  func.func @transform_2(%arg0: i32) -> (i32, i32) {
    %c0_i32 = arith.constant 0 : i32
    %c0_i32_0 = arith.constant 0 : i32
    %c0_i32_1 = arith.constant 0 : i32
    return %c0_i32, %c0_i32_0 : i32, i32
  }
  func.func @transform_3(%arg0: i32) -> (i32, i32) {
    %c0_i32 = arith.constant 0 : i32
    %c0_i32_0 = arith.constant 0 : i32
    return %arg0, %c0_i32 : i32, i32
  }
}

module attributes {stable_mosaic.version = 11 : i64} {
  func.func @conv_stats_kernel(%arg0: i32, %arg1: memref<288x24xf32, #tpu.memory_space<vmem>>, %arg2: memref<3x24x128xf32, #tpu.memory_space<vmem>>, %arg3: memref<288x1xf32, #tpu.memory_space<vmem>>, %arg4: memref<288x128xf32, #tpu.memory_space<vmem>>, %arg5: memref<1x128xf32, #tpu.memory_space<vmem>>, %arg6: memref<1x128xf32, #tpu.memory_space<vmem>>) attributes {dimension_semantics = [#tpu.dimension_semantics<arbitrary>], iteration_bounds = array<i64: 2>, scalar_prefetch = 0 : i64, scratch_operands = 0 : i64, tpu.core_type = #tpu.core_type<tc>, window_params = [{transform_indices = @transform_0, window_bounds = array<i64: 288, 24>}, {pipeline_mode = #tpu.pipeline_mode<synchronous>, transform_indices = @transform_1, window_bounds = array<i64: 3, 24, 128>}, {pipeline_mode = #tpu.pipeline_mode<synchronous>, transform_indices = @transform_2, window_bounds = array<i64: 288, 1>}, {transform_indices = @transform_3, window_bounds = array<i64: 288, 128>}, {pipeline_mode = #tpu.pipeline_mode<synchronous>, transform_indices = @transform_4, window_bounds = array<i64: 1, 128>}, {pipeline_mode = #tpu.pipeline_mode<synchronous>, transform_indices = @transform_5, window_bounds = array<i64: 1, 128>}]} {
    %c0 = arith.constant 0 : index
    %c0_0 = arith.constant 0 : index
    %0 = vector.load %arg1[%c0, %c0_0] : memref<288x24xf32, #tpu.memory_space<vmem>>, vector<288x24xf32>
    %c1 = arith.constant 1 : index
    %c0_1 = arith.constant 0 : index
    %c0_2 = arith.constant 0 : index
    %1 = vector.load %arg2[%c1, %c0_1, %c0_2] : memref<3x24x128xf32, #tpu.memory_space<vmem>>, vector<1x24x128xf32>
    %2 = vector.shape_cast %1 : vector<1x24x128xf32> to vector<24x128xf32>
    %cst = arith.constant dense<0.000000e+00> : vector<288x128xf32>
    %3 = tpu.matmul %0, %2, %cst {dimension_numbers = #tpu.dot_dimension_numbers<[1], [0], [0], [1], [0, 0, 1, 1], [], []>} : vector<288x24xf32>, vector<24x128xf32>, vector<288x128xf32> -> vector<288x128xf32>
    %c1_i32 = arith.constant 1 : i32
    %4 = tpu.dynamic_rotate %0 by %c1_i32 dim 0 : vector<288x24xf32>, i32 -> vector<288x24xf32>
    %c0_3 = arith.constant 0 : index
    %c0_4 = arith.constant 0 : index
    %c0_5 = arith.constant 0 : index
    %5 = vector.load %arg2[%c0_3, %c0_4, %c0_5] : memref<3x24x128xf32, #tpu.memory_space<vmem>>, vector<1x24x128xf32>
    %6 = vector.shape_cast %5 : vector<1x24x128xf32> to vector<24x128xf32>
    %cst_6 = arith.constant dense<0.000000e+00> : vector<288x128xf32>
    %7 = tpu.matmul %4, %6, %cst_6 {dimension_numbers = #tpu.dot_dimension_numbers<[1], [0], [0], [1], [0, 0, 1, 1], [], []>} : vector<288x24xf32>, vector<24x128xf32>, vector<288x128xf32> -> vector<288x128xf32>
    %8 = arith.addf %3, %7 : vector<288x128xf32>
    %c287_i32 = arith.constant 287 : i32
    %9 = tpu.dynamic_rotate %0 by %c287_i32 dim 0 : vector<288x24xf32>, i32 -> vector<288x24xf32>
    %c2 = arith.constant 2 : index
    %c0_7 = arith.constant 0 : index
    %c0_8 = arith.constant 0 : index
    %10 = vector.load %arg2[%c2, %c0_7, %c0_8] : memref<3x24x128xf32, #tpu.memory_space<vmem>>, vector<1x24x128xf32>
    %11 = vector.shape_cast %10 : vector<1x24x128xf32> to vector<24x128xf32>
    %cst_9 = arith.constant dense<0.000000e+00> : vector<288x128xf32>
    %12 = tpu.matmul %9, %11, %cst_9 {dimension_numbers = #tpu.dot_dimension_numbers<[1], [0], [0], [1], [0, 0, 1, 1], [], []>} : vector<288x24xf32>, vector<24x128xf32>, vector<288x128xf32> -> vector<288x128xf32>
    %13 = arith.addf %8, %12 : vector<288x128xf32>
    %c0_10 = arith.constant 0 : index
    %c0_11 = arith.constant 0 : index
    %14 = vector.load %arg4[%c0_10, %c0_11] : memref<288x128xf32, #tpu.memory_space<vmem>>, vector<288x128xf32>
    tpu.vector_store %arg4[%c0_10, %c0_11], %13 {strides = array<i32>} : memref<288x128xf32, #tpu.memory_space<vmem>>, vector<288x128xf32>,
    %c0_i32 = arith.constant 0 : i32
    %15 = arith.cmpi eq, %arg0, %c0_i32 : i32
    %16 = arith.extui %15 : i1 to i32
    %c0_i32_12 = arith.constant 0 : i32
    %17 = arith.cmpi ne, %16, %c0_i32_12 : i32
    scf.if %17 {
      %cst_25 = arith.constant 0.000000e+00 : f32
      %32 = vector.broadcast %cst_25 : f32 to vector<1x128xf32>
      %c0_26 = arith.constant 0 : index
      %c0_27 = arith.constant 0 : index
      %33 = vector.load %arg5[%c0_26, %c0_27] : memref<1x128xf32, #tpu.memory_space<vmem>>, vector<1x128xf32>
      tpu.vector_store %arg5[%c0_26, %c0_27], %32 {strides = array<i32>} : memref<1x128xf32, #tpu.memory_space<vmem>>, vector<1x128xf32>,
      %cst_28 = arith.constant 0.000000e+00 : f32
      %34 = vector.broadcast %cst_28 : f32 to vector<1x128xf32>
      %c0_29 = arith.constant 0 : index
      %c0_30 = arith.constant 0 : index
      %35 = vector.load %arg6[%c0_29, %c0_30] : memref<1x128xf32, #tpu.memory_space<vmem>>, vector<1x128xf32>
      tpu.vector_store %arg6[%c0_29, %c0_30], %34 {strides = array<i32>} : memref<1x128xf32, #tpu.memory_space<vmem>>, vector<1x128xf32>,
    } else {
    }
    %c0_13 = arith.constant 0 : index
    %c0_14 = arith.constant 0 : index
    %18 = vector.load %arg3[%c0_13, %c0_14] : memref<288x1xf32, #tpu.memory_space<vmem>>, vector<288x1xf32>
    %19 = vector.broadcast %18 : vector<288x1xf32> to vector<288x128xf32>
    %20 = arith.mulf %13, %19 : vector<288x128xf32>
    %c0_15 = arith.constant 0 : index
    %c0_16 = arith.constant 0 : index
    %21 = vector.load %arg5[%c0_15, %c0_16] : memref<1x128xf32, #tpu.memory_space<vmem>>, vector<1x128xf32>
    %cst_17 = arith.constant dense<0.000000e+00> : vector<128xf32>
    %22 = vector.multi_reduction <add>, %20, %cst_17 [0] : vector<288x128xf32> to vector<128xf32>
    %23 = vector.shape_cast %22 : vector<128xf32> to vector<1x128xf32>
    %24 = arith.addf %21, %23 : vector<1x128xf32>
    %c0_18 = arith.constant 0 : index
    %c0_19 = arith.constant 0 : index
    %25 = vector.load %arg5[%c0_18, %c0_19] : memref<1x128xf32, #tpu.memory_space<vmem>>, vector<1x128xf32>
    tpu.vector_store %arg5[%c0_18, %c0_19], %24 {strides = array<i32>} : memref<1x128xf32, #tpu.memory_space<vmem>>, vector<1x128xf32>,
    %c0_20 = arith.constant 0 : index
    %c0_21 = arith.constant 0 : index
    %26 = vector.load %arg6[%c0_20, %c0_21] : memref<1x128xf32, #tpu.memory_space<vmem>>, vector<1x128xf32>
    %27 = arith.mulf %20, %13 : vector<288x128xf32>
    %cst_22 = arith.constant dense<0.000000e+00> : vector<128xf32>
    %28 = vector.multi_reduction <add>, %27, %cst_22 [0] : vector<288x128xf32> to vector<128xf32>
    %29 = vector.shape_cast %28 : vector<128xf32> to vector<1x128xf32>
    %30 = arith.addf %26, %29 : vector<1x128xf32>
    %c0_23 = arith.constant 0 : index
    %c0_24 = arith.constant 0 : index
    %31 = vector.load %arg6[%c0_23, %c0_24] : memref<1x128xf32, #tpu.memory_space<vmem>>, vector<1x128xf32>
    tpu.vector_store %arg6[%c0_23, %c0_24], %30 {strides = array<i32>} : memref<1x128xf32, #tpu.memory_space<vmem>>, vector<1x128xf32>,
    return
  }
  func.func @transform_0(%arg0: i32) -> (i32, i32) {
    %c0_i32 = arith.constant 0 : i32
    %c0_i32_0 = arith.constant 0 : i32
    return %arg0, %c0_i32 : i32, i32
  }
  func.func @transform_1(%arg0: i32) -> (i32, i32, i32) {
    %c0_i32 = arith.constant 0 : i32
    %c0_i32_0 = arith.constant 0 : i32
    %c0_i32_1 = arith.constant 0 : i32
    %c0_i32_2 = arith.constant 0 : i32
    return %c0_i32, %c0_i32_0, %c0_i32_1 : i32, i32, i32
  }
  func.func @transform_2(%arg0: i32) -> (i32, i32) {
    %c0_i32 = arith.constant 0 : i32
    %c0_i32_0 = arith.constant 0 : i32
    %c0_i32_1 = arith.constant 0 : i32
    return %c0_i32, %c0_i32_0 : i32, i32
  }
  func.func @transform_3(%arg0: i32) -> (i32, i32) {
    %c0_i32 = arith.constant 0 : i32
    %c0_i32_0 = arith.constant 0 : i32
    return %arg0, %c0_i32 : i32, i32
  }
  func.func @transform_4(%arg0: i32) -> (i32, i32) {
    %c0_i32 = arith.constant 0 : i32
    %c0_i32_0 = arith.constant 0 : i32
    %c0_i32_1 = arith.constant 0 : i32
    return %c0_i32, %c0_i32_0 : i32, i32
  }
  func.func @transform_5(%arg0: i32) -> (i32, i32) {
    %c0_i32 = arith.constant 0 : i32
    %c0_i32_0 = arith.constant 0 : i32
    %c0_i32_1 = arith.constant 0 : i32
    return %c0_i32, %c0_i32_0 : i32, i32
  }
}

</mosaic_0001>

<bundles_post_ra>
// kernel: inconv_forward.5
= control target key start
LH: loop header
LB: loop body
LE: loop exit
PB: predicated region body
PF: predicated region fallthrough
CT: control target
= control target key end

     0   :  { %s471_s12 = smov 0   ;;  %s646_s0 = inlined_call_operand.vmem [shape: f32[576,128], index: 0, kind: input, shape index: {}]   ;;  %s647_s1 = inlined_call_operand.vmem [shape: f32[1,128], index: 1, kind: input, shape index: {}]   ;;  %s648_s2 = inlined_call_operand.vmem [shape: f32[1,128], index: 2, kind: input, shape index: {}]   ;;  %s649_s3 = inlined_call_operand.vmem [shape: f32[576,128], index: 3, kind: output, shape index: {}]  }
   0x1 LB: > { %s424_s13 = sadd.s32 4294967295, %s449_s12   ;;  %p428_p0 = scmp.ge.s32.totalorder %s449_s12, 1  ;;  %s449_s12 = sphi %s471_s12, %s13_s12  }
   0x2   : > { %p138_p1 = scmp.lt.s32.totalorder %s449_s12, 3 }
   0x4   : > { %p139_p2 = pnand %p428_p0, %p138_p1 }
   0x5   : > { %s162_s14 = smul.u32 (!%p139_p2), 36, %s424_s13  ;;  %v482_v0 = vld [vmem:[%s647_s1] ss:$0 sm:$0xff] (!%p139_p2) }
   0x6   : > { %142 = sbr.rel (%p139_p2) target bundleno = 49 (0x31), region = 32  ;;  %v492_v1 = vld [vmem:[%s648_s2] ss:$0 sm:$0xff] (!%p139_p2) }
   0x7   : > { %p163_p3 = scmp.lt.s32.totalorder (!%p139_p2), %s162_s14, 71 }
   0xd   : > { %s651_s14 = smov (!%p163_p3, %s162_s14), 71 }
   0xe   : > { %s429_s15 = sshll.u32 %s651_s14, 3 }
   0xf   : > { %s487_s20 = scalar_lea.vmem %s646_s0, %s429_s15  ;;  %s515_s25 = scalar_lea.vmem %s649_s3, %s429_s15 }
  0x10   : > { %v174_v2 = vld [vmem:[%s487_s20] sm:$0xff]  ;;  %v175_v3 = vld [vmem:[%s487_s20 + $0x8] sm:$0xff]  ;;  %v176_v4 = vld [vmem:[%s487_s20 + $0x10] sm:$0xff] }
  0x11   : > { %v217_v5 = vmul.f32 %v482_v0, %v174_v2  ;;  %v218_v6 = vmul.f32 %v482_v0, %v175_v3  ;;  %v219_v7 = vmul.f32 %v482_v0, %v176_v4  ;;  %v177_v8 = vld [vmem:[%s487_s20 + $0x18] sm:$0xff]  ;;  %v178_v9 = vld [vmem:[%s487_s20 + $0x20] sm:$0xff]  ;;  %v179_v10 = vld [vmem:[%s487_s20 + $0x28] sm:$0xff] }
  0x12   : > { %v220_v11 = vmul.f32 %v482_v0, %v177_v8  ;;  %v221_v12 = vmul.f32 %v482_v0, %v178_v9  ;;  %v222_v13 = vmul.f32 %v482_v0, %v179_v10  ;;  %v180_v14 = vld [vmem:[%s487_s20 + $0x30] sm:$0xff]  ;;  %v181_v15 = vld [vmem:[%s487_s20 + $0x38] sm:$0xff]  ;;  %v182_v24 = vld [vmem:[%s487_s20 + $0x40] sm:$0xff] }
  0x13   : > { %v260_v16 = vadd.f32 %v492_v1, %v217_v5  ;;  %v261_v17 = vadd.f32 %v492_v1, %v218_v6  ;;  %v262_v18 = vadd.f32 %v492_v1, %v219_v7  ;;  %v223_v19 = vmul.f32 %v482_v0, %v180_v14  ;;  %v183_v25 = vld [vmem:[%s487_s20 + $0x48] sm:$0xff]  ;;  %v184_v26 = vld [vmem:[%s487_s20 + $0x50] sm:$0xff]  ;;  %v185_v31 = vld [vmem:[%s487_s20 + $0x58] sm:$0xff] }
  0x14   : > { %v263_v20 = vadd.f32 %v492_v1, %v220_v11  ;;  %v264_v21 = vadd.f32 %v492_v1, %v221_v12  ;;  %v265_v22 = vadd.f32 %v492_v1, %v222_v13  ;;  %v224_v23 = vmul.f32 %v482_v0, %v181_v15  ;;  %v186_v32 = vld [vmem:[%s487_s20 + $0x60] sm:$0xff]  ;;  %v187_v33 = vld [vmem:[%s487_s20 + $0x68] sm:$0xff]  ;;  %v188_v38 = vld [vmem:[%s487_s20 + $0x70] sm:$0xff] }
  0x15   : > { %v296_v27 = vmax.f32 %v260_v16, 0.0  ;;  %v297_v28 = vmax.f32 %v261_v17, 0.0  ;;  %v298_v29 = vmax.f32 %v262_v18, 0.0  ;;  %v266_v30 = vadd.f32 %v492_v1, %v223_v19  ;;  %v189_v43 = vld [vmem:[%s487_s20 + $0x78] sm:$0xff]  ;;  %v190_v56 = vld [vmem:[%s487_s20 + $0x80] sm:$0xff]  ;;  %v191_v57 = vld [vmem:[%s487_s20 + $0x88] sm:$0xff] }
  0x16   : > { %v299_v34 = vmax.f32 %v263_v20, 0.0  ;;  %v300_v35 = vmax.f32 %v264_v21, 0.0  ;;  %v301_v36 = vmax.f32 %v265_v22, 0.0  ;;  %v267_v37 = vadd.f32 %v492_v1, %v224_v23  ;;  %v192_v58 = vld [vmem:[%s487_s20 + $0x90] sm:$0xff]  ;;  %v193_v63 = vld [vmem:[%s487_s20 + $0x98] sm:$0xff]  ;;  %v194_v2 = vld [vmem:[%s487_s20 + $0xa0] sm:$0xff] }
  0x17   : > { %332 = vst [vmem:[%s515_s25] sm:$0xff] %v296_v27  ;;  %333 = vst [vmem:[%s515_s25 + $0x8] sm:$0xff] %v297_v28  ;;  %v302_v39 = vmax.f32 %v266_v30, 0.0  ;;  %v225_v40 = vmul.f32 %v482_v0, %v182_v24  ;;  %v226_v41 = vmul.f32 %v482_v0, %v183_v25  ;;  %v227_v42 = vmul.f32 %v482_v0, %v184_v26  ;;  %v195_v3 = vld [vmem:[%s487_s20 + $0xa8] sm:$0xff]  ;;  %v196_v8 = vld [vmem:[%s487_s20 + $0xb0] sm:$0xff] }
  0x18   : > { %334 = vst [vmem:[%s515_s25 + $0x10] sm:$0xff] %v298_v29  ;;  %335 = vst [vmem:[%s515_s25 + $0x18] sm:$0xff] %v299_v34  ;;  %v303_v44 = vmax.f32 %v267_v37, 0.0  ;;  %v228_v45 = vmul.f32 %v482_v0, %v185_v31  ;;  %v229_v46 = vmul.f32 %v482_v0, %v186_v32  ;;  %v230_v47 = vmul.f32 %v482_v0, %v187_v33  ;;  %v197_v13 = vld [vmem:[%s487_s20 + $0xb8] sm:$0xff]  ;;  %v198_v26 = vld [vmem:[%s487_s20 + $0xc0] sm:$0xff] }
  0x19   : > { %336 = vst [vmem:[%s515_s25 + $0x20] sm:$0xff] %v300_v35  ;;  %337 = vst [vmem:[%s515_s25 + $0x28] sm:$0xff] %v301_v36  ;;  %v268_v48 = vadd.f32 %v492_v1, %v225_v40  ;;  %v269_v49 = vadd.f32 %v492_v1, %v226_v41  ;;  %v270_v50 = vadd.f32 %v492_v1, %v227_v42  ;;  %v199_v27 = vld [vmem:[%s487_s20 + $0xc8] sm:$0xff]  ;;  %v200_v28 = vld [vmem:[%s487_s20 + $0xd0] sm:$0xff] }
  0x1a   : > { %338 = vst [vmem:[%s515_s25 + $0x30] sm:$0xff] %v302_v39  ;;  %v231_v51 = vmul.f32 %v482_v0, %v188_v38  ;;  %339 = vst [vmem:[%s515_s25 + $0x38] sm:$0xff] %v303_v44  ;;  %v271_v52 = vadd.f32 %v492_v1, %v228_v45  ;;  %v272_v53 = vadd.f32 %v492_v1, %v229_v46  ;;  %v201_v33 = vld [vmem:[%s487_s20 + $0xd8] sm:$0xff]  ;;  %v202_v34 = vld [vmem:[%s487_s20 + $0xe0] sm:$0xff] }
  0x1b   : > { %v273_v54 = vadd.f32 %v492_v1, %v230_v47  ;;  %v232_v55 = vmul.f32 %v482_v0, %v189_v43  ;;  %v304_v59 = vmax.f32 %v268_v48, 0.0  ;;  %v305_v60 = vmax.f32 %v269_v49, 0.0  ;;  %v203_v35 = vld [vmem:[%s487_s20 + $0xe8] sm:$0xff]  ;;  %v204_v40 = vld [vmem:[%s487_s20 + $0xf0] sm:$0xff]  ;;  %v205_v45 = vld [vmem:[%s487_s20 + $0xf8] sm:$0xff] }
  0x1c   : > { %v306_v61 = vmax.f32 %v270_v50, 0.0  ;;  %v274_v62 = vadd.f32 %v492_v1, %v231_v51  ;;  %v307_v4 = vmax.f32 %v271_v52, 0.0  ;;  %v308_v5 = vmax.f32 %v272_v53, 0.0 }
  0x1d   : > { %v309_v6 = vmax.f32 %v273_v54, 0.0  ;;  %v275_v7 = vadd.f32 %v492_v1, %v232_v55  ;;  %340 = vst [vmem:[%s515_s25 + $0x40] sm:$0xff] %v304_v59  ;;  %341 = vst [vmem:[%s515_s25 + $0x48] sm:$0xff] %v305_v60  ;;  %v233_v10 = vmul.f32 %v482_v0, %v190_v56  ;;  %v234_v11 = vmul.f32 %v482_v0, %v191_v57  ;;  %v207_v59 = vld [vmem:[%s487_s20 + $0x108] sm:$0xff]  ;;  %v208_v60 = vld [vmem:[%s487_s20 + $0x110] sm:$0xff] }
  0x1e   : > { %342 = vst [vmem:[%s515_s25 + $0x50] sm:$0xff] %v306_v61  ;;  %v310_v9 = vmax.f32 %v274_v62, 0.0  ;;  %v235_v12 = vmul.f32 %v482_v0, %v192_v58  ;;  %343 = vst [vmem:[%s515_s25 + $0x58] sm:$0xff] %v307_v4  ;;  %v236_v15 = vmul.f32 %v482_v0, %v193_v63  ;;  %v237_v16 = vmul.f32 %v482_v0, %v194_v2  ;;  %v206_v58 = vld [vmem:[%s487_s20 + $0x100] sm:$0xff] }
  0x1f   : > { %344 = vst [vmem:[%s515_s25 + $0x60] sm:$0xff] %v308_v5  ;;  %345 = vst [vmem:[%s515_s25 + $0x68] sm:$0xff] %v309_v6  ;;  %v311_v14 = vmax.f32 %v275_v7, 0.0  ;;  %v238_v17 = vmul.f32 %v482_v0, %v195_v3  ;;  %v276_v18 = vadd.f32 %v492_v1, %v233_v10  ;;  %v277_v19 = vadd.f32 %v492_v1, %v234_v11  ;;  %v209_v3 = vld [vmem:[%s487_s20 + $0x118] sm:$0xff] }
  0x20   : > { %346 = vst [vmem:[%s515_s25 + $0x70] sm:$0xff] %v310_v9  ;;  %v278_v20 = vadd.f32 %v492_v1, %v235_v12  ;;  %v239_v21 = vmul.f32 %v482_v0, %v196_v8  ;;  %v279_v22 = vadd.f32 %v492_v1, %v236_v15  ;;  %v280_v23 = vadd.f32 %v492_v1, %v237_v16 }
  0x21   : > { %347 = vst [vmem:[%s515_s25 + $0x78] sm:$0xff] %v311_v14  ;;  %v281_v24 = vadd.f32 %v492_v1, %v238_v17  ;;  %v240_v25 = vmul.f32 %v482_v0, %v197_v13  ;;  %v312_v29 = vmax.f32 %v276_v18, 0.0  ;;  %v313_v30 = vmax.f32 %v277_v19, 0.0 }
  0x22   : > { %v314_v31 = vmax.f32 %v278_v20, 0.0  ;;  %v282_v32 = vadd.f32 %v492_v1, %v239_v21  ;;  %v315_v36 = vmax.f32 %v279_v22, 0.0  ;;  %v316_v37 = vmax.f32 %v280_v23, 0.0 }
  0x23   : > { %v317_v38 = vmax.f32 %v281_v24, 0.0  ;;  %v283_v39 = vadd.f32 %v492_v1, %v240_v25  ;;  %348 = vst [vmem:[%s515_s25 + $0x80] sm:$0xff] %v312_v29  ;;  %349 = vst [vmem:[%s515_s25 + $0x88] sm:$0xff] %v313_v30  ;;  %v241_v42 = vmul.f32 %v482_v0, %v198_v26  ;;  %v242_v43 = vmul.f32 %v482_v0, %v199_v27 }
  0x24   : > { %350 = vst [vmem:[%s515_s25 + $0x90] sm:$0xff] %v314_v31  ;;  %v318_v41 = vmax.f32 %v282_v32, 0.0  ;;  %v243_v44 = vmul.f32 %v482_v0, %v200_v28  ;;  %351 = vst [vmem:[%s515_s25 + $0x98] sm:$0xff] %v315_v36  ;;  %v244_v47 = vmul.f32 %v482_v0, %v201_v33  ;;  %v245_v48 = vmul.f32 %v482_v0, %v202_v34 }
  0x25   : > { %352 = vst [vmem:[%s515_s25 + $0xa0] sm:$0xff] %v316_v37  ;;  %353 = vst [vmem:[%s515_s25 + $0xa8] sm:$0xff] %v317_v38  ;;  %v319_v46 = vmax.f32 %v283_v39, 0.0  ;;  %v246_v49 = vmul.f32 %v482_v0, %v203_v35  ;;  %v284_v50 = vadd.f32 %v492_v1, %v241_v42  ;;  %v285_v51 = vadd.f32 %v492_v1, %v242_v43 }
  0x26   : > { %354 = vst [vmem:[%s515_s25 + $0xb0] sm:$0xff] %v318_v41  ;;  %v286_v52 = vadd.f32 %v492_v1, %v243_v44  ;;  %v247_v53 = vmul.f32 %v482_v0, %v204_v40  ;;  %v287_v54 = vadd.f32 %v492_v1, %v244_v47  ;;  %v288_v55 = vadd.f32 %v492_v1, %v245_v48 }
  0x27   : > { %355 = vst [vmem:[%s515_s25 + $0xb8] sm:$0xff] %v319_v46  ;;  %v289_v56 = vadd.f32 %v492_v1, %v246_v49  ;;  %v248_v57 = vmul.f32 %v482_v0, %v205_v45  ;;  %v320_v61 = vmax.f32 %v284_v50, 0.0  ;;  %v321_v62 = vmax.f32 %v285_v51, 0.0 }
  0x28   : > { %v322_v63 = vmax.f32 %v286_v52, 0.0  ;;  %v290_v2 = vadd.f32 %v492_v1, %v247_v53  ;;  %v323_v4 = vmax.f32 %v287_v54, 0.0  ;;  %v324_v5 = vmax.f32 %v288_v55, 0.0 }
  0x29   : > { %v325_v6 = vmax.f32 %v289_v56, 0.0  ;;  %v291_v7 = vadd.f32 %v492_v1, %v248_v57  ;;  %356 = vst [vmem:[%s515_s25 + $0xc0] sm:$0xff] %v320_v61  ;;  %357 = vst [vmem:[%s515_s25 + $0xc8] sm:$0xff] %v321_v62  ;;  %v249_v9 = vmul.f32 %v482_v0, %v206_v58  ;;  %v250_v10 = vmul.f32 %v482_v0, %v207_v59 }
  0x2a   : > { %358 = vst [vmem:[%s515_s25 + $0xd0] sm:$0xff] %v322_v63  ;;  %v326_v8 = vmax.f32 %v290_v2, 0.0  ;;  %v251_v11 = vmul.f32 %v482_v0, %v208_v60  ;;  %359 = vst [vmem:[%s515_s25 + $0xd8] sm:$0xff] %v323_v4  ;;  %v252_v13 = vmul.f32 %v482_v0, %v209_v3 }
  0x2b   : > { %360 = vst [vmem:[%s515_s25 + $0xe0] sm:$0xff] %v324_v5  ;;  %361 = vst [vmem:[%s515_s25 + $0xe8] sm:$0xff] %v325_v6  ;;  %v327_v12 = vmax.f32 %v291_v7, 0.0  ;;  %v292_v14 = vadd.f32 %v492_v1, %v249_v9  ;;  %v293_v15 = vadd.f32 %v492_v1, %v250_v10 }
  0x2c   : > { %362 = vst [vmem:[%s515_s25 + $0xf0] sm:$0xff] %v326_v8  ;;  %v294_v16 = vadd.f32 %v492_v1, %v251_v11  ;;  %v295_v17 = vadd.f32 %v492_v1, %v252_v13 }
  0x2d   : > { %363 = vst [vmem:[%s515_s25 + $0xf8] sm:$0xff] %v327_v12  ;;  %v328_v18 = vmax.f32 %v292_v14, 0.0  ;;  %v329_v19 = vmax.f32 %v293_v15, 0.0 }
  0x2e   : > { %v330_v20 = vmax.f32 %v294_v16, 0.0  ;;  %v331_v21 = vmax.f32 %v295_v17, 0.0 }
  0x2f   : > { %364 = vst [vmem:[%s515_s25 + $0x100] sm:$0xff] %v328_v18  ;;  %365 = vst [vmem:[%s515_s25 + $0x108] sm:$0xff] %v329_v19 }
  0x30   : > { %366 = vst [vmem:[%s515_s25 + $0x110] sm:$0xff] %v330_v20  ;;  %367 = vst [vmem:[%s515_s25 + $0x118] sm:$0xff] %v331_v21 }
  0x31 PF: > { %s13_s12 = sadd.s32 1, %s449_s12  }
  0x32   : > { %p10_p4 = scmp.ge.s32.totalorder %s13_s12, 4  }
  0x34   :  { %12 = sbr.rel (!%p10_p4) target bundleno = 1 (0x1), region = 62 }

// kernel: inconv_forward.4
= control target key start
LH: loop header
LB: loop body
LE: loop exit
PB: predicated region body
PF: predicated region fallthrough
CT: control target
= control target key end

     0   :  { %s2566_s18 = smov 0   ;;  %s3483_s0 = inlined_call_operand.vmem [shape: f32[576,12], index: 0, kind: input, shape index: {}]   ;;  %s3484_s1 = inlined_call_operand.vmem [shape: f32[3,12,128], index: 1, kind: input, shape index: {}]   ;;  %s3485_s2 = inlined_call_operand.vmem [shape: f32[288,1], index: 2, kind: input, shape index: {}]   ;;  %s3486_s3 = inlined_call_operand.vmem [shape: f32[576,128], index: 3, kind: output, shape index: {0}]   ;;  %s3487_s4 = inlined_call_operand.vmem [shape: f32[1,128], index: 4, kind: output, shape index: {1}]   ;;  %s3488_s5 = inlined_call_operand.vmem [shape: f32[1,128], index: 5, kind: output, shape index: {2}]  }
   0x1 LB: > { %s2007_s19 = sadd.s32 4294967295, %s2531_s18   ;;  %p2011_p0 = scmp.ge.s32.totalorder %s2531_s18, 1  ;;  %s2531_s18 = sphi %s2566_s18, %s16_s18  }
   0x2   : > { %p183_p1 = scmp.lt.s32.totalorder %s2531_s18, 3 }
   0x4   : > { %p184_p2 = pnand %p2011_p0, %p183_p1 }
   0x5   : > { %v2014_v0 = vld [vmem:[%s3484_s1 + $0x10] sm:$0xff] (!%p184_p2)  ;;  %v2015_v1 = vld [vmem:[%s3484_s1 + $0x18] sm:$0xf] (!%p184_p2)  ;;  %vm448_vm0 = vcmask (!%p184_p2), 1043456   ;;  %v337_v2 = vld [vmem:[%s3484_s1] sm:$0xff] (!%p184_p2)  ;;  %vm2533_vm1 = vmmov (!%p184_p2), 1   ;;  %v298_v6 = vlaneseq (!%p184_p2) }
   0x6   : > { %187 = sbr.rel (%p184_p2) target bundleno = 564 (0x234), region = 32  ;;  %vm2583_vm2 = vmpackc.low (!%p184_p2), %vm448_vm0, %vm2533_vm1  ;;  %v2426_v4 = vpack.c.bf16 (!%p184_p2), %v2015_v1, %v2014_v0  ;;  %v338_v5 = vld [vmem:[%s3484_s1 + $0x8] sm:$0xf] (!%p184_p2)  ;;  %v2090_v7 = vld [vmem:[%s3484_s1 + $0x20] sm:$0xff] (!%p184_p2)  ;;  %vm339_vm3 = vcmask (!%p184_p2), 97280   ;;  %p2129_p4 = scmp.ne.s32.totalorder (!%p184_p2), %s2007_s19, 0 }
   0x7   : > { %s211_s28 = smul.u32 (!%p184_p2), 36, %s2007_s19  ;;  %v2420_v8 = vpack.c.bf16 (!%p184_p2), %v338_v5, %v337_v2  ;;  %v2091_v9 = vld [vmem:[%s3484_s1 + $0x28] sm:$0xf] (!%p184_p2)  ;;  %v2608_v11 = vshrl.u32 (!%p184_p2), %v298_v6, 7 }
   0x8   : > { %2428 = vmatprep.subr.msk.bf16.mxu0 (!%p184_p2), %vm2583_vm2, %v2426_v4  ;;  %v2432_v10 = vpack.c.bf16 (!%p184_p2), %v2091_v9, %v2090_v7 }
   0x9   : > { %p212_p3 = scmp.lt.s32.totalorder (!%p184_p2), %s211_s28, 71  ;;  %2431 = vmatpush3.bf16.msk.msra.mxu0 (!%p184_p2), %vm2583_vm2, %v2426_v4  ;;  %2422 = vmatprep.subr.msk.bf16.mxu1 (!%p184_p2), %vm2583_vm2, %v2420_v8  ;;  %vm300_vm4 = vcmp.lt.s32.totalorder (!%p184_p2), %v2608_v11, 1  ;;  %vm1089_vm5 = vcmp.lt.s32.totalorder (!%p184_p2), %v2608_v11, 7 }
   0xa   : > { %2425 = vmatpush3.bf16.msk.msra.mxu1 (!%p184_p2), %vm2583_vm2, %v2420_v8  ;;  %2434 = vmatprep.subr.msk.bf16.mxu0 (!%p184_p2), %vm2583_vm2, %v2432_v10 }
   0xb   : > { %2438 = vmatprep.subr.msk.bf16.mxu1 (!%p184_p2), %vm2583_vm2, %v2426_v4 }
   0xd   : > { %s3492_s28 = smov (!%p212_p3, %s211_s28), 71 }
   0xe   : > { %s2012_s8 = sshll.u32 %s3492_s28, 3 }
   0xf   : > { %s2620_s11 = scalar_lea.vmem %s3483_s0, %s2012_s8  ;;  %s3134_s14 = scalar_lea.vmem %s3486_s3, %s2012_s8 }
  0x10   : > { %v2623_v12 = vld [vmem:[%s2620_s11] sm:$0xff]  ;;  %v2626_v13 = vld [vmem:[%s2620_s11 + $0x8] sm:$0xff]  ;;  %v2629_v14 = vld [vmem:[%s2620_s11 + $0x118] sm:$0xff] }
  0x11   : > { %v262_v15 = vrot.slane %v2623_v12, 7  ;;  %2308 = vmatprep.mubr.msk.f32.mxu0 %vm339_vm3, %v2623_v12  ;;  %v263_v16 = vrot.slane %v2626_v13, 7  ;;  %v2637_v17 = vld [vmem:[%s2620_s11 + $0x10] sm:$0xff]  ;;  %v2640_v18 = vld [vmem:[%s2620_s11 + $0x18] sm:$0xff]  ;;  %v297_v19 = vrot.slane %v2629_v14, 7  ;;  %v2647_v21 = vld [vmem:[%s2620_s11 + $0x20] sm:$0xff] }
  0x12   : > { %2309 = vmatmul.mubr.msk.f32.vlgmr.msra.gmra.mrb[0].mxu0 %vm339_vm3, %v2626_v13  ;;  %v264_v20 = vrot.slane %v2637_v17, 7  ;;  %v265_v23 = vrot.slane %v2640_v18, 7  ;;  %v266_v26 = vrot.slane %v2647_v21, 7  ;;  %v2664_v27 = vld [vmem:[%s2620_s11 + $0x28] sm:$0xff]  ;;  %v2668_v28 = vld [vmem:[%s2620_s11 + $0x30] sm:$0xff]  ;;  %v2685_v33 = vld [vmem:[%s2620_s11 + $0x38] sm:$0xff] }
  0x13   : > { %v335_v22 = vsel %vm300_vm4, %v262_v15, %v263_v16  ;;  %2311 = vmatprep.mubr.msk.f32.mxu0 %vm339_vm3, %v2637_v17  ;;  %2437 = vmatpush3.bf16.msk.msra.mxu0 %vm2583_vm2, %v2432_v10  ;;  %v336_v24 = vsel %vm300_vm4, %v297_v19, %v262_v15  ;;  %v267_v30 = vrot.slane %v2664_v27, 7  ;;  %v268_v32 = vrot.slane %v2668_v28, 7  ;;  %v2688_v34 = vld [vmem:[%s2620_s11 + $0x40] sm:$0xff]  ;;  %v2703_v39 = vld [vmem:[%s2620_s11 + $0x48] sm:$0xff]  ;;  %v2706_v40 = vld [vmem:[%s2620_s11 + $0x50] sm:$0xff] }
  0x14   : > { %v334_v25 = vsel %vm300_vm4, %v263_v16, %v264_v20  ;;  %2250 = vmatprep.mubr.msk.f32.mxu1 %vm339_vm3, %v336_v24  ;;  %v333_v29 = vsel %vm300_vm4, %v264_v20, %v265_v23  ;;  %v332_v31 = vsel %vm300_vm4, %v265_v23, %v266_v26  ;;  %v269_v36 = vrot.slane %v2685_v33, 7  ;;  %v2721_v45 = vld [vmem:[%s2620_s11 + $0x58] sm:$0xff]  ;;  %v2724_v46 = vld [vmem:[%s2620_s11 + $0x60] sm:$0xff]  ;;  %v2739_v51 = vld [vmem:[%s2620_s11 + $0x68] sm:$0xff] }
  0x15   : > { %2251 = vmatmul.mubr.msk.f32.vlgmr.msra.gmra.mrb[0].mxu1 %vm339_vm3, %v335_v22  ;;  %v331_v35 = vsel %vm300_vm4, %v266_v26, %v267_v30  ;;  %v330_v37 = vsel %vm300_vm4, %v267_v30, %v268_v32  ;;  %v270_v38 = vrot.slane %v2688_v34, 7  ;;  %v271_v42 = vrot.slane %v2703_v39, 7  ;;  %v2742_v52 = vld [vmem:[%s2620_s11 + $0x70] sm:$0xff]  ;;  %v2748_v53 = vld [vmem:[%s2620_s11 + $0x100] sm:$0xff]  ;;  %v2751_v54 = vld [vmem:[%s2620_s11 + $0x108] sm:$0xff] }
  0x16   : > { %2312 = vmatmul.mubr.msk.f32.gmra.mrb[2].mxu0 %vm339_vm3, %v2640_v18  ;;  %2439 = vmatpush3.bf16.msk.msra.mxu1 %vm2583_vm2, %v2426_v4  ;;  %v329_v41 = vsel %vm300_vm4, %v268_v32, %v269_v36  ;;  %v272_v44 = vrot.slane %v2706_v40, 7  ;;  %v273_v48 = vrot.slane %v2721_v45, 7  ;;  %v274_v50 = vrot.slane %v2724_v46, 7  ;;  %v2760_v57 = vld [vmem:[%s2620_s11 + $0x110] sm:$0xff]  ;;  %v2766_v60 = vld [vmem:[%s2620_s11 + $0x78] sm:$0xff]  ;;  %v2769_v61 = vld [vmem:[%s2620_s11 + $0x80] sm:$0xff] }
  0x17   : > { %2253 = vmatprep.mubr.msk.f32.mxu1 %vm339_vm3, %v334_v25  ;;  %2314 = vmatprep.mubr.msk.f32.mxu0 %vm339_vm3, %v2647_v21  ;;  %v328_v43 = vsel %vm300_vm4, %v269_v36, %v270_v38  ;;  %v327_v47 = vsel %vm300_vm4, %v270_v38, %v271_v42  ;;  %v275_v56 = vrot.slane %v2739_v51, 7  ;;  %v276_v59 = vrot.slane %v2742_v52, 7  ;;  %v2786_v5 = vld [vmem:[%s2620_s11 + $0x88] sm:$0xff]  ;;  %v2828_v24 = vld [vmem:[%s2620_s11 + $0x98] sm:$0xff]  ;;  %v2833_v25 = vld [vmem:[%s2620_s11 + $0xa0] sm:$0xff] }
  0x18   : > { %v326_v49 = vsel %vm300_vm4, %v271_v42, %v272_v44  ;;  %v325_v55 = vsel %vm300_vm4, %v272_v44, %v273_v48  ;;  %v324_v58 = vsel %vm300_vm4, %v273_v48, %v274_v50  ;;  %v294_v62 = vrot.slane %v2748_v53, 7  ;;  %v2855_v38 = vld [vmem:[%s2620_s11 + $0xa8] sm:$0xff] }
  0x19   : > { %2254 = vmatmul.mubr.msk.f32.gmra.mrb[2].mxu1 %vm339_vm3, %v333_v29  ;;  %v295_v63 = vrot.slane %v2751_v54, 7  ;;  %v1053_v0 = vrot.slane %v2623_v12, 1  ;;  %v296_v1 = vrot.slane %v2760_v57, 7  ;;  %v1054_v2 = vrot.slane %v2626_v13, 1  ;;  %v2809_v12 = vld [vmem:[%s2620_s11 + $0x90] sm:$0xff] }
  0x1a   : > { %2315 = vmatmul.mubr.msk.f32.gmra.mrb[4].mxu0 %vm339_vm3, %v2664_v27  ;;  %2256 = vmatprep.mubr.msk.f32.mxu1 %vm339_vm3, %v332_v31  ;;  %v323_v3 = vsel %vm300_vm4, %v274_v50, %v275_v56  ;;  %v277_v4 = vrot.slane %v2766_v60, 7  ;;  %v322_v7 = vsel %vm300_vm4, %v275_v56, %v276_v59  ;;  %v278_v8 = vrot.slane %v2769_v61, 7 }
  0x1b   : > { %2317 = vmatprep.mubr.msk.f32.mxu0 %vm339_vm3, %v2668_v28  ;;  %v2792_v6 = vsel %vm300_vm4, %v294_v62, %v295_v63  ;;  %v2799_v9 = vsel %vm300_vm4, %v295_v63, %v296_v1  ;;  %v2805_v10 = vsel %vm300_vm4, %v296_v1, %v297_v19  ;;  %v279_v13 = vrot.slane %v2786_v5, 7  ;;  %v2895_v63 = vld [vmem:[%s2620_s11 + $0xb8] sm:$0xff] }
  0x1c   : > { %v1055_v15 = vrot.slane %v2637_v17, 1  ;;  %v1056_v16 = vrot.slane %v2640_v18, 1  ;;  %v321_v19 = vsel %vm300_vm4, %v276_v59, %v277_v4  ;;  %v320_v20 = vsel %vm300_vm4, %v277_v4, %v278_v8 }
  0x1d   : > { %2257 = vmatmul.mubr.msk.f32.gmra.mrb[4].mxu1 %vm339_vm3, %v331_v35  ;;  %v1124_v22 = vsel %vm1089_vm5, %v1053_v0, %v1054_v2  ;;  %v280_v23 = vrot.slane %v2809_v12, 7  ;;  %v1057_v17 = vrot.slane %v2647_v21, 1  ;;  %v1058_v18 = vrot.slane %v2664_v27, 1 }
  0x1e   : > { %2318 = vmatmul.mubr.msk.f32.gmra.mrb[6].mxu0 %vm339_vm3, %v2685_v33  ;;  %2259 = vmatprep.mubr.msk.f32.mxu1 %vm339_vm3, %v330_v37  ;;  %v319_v26 = vsel %vm300_vm4, %v278_v8, %v279_v13  ;;  %v1085_v29 = vrot.slane %v2748_v53, 1  ;;  %v1086_v30 = vrot.slane %v2751_v54, 1  ;;  %v1087_v21 = vrot.slane %v2760_v57, 1 }
  0x1f   : > { %2320 = vmatprep.mubr.msk.f32.mxu0 %vm339_vm3, %v2688_v34  ;;  %v1123_v27 = vsel %vm1089_vm5, %v1054_v2, %v1055_v15  ;;  %v281_v31 = vrot.slane %v2828_v24, 7  ;;  %v1122_v32 = vsel %vm1089_vm5, %v1055_v15, %v1056_v16  ;;  %v1088_v35 = vrot.slane %v2629_v14, 1  ;;  %v2920_v15 = vld [vmem:[%s2620_s11 + $0xd0] sm:$0xff] }
  0x20   : > { %v318_v36 = vsel %vm300_vm4, %v279_v13, %v280_v23  ;;  %v282_v37 = vrot.slane %v2833_v25, 7  ;;  %v2865_v42 = vsel %vm1089_vm5, %v1086_v30, %v1087_v21  ;;  %v1059_v48 = vrot.slane %v2668_v28, 1  ;;  %v2917_v13 = vld [vmem:[%s2620_s11 + $0xc8] sm:$0xff] }
  0x21   : > { %2260 = vmatmul.mubr.msk.f32.gmra.mrb[6].mxu1 %vm339_vm3, %v329_v41  ;;  %v2861_v41 = vsel %vm1089_vm5, %v1085_v29, %v1086_v30  ;;  %v2872_v44 = vsel %vm1089_vm5, %v1087_v21, %v1088_v35  ;;  %v1121_v50 = vsel %vm1089_vm5, %v1056_v16, %v1057_v17  ;;  %v1060_v56 = vrot.slane %v2685_v33, 1 }
  0x22   : > { %2321 = vmatmul.mubr.msk.f32.gmra.mrb[8].mxu0 %vm339_vm3, %v2703_v39  ;;  %2262 = vmatprep.mubr.msk.f32.mxu1 %vm339_vm3, %v328_v43  ;;  %v2868_v43 = vld [vmem:[%s2620_s11 + $0xb0] sm:$0xff]  ;;  %v1120_v28 = vsel %vm1089_vm5, %v1057_v17, %v1058_v18  ;;  %v1061_v33 = vrot.slane %v2688_v34, 1  ;;  %v1119_v2 = vsel %vm1089_vm5, %v1058_v18, %v1059_v48  ;;  %v1062_v4 = vrot.slane %v2703_v39, 1  ;;  %v2939_v18 = vld [vmem:[%s2620_s11 + $0xd8] sm:$0xff] }
  0x23   : > { %2323 = vmatprep.mubr.msk.f32.mxu0 %vm339_vm3, %v2706_v40  ;;  %v284_v59 = vrot.slane %v2868_v43, 7  ;;  %v1118_v34 = vsel %vm1089_vm5, %v1059_v48, %v1060_v56  ;;  %v1063_v39 = vrot.slane %v2706_v40, 1  ;;  %v288_v17 = vrot.slane %v2920_v15, 7 }
  0x24   : > { %v1116_v40 = vsel %vm1089_vm5, %v1061_v33, %v1062_v4  ;;  %v1067_v48 = vrot.slane %v2742_v52, 1 }
  0x25   : > { %2263 = vmatmul.mubr.msk.f32.gmra.mrb[8].mxu1 %vm339_vm3, %v327_v47  ;;  %v2876_v47 = vsel %vm1089_vm5, %v1088_v35, %v1053_v0  ;;  %v2898_v0 = vld [vmem:[%s2620_s11 + $0xc0] sm:$0xff]  ;;  %v1115_v21 = vsel %vm1089_vm5, %v1062_v4, %v1063_v39 }
  0x26   : > { %2324 = vmatmul.mubr.msk.f32.gmra.mrb[10].mxu0 %vm339_vm3, %v2721_v45  ;;  %2265 = vmatprep.mubr.msk.f32.mxu1 %vm339_vm3, %v326_v49  ;;  %v317_v49 = vsel %vm300_vm4, %v280_v23, %v281_v31  ;;  %v286_v8 = vrot.slane %v2898_v0, 7 }
  0x27   : > { %2326 = vmatprep.mubr.msk.f32.mxu0 %vm339_vm3, %v2724_v46 }
  0x29   : > { %2266 = vmatmul.mubr.msk.f32.gmra.mrb[10].mxu1 %vm339_vm3, %v325_v55  ;;  %v283_v55 = vrot.slane %v2855_v38, 7 }
  0x2a   : > { %2327 = vmatmul.mubr.msk.f32.gmra.mrb[12].mxu0 %vm339_vm3, %v2739_v51  ;;  %2268 = vmatprep.mubr.msk.f32.mxu1 %vm339_vm3, %v324_v58  ;;  %v316_v58 = vsel %vm300_vm4, %v281_v31, %v282_v37  ;;  %v1066_v31 = vrot.slane %v2739_v51, 1 }
  0x2b   : > { %2329 = vmatprep.mubr.msk.f32.mxu0 %vm339_vm3, %v2742_v52  ;;  %v315_v1 = vsel %vm300_vm4, %v282_v37, %v283_v55  ;;  %v2964_v37 = vld [vmem:[%s2620_s11 + $0xf0] sm:$0xff] }
  0x2d   : > { %2269 = vmatmul.mubr.msk.f32.gmra.mrb[12].mxu1 %vm339_vm3, %v323_v3  ;;  %v285_v3 = vrot.slane %v2895_v63, 7 }
  0x2e   : > { %2330 = vmatmul.mubr.msk.f32.gmra.mrb[14].mxu0 %vm339_vm3, %v2766_v60  ;;  %2271 = vmatprep.mubr.msk.f32.mxu1 %vm339_vm3, %v322_v7  ;;  %v314_v7 = vsel %vm300_vm4, %v283_v55, %v284_v59  ;;  %v1068_v55 = vrot.slane %v2766_v60, 1 }
  0x2f   : > { %2332 = vmatprep.mubr.msk.f32.mxu0 %vm339_vm3, %v2769_v61  ;;  %v313_v16 = vsel %vm300_vm4, %v284_v59, %v285_v3  ;;  %v312_v23 = vsel %vm300_vm4, %v285_v3, %v286_v8  ;;  %v1069_v59 = vrot.slane %v2769_v61, 1 }
  0x30   : > { %v1110_v61 = vsel %vm1089_vm5, %v1067_v48, %v1068_v55 }
  0x31   : > { %2272 = vmatmul.mubr.msk.f32.gmra.mrb[14].mxu1 %vm339_vm3, %v321_v19  ;;  %v1117_v19 = vsel %vm1089_vm5, %v1060_v56, %v1061_v33  ;;  %v1111_v33 = vsel %vm1089_vm5, %v1066_v31, %v1067_v48 }
  0x32   : > { %2333 = vmatmul.mubr.msk.f32.gmra.mrb[16].mxu0 %vm339_vm3, %v2786_v5  ;;  %2274 = vmatprep.mubr.msk.f32.mxu1 %vm339_vm3, %v320_v20  ;;  %v287_v20 = vrot.slane %v2917_v13, 7 }
  0x33   : > { %2366 = vmatprep.mubr.msk.f32.mxu0 %vm339_vm3, %v1124_v22  ;;  %v1064_v22 = vrot.slane %v2721_v45, 1  ;;  %v1065_v45 = vrot.slane %v2724_v46, 1 }
  0x34   : > { %v311_v30 = vsel %vm300_vm4, %v286_v8, %v287_v20 }
  0x35   : > { %2275 = vmatmul.mubr.msk.f32.gmra.mrb[16].mxu1 %vm339_vm3, %v319_v26  ;;  %v2942_v26 = vld [vmem:[%s2620_s11 + $0xe0] sm:$0xff]  ;;  %v1114_v46 = vsel %vm1089_vm5, %v1063_v39, %v1064_v22  ;;  %v1112_v52 = vsel %vm1089_vm5, %v1065_v45, %v1066_v31  ;;  %v1072_v39 = vrot.slane %v2828_v24, 1 }
  0x36   : > { %2367 = vmatmul.mubr.msk.f32.vlgmr.msra.gmra.mrb[0].mxu0 %vm339_vm3, %v1123_v27  ;;  %2277 = vmatprep.mubr.msk.f32.mxu1 %vm339_vm3, %v318_v36  ;;  %v289_v27 = vrot.slane %v2939_v18, 7  ;;  %v290_v35 = vrot.slane %v2942_v26, 7  ;;  %v2961_v36 = vld [vmem:[%s2620_s11 + $0xe8] sm:$0xff] }
  0x37   : > { %2369 = vmatprep.mubr.msk.f32.mxu0 %vm339_vm3, %v1122_v32  ;;  %v310_v32 = vsel %vm300_vm4, %v287_v20, %v288_v17  ;;  %v1074_v20 = vrot.slane %v2855_v38, 1 }
  0x38   : > { %v309_v51 = vsel %vm300_vm4, %v288_v17, %v289_v27  ;;  %v308_v56 = vsel %vm300_vm4, %v289_v27, %v290_v35  ;;  %v1076_v17 = vrot.slane %v2895_v63, 1  ;;  %v1080_v27 = vrot.slane %v2939_v18, 1 }
  0x39   : > { %2278 = vmatmul.mubr.msk.f32.gmra.mrb[18].mxu1 %vm339_vm3, %v317_v49  ;;  %v1113_v49 = vsel %vm1089_vm5, %v1064_v22, %v1065_v45 }
  0x3a   : > { %2370 = vmatmul.mubr.msk.f32.gmra.mrb[2].mxu0 %vm339_vm3, %v1121_v50  ;;  %2280 = vmatprep.mubr.msk.f32.mxu1 %vm339_vm3, %v316_v58  ;;  %v291_v50 = vrot.slane %v2961_v36, 7  ;;  %v292_v58 = vrot.slane %v2964_v37, 7 }
  0x3b   : > { %2372 = vmatprep.mubr.msk.f32.mxu0 %vm339_vm3, %v1120_v28  ;;  %v2983_v28 = vld [vmem:[%s2620_s11 + $0xf8] sm:$0xff] }
  0x3c   : > { %v307_v60 = vsel %vm300_vm4, %v290_v35, %v291_v50  ;;  %v306_v3 = vsel %vm300_vm4, %v291_v50, %v292_v58  ;;  %v1084_v35 = vrot.slane %v2983_v28, 1 }
  0x3d   : > { %2281 = vmatmul.mubr.msk.f32.gmra.mrb[20].mxu1 %vm339_vm3, %v315_v1  ;;  %v293_v1 = vrot.slane %v2983_v28, 7 }
  0x3e   : > { %2373 = vmatmul.mubr.msk.f32.gmra.mrb[4].mxu0 %vm339_vm3, %v1119_v2  ;;  %2283 = vmatprep.mubr.msk.f32.mxu1 %vm339_vm3, %v314_v7  ;;  %v1070_v2 = vrot.slane %v2786_v5, 1  ;;  %v1109_v5 = vsel %vm1089_vm5, %v1068_v55, %v1069_v59  ;;  %v1071_v7 = vrot.slane %v2809_v12, 1 }
  0x3f   : > { %2375 = vmatprep.mubr.msk.f32.mxu0 %vm339_vm3, %v1118_v34  ;;  %v305_v4 = vsel %vm300_vm4, %v292_v58, %v293_v1  ;;  %v304_v34 = vsel %vm300_vm4, %v293_v1, %v294_v62 }
  0x40   : > { %v1108_v8 = vsel %vm1089_vm5, %v1069_v59, %v1070_v2  ;;  %v1106_v62 = vsel %vm1089_vm5, %v1071_v7, %v1072_v39 }
  0x41   : > { %2284 = vmatmul.mubr.msk.f32.gmra.mrb[22].mxu1 %vm339_vm3, %v313_v16  ;;  %v1107_v16 = vsel %vm1089_vm5, %v1070_v2, %v1071_v7 }
  0x42   : > { %2376 = vmatmul.mubr.msk.f32.gmra.mrb[6].mxu0 %vm339_vm3, %v1117_v19  ;;  %2286 = vmatprep.mubr.msk.f32.mxu1 %vm339_vm3, %v312_v23  ;;  %v1073_v19 = vrot.slane %v2833_v25, 1  ;;  %v1075_v23 = vrot.slane %v2868_v43, 1 }
  0x43   : > { %2378 = vmatprep.mubr.msk.f32.mxu0 %vm339_vm3, %v1116_v40 }
  0x44   : > { %v1105_v22 = vsel %vm1089_vm5, %v1072_v39, %v1073_v19  ;;  %v1104_v40 = vsel %vm1089_vm5, %v1073_v19, %v1074_v20  ;;  %v1102_v45 = vsel %vm1089_vm5, %v1075_v23, %v1076_v17 }
  0x45   : > { %2287 = vmatmul.mubr.msk.f32.gmra.mrb[24].mxu1 %vm339_vm3, %v311_v30  ;;  %v1078_v30 = vrot.slane %v2917_v13, 1 }
  0x46   : > { %2379 = vmatmul.mubr.msk.f32.gmra.mrb[8].mxu0 %vm339_vm3, %v1115_v21  ;;  %2289 = vmatprep.mubr.msk.f32.mxu1 %vm339_vm3, %v310_v32  ;;  %v1082_v32 = vrot.slane %v2961_v36, 1 }
  0x47   : > { %2381 = vmatprep.mubr.msk.f32.mxu0 %vm339_vm3, %v1114_v46 }
  0x49   : > { %2290 = vmatmul.mubr.msk.f32.gmra.mrb[26].mxu1 %vm339_vm3, %v309_v51 }
  0x4a   : > { %2382 = vmatmul.mubr.msk.f32.gmra.mrb[10].mxu0 %vm339_vm3, %v1113_v49  ;;  %2292 = vmatprep.mubr.msk.f32.mxu1 %vm339_vm3, %v308_v56 }
  0x4b   : > { %2384 = vmatprep.mubr.msk.f32.mxu0 %vm339_vm3, %v1112_v52 }
  0x4d   : > { %2293 = vmatmul.mubr.msk.f32.gmra.mrb[28].mxu1 %vm339_vm3, %v307_v60 }
  0x4e   : > { %2385 = vmatmul.mubr.msk.f32.gmra.mrb[12].mxu0 %vm339_vm3, %v1111_v33  ;;  %2295 = vmatprep.mubr.msk.f32.mxu1 %vm339_vm3, %v306_v3 }
  0x4f   : > { %2387 = vmatprep.mubr.msk.f32.mxu0 %vm339_vm3, %v1110_v61 }
  0x51   : > { %2296 = vmatmul.mubr.msk.f32.gmra.mrb[30].mxu1 %vm339_vm3, %v305_v4 }
  0x52   : > { %2388 = vmatmul.mubr.msk.f32.gmra.mrb[14].mxu0 %vm339_vm3, %v1109_v5  ;;  %2298 = vmatprep.mubr.msk.f32.mxu1 %vm339_vm3, %v304_v34 }
  0x53   : > { %2390 = vmatprep.mubr.msk.f32.mxu0 %vm339_vm3, %v1108_v8 }
  0x55   : > { %2299 = vmatmul.mubr.msk.f32.gmra.mrb[32].mxu1 %vm339_vm3, %v2792_v6  ;;  %v1103_v6 = vsel %vm1089_vm5, %v1074_v20, %v1075_v23 }
  0x56   : > { %2391 = vmatmul.mubr.msk.f32.gmra.mrb[16].mxu0 %vm339_vm3, %v1107_v16  ;;  %2301 = vmatprep.mubr.msk.f32.mxu1 %vm339_vm3, %v2799_v9  ;;  %v1077_v9 = vrot.slane %v2898_v0, 1 }
  0x57   : > { %2393 = vmatprep.mubr.msk.f32.mxu0 %vm339_vm3, %v1106_v62 }
  0x58   : > { %v1100_v21 = vsel %vm1089_vm5, %v1077_v9, %v1078_v30 }
  0x59   : > { %2302 = vmatmul.mubr.msk.f32.gmra.mrb[34].mxu1 %vm339_vm3, %v2805_v10  ;;  %v1101_v10 = vsel %vm1089_vm5, %v1076_v17, %v1077_v9 }
  0x5a   : > { %2394 = vmatmul.mubr.msk.f32.gmra.mrb[18].mxu0 %vm339_vm3, %v1105_v22  ;;  %2335 = vmatprep.mubr.msk.f32.mxu1 %vm339_vm3, %v2809_v12  ;;  %v1079_v12 = vrot.slane %v2920_v15, 1 }
  0x5b   : > { %2396 = vmatprep.mubr.msk.f32.mxu0 %vm339_vm3, %v1104_v40 }
  0x5c   : > { %v1098_v31 = vsel %vm1089_vm5, %v1079_v12, %v1080_v27 }
  0x5d   : > { %2336 = vmatmul.mubr.msk.f32.vlgmr.msra.gmra.mrb[18].mxu1 %vm339_vm3, %v2828_v24  ;;  %v1099_v24 = vsel %vm1089_vm5, %v1078_v30, %v1079_v12 }
  0x5e   : > { %2397 = vmatmul.mubr.msk.f32.gmra.mrb[20].mxu0 %vm339_vm3, %v1103_v6  ;;  %2338 = vmatprep.mubr.msk.f32.mxu1 %vm339_vm3, %v2833_v25  ;;  %v1081_v25 = vrot.slane %v2942_v26, 1 }
  0x5f   : > { %2399 = vmatprep.mubr.msk.f32.mxu0 %vm339_vm3, %v1102_v45 }
  0x60   : > { %v1096_v46 = vsel %vm1089_vm5, %v1081_v25, %v1082_v32 }
  0x61   : > { %2339 = vmatmul.mubr.msk.f32.gmra.mrb[20].mxu1 %vm339_vm3, %v2855_v38  ;;  %v1097_v38 = vsel %vm1089_vm5, %v1080_v27, %v1081_v25 }
  0x62   : > { %2400 = vmatmul.mubr.msk.f32.gmra.mrb[22].mxu0 %vm339_vm3, %v1101_v10  ;;  %2341 = vmatprep.mubr.msk.f32.mxu1 %vm339_vm3, %v2868_v43  ;;  %v1083_v43 = vrot.slane %v2964_v37, 1 }
  0x63   : > { %2402 = vmatprep.mubr.msk.f32.mxu0 %vm339_vm3, %v1100_v21 }
  0x65   : > { %2342 = vmatmul.mubr.msk.f32.gmra.mrb[22].mxu1 %vm339_vm3, %v2895_v63  ;;  %v1095_v63 = vsel %vm1089_vm5, %v1082_v32, %v1083_v43 }
  0x66   : > { %2403 = vmatmul.mubr.msk.f32.gmra.mrb[24].mxu0 %vm339_vm3, %v1099_v24  ;;  %2344 = vmatprep.mubr.msk.f32.mxu1 %vm339_vm3, %v2898_v0  ;;  %v1094_v0 = vsel %vm1089_vm5, %v1083_v43, %v1084_v35 }
  0x67   : > { %2405 = vmatprep.mubr.msk.f32.mxu0 %vm339_vm3, %v1098_v31 }
  0x69   : > { %2345 = vmatmul.mubr.msk.f32.gmra.mrb[24].mxu1 %vm339_vm3, %v2917_v13  ;;  %v1093_v13 = vsel %vm1089_vm5, %v1084_v35, %v1085_v29 }
  0x6a   : > { %2406 = vmatmul.mubr.msk.f32.gmra.mrb[26].mxu0 %vm339_vm3, %v1097_v38  ;;  %2347 = vmatprep.mubr.msk.f32.mxu1 %vm339_vm3, %v2920_v15 }
  0x6b   : > { %2408 = vmatprep.mubr.msk.f32.mxu0 %vm339_vm3, %v1096_v46 }
  0x6d   : > { %2348 = vmatmul.mubr.msk.f32.gmra.mrb[26].mxu1 %vm339_vm3, %v2939_v18 }
  0x6e   : > { %2409 = vmatmul.mubr.msk.f32.gmra.mrb[28].mxu0 %vm339_vm3, %v1095_v63  ;;  %2350 = vmatprep.mubr.msk.f32.mxu1 %vm339_vm3, %v2942_v26 }
  0x6f   : > { %2411 = vmatprep.mubr.msk.f32.mxu0 %vm339_vm3, %v1094_v0 }
  0x71   : > { %2351 = vmatmul.mubr.msk.f32.gmra.mrb[28].mxu1 %vm339_vm3, %v2961_v36 }
  0x72   : > { %2412 = vmatmul.mubr.msk.f32.gmra.mrb[30].mxu0 %vm339_vm3, %v1093_v13  ;;  %2353 = vmatprep.mubr.msk.f32.mxu1 %vm339_vm3, %v2964_v37 }
  0x73   : > { %2414 = vmatprep.mubr.msk.f32.mxu0 %vm339_vm3, %v2861_v41 }
  0x75   : > { %2354 = vmatmul.mubr.msk.f32.gmra.mrb[30].mxu1 %vm339_vm3, %v2983_v28 }
  0x76   : > { %2415 = vmatmul.mubr.msk.f32.gmra.mrb[32].mxu0 %vm339_vm3, %v2865_v42  ;;  %2356 = vmatprep.mubr.msk.f32.mxu1 %vm339_vm3, %v2748_v53 }
  0x77   : > { %2417 = vmatprep.mubr.msk.f32.mxu0 %vm339_vm3, %v2872_v44 }
  0x79   : > { %2357 = vmatmul.mubr.msk.f32.gmra.mrb[32].mxu1 %vm339_vm3, %v2751_v54 }
  0x7a   : > { %2418 = vmatmul.mubr.msk.f32.gmra.mrb[34].mxu0 %vm339_vm3, %v2876_v47  ;;  %2359 = vmatprep.mubr.msk.f32.mxu1 %vm339_vm3, %v2760_v57 }
  0x7d   : > { %2360 = vmatmul.mubr.msk.f32.gmra.mrb[34].mxu1 %vm339_vm3, %v2629_v14 }
  0xe8   : > { %v2252_v11 = vpop.f32.mrb[0].mxu1 }
  0xe9   : > { %v518_v29 = vpop.f32.mrb[1].mxu1 }
  0xec   : > { %v2255_v41 = vpop.f32.mrb[2].mxu1 }
  0xed   : > { %v528_v53 = vpop.f32.mrb[3].mxu1 }
  0xf0   : > { %v2258_v42 = vpop.f32.mrb[4].mxu1 }
  0xf1   : > { %v538_v15 = vpop.f32.mrb[5].mxu1 }
  0xf4   : > { %v2261_v44 = vpop.f32.mrb[6].mxu1 }
  0xf5   : > { %v548_v18 = vpop.f32.mrb[7].mxu1 }
  0xf8   : > { %v2264_v26 = vpop.f32.mrb[8].mxu1 }
  0xf9   : > { %v558_v54 = vpop.f32.mrb[9].mxu1 }
  0xfc   : > { %v2267_v36 = vpop.f32.mrb[10].mxu1 }
  0xfd   : > { %v568_v37 = vpop.f32.mrb[11].mxu1 }
 0x100   : > { %v2270_v47 = vpop.f32.mrb[12].mxu1 }
 0x101   : > { %v578_v48 = vpop.f32.mrb[13].mxu1 }
 0x104   : > { %v2273_v51 = vpop.f32.mrb[14].mxu1 }
 0x105   : > { %v588_v57 = vpop.f32.mrb[15].mxu1 }
 0x108   : > { %v2276_v49 = vpop.f32.mrb[16].mxu1 }
 0x109   : > { %v2368_v14 = vpop.f32.mrb[0].mxu0  ;;  %v598_v50 = vpop.f32.mrb[17].mxu1 }
 0x10a   : > { %v3136_v55 = vadd.f32 %v2368_v14, %v2252_v11  ;;  %v1306_v56 = vpop.f32.mrb[1].mxu0 }
 0x10b   : > { %v3138_v52 = vadd.f32 %v1306_v56, %v518_v29 }
 0x10c   : > { %1522 = vst [vmem:[%s3134_s14 + $0x8] sm:$0xff] %v3136_v55 }
 0x10d   : > { %1521 = vst [vmem:[%s3134_s14] sm:$0xff] %v3138_v52  ;;  %v2371_v58 = vpop.f32.mrb[2].mxu0 }
 0x10e   : > { %v3144_v28 = vadd.f32 %v2371_v58, %v2255_v41  ;;  %v1316_v59 = vpop.f32.mrb[3].mxu0 }
 0x10f   : > { %v3146_v60 = vadd.f32 %v1316_v59, %v528_v53 }
 0x110   : > { %1524 = vst [vmem:[%s3134_s14 + $0x18] sm:$0xff] %v3144_v28 }
 0x111   : > { %1523 = vst [vmem:[%s3134_s14 + $0x10] sm:$0xff] %v3146_v60  ;;  %v2374_v33 = vpop.f32.mrb[4].mxu0 }
 0x112   : > { %v3152_v1 = vadd.f32 %v2374_v33, %v2258_v42  ;;  %v1326_v2 = vpop.f32.mrb[5].mxu0 }
 0x113   : > { %v3154_v3 = vadd.f32 %v1326_v2, %v538_v15 }
 0x114   : > { %1526 = vst [vmem:[%s3134_s14 + $0x28] sm:$0xff] %v3152_v1 }
 0x115   : > { %1525 = vst [vmem:[%s3134_s14 + $0x20] sm:$0xff] %v3154_v3  ;;  %v2377_v61 = vpop.f32.mrb[6].mxu0 }
 0x116   : > { %v3160_v4 = vadd.f32 %v2377_v61, %v2261_v44  ;;  %v1336_v5 = vpop.f32.mrb[7].mxu0 }
 0x117   : > { %v3162_v7 = vadd.f32 %v1336_v5, %v548_v18 }
 0x118   : > { %1528 = vst [vmem:[%s3134_s14 + $0x38] sm:$0xff] %v3160_v4 }
 0x119   : > { %1527 = vst [vmem:[%s3134_s14 + $0x30] sm:$0xff] %v3162_v7  ;;  %v2380_v34 = vpop.f32.mrb[8].mxu0 }
 0x11a   : > { %v3168_v8 = vadd.f32 %v2380_v34, %v2264_v26  ;;  %v1346_v39 = vpop.f32.mrb[9].mxu0 }
 0x11b   : > { %v3170_v16 = vadd.f32 %v1346_v39, %v558_v54 }
 0x11c   : > { %1530 = vst [vmem:[%s3134_s14 + $0x48] sm:$0xff] %v3168_v8 }
 0x11d   : > { %1529 = vst [vmem:[%s3134_s14 + $0x40] sm:$0xff] %v3170_v16  ;;  %v2383_v19 = vpop.f32.mrb[10].mxu0 }
 0x11e   : > { %v3176_v62 = vadd.f32 %v2383_v19, %v2267_v36  ;;  %v1356_v20 = vpop.f32.mrb[11].mxu0 }
 0x11f   : > { %v3178_v22 = vadd.f32 %v1356_v20, %v568_v37 }
 0x120   : > { %1532 = vst [vmem:[%s3134_s14 + $0x58] sm:$0xff] %v3176_v62 }
 0x121   : > { %1531 = vst [vmem:[%s3134_s14 + $0x50] sm:$0xff] %v3178_v22  ;;  %v2386_v23 = vpop.f32.mrb[12].mxu0 }
 0x122   : > { %v3184_v40 = vadd.f32 %v2386_v23, %v2270_v47  ;;  %v1366_v17 = vpop.f32.mrb[13].mxu0 }
 0x123   : > { %v3186_v6 = vadd.f32 %v1366_v17, %v578_v48 }
 0x124   : > { %1534 = vst [vmem:[%s3134_s14 + $0x68] sm:$0xff] %v3184_v40 }
 0x125   : > { %1533 = vst [vmem:[%s3134_s14 + $0x60] sm:$0xff] %v3186_v6  ;;  %v2389_v9 = vpop.f32.mrb[14].mxu0 }
 0x126   : > { %v3192_v45 = vadd.f32 %v2389_v9, %v2273_v51  ;;  %v1376_v30 = vpop.f32.mrb[15].mxu0 }
 0x127   : > { %v3194_v10 = vadd.f32 %v1376_v30, %v588_v57 }
 0x128   : > { %1536 = vst [vmem:[%s3134_s14 + $0x78] sm:$0xff] %v3192_v45 }
 0x129   : > { %1535 = vst [vmem:[%s3134_s14 + $0x70] sm:$0xff] %v3194_v10  ;;  %v2392_v12 = vpop.f32.mrb[16].mxu0 }
 0x12a   : > { %v3200_v21 = vadd.f32 %v2392_v12, %v2276_v49  ;;  %v1386_v27 = vpop.f32.mrb[17].mxu0 }
 0x12b   : > { %v3202_v24 = vadd.f32 %v1386_v27, %v598_v50 }
 0x12c   : > { %1538 = vst [vmem:[%s3134_s14 + $0x88] sm:$0xff] %v3200_v21 }
 0x12d   : > { %1537 = vst [vmem:[%s3134_s14 + $0x80] sm:$0xff] %v3202_v24  ;;  %v2395_v25 = vpop.f32.mrb[18].mxu0 }
 0x12e   : > { %v1396_v31 = vpop.f32.mrb[19].mxu0 }
 0x130   : > { %v2337_v32 = vpop.f32.mrb[18].mxu1 }
 0x131   : > { %v2398_v38 = vpop.f32.mrb[20].mxu0  ;;  %v3208_v43 = vadd.f32 %v2395_v25, %v2337_v32  ;;  %v964_v46 = vpop.f32.mrb[19].mxu1 }
 0x132   : > { %v1406_v35 = vpop.f32.mrb[21].mxu0  ;;  %v3210_v63 = vadd.f32 %v1396_v31, %v964_v46 }
 0x133   : > { %1540 = vst [vmem:[%s3134_s14 + $0x98] sm:$0xff] %v3208_v43 }
 0x134   : > { %1539 = vst [vmem:[%s3134_s14 + $0x90] sm:$0xff] %v3210_v63  ;;  %v2340_v0 = vpop.f32.mrb[20].mxu1 }
 0x135   : > { %v2401_v13 = vpop.f32.mrb[22].mxu0  ;;  %v3216_v11 = vadd.f32 %v2398_v38, %v2340_v0  ;;  %v974_v29 = vpop.f32.mrb[21].mxu1 }
 0x136   : > { %v1416_v41 = vpop.f32.mrb[23].mxu0  ;;  %v3218_v53 = vadd.f32 %v1406_v35, %v974_v29  ;;  %v2534_v29 = vmov (!%p2129_p4), 0.0  }
 0x137   : > { %1542 = vst [vmem:[%s3134_s14 + $0xa8] sm:$0xff] %v3216_v11  ;;  %1561 = vst [vmem:[%s3487_s4] sm:$0x1] (!%p2129_p4), %v2534_v29 }
 0x138   : > { %1541 = vst [vmem:[%s3134_s14 + $0xa0] sm:$0xff] %v3218_v53  ;;  %v2343_v42 = vpop.f32.mrb[22].mxu1  ;;  %1562 = vst [vmem:[%s3488_s5] sm:$0x1] (!%p2129_p4), %v2534_v29 }
 0x139   : > { %v2404_v15 = vpop.f32.mrb[24].mxu0  ;;  %v3224_v44 = vadd.f32 %v2401_v13, %v2343_v42  ;;  %v984_v18 = vpop.f32.mrb[23].mxu1 }
 0x13a   : > { %v1426_v26 = vpop.f32.mrb[25].mxu0  ;;  %v3226_v54 = vadd.f32 %v1416_v41, %v984_v18 }
 0x13b   : > { %1544 = vst [vmem:[%s3134_s14 + $0xb8] sm:$0xff] %v3224_v44 }
 0x13c   : > { %1543 = vst [vmem:[%s3134_s14 + $0xb0] sm:$0xff] %v3226_v54  ;;  %v2346_v36 = vpop.f32.mrb[24].mxu1 }
 0x13d   : > { %v2407_v37 = vpop.f32.mrb[26].mxu0  ;;  %v3232_v47 = vadd.f32 %v2404_v15, %v2346_v36  ;;  %v994_v48 = vpop.f32.mrb[25].mxu1 }
 0x13e   : > { %v1436_v51 = vpop.f32.mrb[27].mxu0  ;;  %v3234_v57 = vadd.f32 %v1426_v26, %v994_v48 }
 0x13f   : > { %1546 = vst [vmem:[%s3134_s14 + $0xc8] sm:$0xff] %v3232_v47 }
 0x140   : > { %1545 = vst [vmem:[%s3134_s14 + $0xc0] sm:$0xff] %v3234_v57  ;;  %v2349_v49 = vpop.f32.mrb[26].mxu1 }
 0x141   : > { %v2410_v14 = vpop.f32.mrb[28].mxu0  ;;  %v3240_v50 = vadd.f32 %v2407_v37, %v2349_v49  ;;  %v1004_v56 = vpop.f32.mrb[27].mxu1 }
 0x142   : > { %v1446_v58 = vpop.f32.mrb[29].mxu0  ;;  %v3242_v59 = vadd.f32 %v1436_v51, %v1004_v56 }
 0x143   : > { %1548 = vst [vmem:[%s3134_s14 + $0xd8] sm:$0xff] %v3240_v50 }
 0x144   : > { %1547 = vst [vmem:[%s3134_s14 + $0xd0] sm:$0xff] %v3242_v59  ;;  %v2352_v33 = vpop.f32.mrb[28].mxu1 }
 0x145   : > { %v2413_v2 = vpop.f32.mrb[30].mxu0  ;;  %v3248_v61 = vadd.f32 %v2410_v14, %v2352_v33  ;;  %v1014_v5 = vpop.f32.mrb[29].mxu1 }
 0x146   : > { %v1456_v34 = vpop.f32.mrb[31].mxu0  ;;  %v3250_v39 = vadd.f32 %v1446_v58, %v1014_v5 }
 0x147   : > { %1550 = vst [vmem:[%s3134_s14 + $0xe8] sm:$0xff] %v3248_v61 }
 0x148   : > { %1549 = vst [vmem:[%s3134_s14 + $0xe0] sm:$0xff] %v3250_v39  ;;  %v2355_v19 = vpop.f32.mrb[30].mxu1 }
 0x149   : > { %v2416_v20 = vpop.f32.mrb[32].mxu0  ;;  %v3256_v23 = vadd.f32 %v2413_v2, %v2355_v19  ;;  %v1024_v17 = vpop.f32.mrb[31].mxu1 }
 0x14a   : > { %v1466_v9 = vpop.f32.mrb[33].mxu0  ;;  %v3258_v30 = vadd.f32 %v1456_v34, %v1024_v17 }
 0x14b   : > { %1552 = vst [vmem:[%s3134_s14 + $0xf8] sm:$0xff] %v3256_v23 }
 0x14c   : > { %1551 = vst [vmem:[%s3134_s14 + $0xf0] sm:$0xff] %v3258_v30  ;;  %v2358_v12 = vpop.f32.mrb[32].mxu1 }
 0x14d   : > { %v2419_v27 = vpop.f32.mrb[34].mxu0  ;;  %v3264_v25 = vadd.f32 %v2416_v20, %v2358_v12  ;;  %v1034_v31 = vpop.f32.mrb[33].mxu1 }
 0x14e   : > { %v1476_v32 = vpop.f32.mrb[35].mxu0  ;;  %v3266_v38 = vadd.f32 %v1466_v9, %v1034_v31  ;;  %1560 = sbr.rel (%p2129_p4) target bundleno = 341 (0x155), region = 36 }
 0x14f   : > { %1554 = vst [vmem:[%s3134_s14 + $0x108] sm:$0xff] %v3264_v25 }
 0x150   : > { %1553 = vst [vmem:[%s3134_s14 + $0x100] sm:$0xff] %v3266_v38  ;;  %v2361_v46 = vpop.f32.mrb[34].mxu1 }
 0x151   : > { %v3272_v35 = vadd.f32 %v2419_v27, %v2361_v46  ;;  %v1044_v0 = vpop.f32.mrb[35].mxu1 }
 0x152   : > { %v3274_v13 = vadd.f32 %v1476_v32, %v1044_v0 }
 0x153   : > { %1556 = vst [vmem:[%s3134_s14 + $0x118] sm:$0xff] %v3272_v35 }
 0x154   : > { %1555 = vst [vmem:[%s3134_s14 + $0x110] sm:$0xff] %v3274_v13 }
 0x155 PF: > { %v1565_v41 = vld [vmem:[%s3485_s2 + $0x10] sm:$0xff]  ;;  %v1563_v42 = vld [vmem:[%s3485_s2] sm:$0xff]  ;;  %v2535_v15 = vmov 0   ;;  %v1566_v18 = vld [vmem:[%s3485_s2 + $0x18] sm:$0xff] }
 0x156   : > { %2524 = vset.pattern.permute.xlu1 %v2535_v15  ;;  %2523 = vset.pattern.permute.xlu0 %v2535_v15  ;;  %v1564_v26 = vld [vmem:[%s3485_s2 + $0x8] sm:$0xff]  ;;  %v1567_v37 = vld [vmem:[%s3485_s2 + $0x20] sm:$0xff]  ;;  %v1570_v48 = vld [vmem:[%s3485_s2 + $0x38] sm:$0xff] }
 0x157   : > { %1611 = vperm.xlu1 %2524, %v1565_v41   ;;  %1601 = vperm.xlu0 %2523, %v1563_v42   ;;  %v1568_v36 = vld [vmem:[%s3485_s2 + $0x28] sm:$0xff]  ;;  %v1569_v51 = vld [vmem:[%s3485_s2 + $0x30] sm:$0xff]  ;;  %v1571_v14 = vld [vmem:[%s3485_s2 + $0x40] sm:$0xff] }
 0x158   : > { %v1572_v49 = vld [vmem:[%s3485_s2 + $0x48] sm:$0xff]  ;;  %v1574_v56 = vld [vmem:[%s3485_s2 + $0x58] sm:$0xff]  ;;  %v1573_v58 = vld [vmem:[%s3485_s2 + $0x50] sm:$0xff] }
 0x159   : > { %v1576_v33 = vld [vmem:[%s3485_s2 + $0x68] sm:$0xff]  ;;  %v1575_v2 = vld [vmem:[%s3485_s2 + $0x60] sm:$0xff]  ;;  %v1578_v5 = vld [vmem:[%s3485_s2 + $0x78] sm:$0xff] }
 0x15a   : > { %v1577_v34 = vld [vmem:[%s3485_s2 + $0x70] sm:$0xff]  ;;  %v1580_v19 = vld [vmem:[%s3485_s2 + $0x88] sm:$0xff]  ;;  %v1579_v20 = vld [vmem:[%s3485_s2 + $0x80] sm:$0xff] }
 0x15b   : > { %1616 = vperm.xlu1 %2524, %v1566_v18   ;;  %1606 = vperm.xlu0 %2523, %v1564_v26   ;;  %v1582_v17 = vld [vmem:[%s3485_s2 + $0x98] sm:$0xff]  ;;  %v1581_v9 = vld [vmem:[%s3485_s2 + $0x90] sm:$0xff]  ;;  %v1584_v12 = vld [vmem:[%s3485_s2 + $0xa8] sm:$0xff] }
 0x15c   : > { %v1583_v27 = vld [vmem:[%s3485_s2 + $0xa0] sm:$0xff]  ;;  %v1586_v31 = vld [vmem:[%s3485_s2 + $0xb8] sm:$0xff]  ;;  %v1585_v32 = vld [vmem:[%s3485_s2 + $0xb0] sm:$0xff] }
 0x15d   : > { %v1588_v46 = vld [vmem:[%s3485_s2 + $0xc8] sm:$0xff]  ;;  %v1587_v0 = vld [vmem:[%s3485_s2 + $0xc0] sm:$0xff]  ;;  %v1590_v29 = vld [vmem:[%s3485_s2 + $0xd8] sm:$0xff] }
 0x15e   : > { %v1589_v41 = vld [vmem:[%s3485_s2 + $0xd0] sm:$0xff]  ;;  %v1592_v42 = vld [vmem:[%s3485_s2 + $0xe8] sm:$0xff]  ;;  %v1591_v15 = vld [vmem:[%s3485_s2 + $0xe0] sm:$0xff] }
 0x15f   : > { %1626 = vperm.xlu1 %2524, %v1568_v36   ;;  %1621 = vperm.xlu0 %2523, %v1567_v37   ;;  %v1594_v18 = vld [vmem:[%s3485_s2 + $0xf8] sm:$0xff]  ;;  %v1593_v26 = vld [vmem:[%s3485_s2 + $0xf0] sm:$0xff]  ;;  %v1596_v36 = vld [vmem:[%s3485_s2 + $0x108] sm:$0xff] }
 0x160   : > { %v1595_v37 = vld [vmem:[%s3485_s2 + $0x100] sm:$0xff] }
 0x163   : > { %1636 = vperm.xlu1 %2524, %v1570_v48   ;;  %1631 = vperm.xlu0 %2523, %v1569_v51   ;;  %v1598_v48 = vld [vmem:[%s3485_s2 + $0x118] sm:$0xff]  ;;  %v1597_v51 = vld [vmem:[%s3485_s2 + $0x110] sm:$0xff] }
 0x167   : > { %1646 = vperm.xlu1 %2524, %v1572_v49   ;;  %1641 = vperm.xlu0 %2523, %v1571_v14  }
 0x16b   : > { %1656 = vperm.xlu1 %2524, %v1574_v56   ;;  %1651 = vperm.xlu0 %2523, %v1573_v58  }
 0x16f   : > { %1666 = vperm.xlu1 %2524, %v1576_v33   ;;  %1661 = vperm.xlu0 %2523, %v1575_v2  }
 0x173   : > { %1676 = vperm.xlu1 %2524, %v1578_v5   ;;  %1671 = vperm.xlu0 %2523, %v1577_v34  }
 0x177   : > { %1686 = vperm.xlu1 %2524, %v1580_v19   ;;  %1681 = vperm.xlu0 %2523, %v1579_v20  }
 0x17b   : > { %1696 = vperm.xlu1 %2524, %v1582_v17   ;;  %1691 = vperm.xlu0 %2523, %v1581_v9  }
 0x17f   : > { %1706 = vperm.xlu1 %2524, %v1584_v12   ;;  %1701 = vperm.xlu0 %2523, %v1583_v27  }
 0x183   : > { %1716 = vperm.xlu1 %2524, %v1586_v31   ;;  %1711 = vperm.xlu0 %2523, %v1585_v32  }
 0x187   : > { %1726 = vperm.xlu1 %2524, %v1588_v46   ;;  %1721 = vperm.xlu0 %2523, %v1587_v0  }
 0x18b   : > { %1736 = vperm.xlu1 %2524, %v1590_v29   ;;  %1731 = vperm.xlu0 %2523, %v1589_v41  }
 0x18f   : > { %1746 = vperm.xlu1 %2524, %v1592_v42   ;;  %1741 = vperm.xlu0 %2523, %v1591_v15  }
 0x193   : > { %1756 = vperm.xlu1 %2524, %v1594_v18   ;;  %1751 = vperm.xlu0 %2523, %v1593_v26  }
 0x197   : > { %1766 = vperm.xlu1 %2524, %v1596_v36   ;;  %1761 = vperm.xlu0 %2523, %v1595_v37  }
 0x19b   : > { %1776 = vperm.xlu1 %2524, %v1598_v48   ;;  %1771 = vperm.xlu0 %2523, %v1597_v51  }
 0x1d6   : > { %v1612_v49 = vpop.permute.xlu1 %1611  ;;  %v1602_v14 = vpop.permute.xlu0 %1601 }
 0x1d7   : > { %v1779_v56 = vmul.f32 %v3138_v52, %v1602_v14  ;;  %v1781_v2 = vmul.f32 %v3146_v60, %v1612_v49 }
 0x1d9   : > { %v1860_v34 = vmul.f32 %v3138_v52, %v1779_v56  ;;  %v1862_v27 = vmul.f32 %v3146_v60, %v1781_v2 }
 0x1da   : > { %v1617_v58 = vpop.permute.xlu1 %1616  ;;  %v1607_v33 = vpop.permute.xlu0 %1606 }
 0x1db   : > { %v1780_v5 = vmul.f32 %v3136_v55, %v1607_v33  ;;  %v1782_v19 = vmul.f32 %v3144_v28, %v1617_v58 }
 0x1dd   : > { %v1816_v20 = vadd.f32 %v1780_v5, %v1779_v56  ;;  %v1861_v17 = vmul.f32 %v3136_v55, %v1780_v5  ;;  %v1863_v0 = vmul.f32 %v3144_v28, %v1782_v19 }
 0x1de   : > { %v1627_v9 = vpop.permute.xlu1 %1626  ;;  %v1622_v12 = vpop.permute.xlu0 %1621 }
 0x1df   : > { %v1817_v31 = vadd.f32 %v1816_v20, %v1781_v2  ;;  %v1896_v32 = vadd.f32 %v1861_v17, %v1860_v34  ;;  %v1783_v46 = vmul.f32 %v3154_v3, %v1622_v12  ;;  %v1784_v41 = vmul.f32 %v3152_v1, %v1627_v9 }
 0x1e1   : > { %v1897_v29 = vadd.f32 %v1896_v32, %v1862_v27  ;;  %v1818_v42 = vadd.f32 %v1817_v31, %v1782_v19  ;;  %v1864_v55 = vmul.f32 %v3154_v3, %v1783_v46  ;;  %v1865_v60 = vmul.f32 %v3152_v1, %v1784_v41 }
 0x1e2   : > { %v1637_v52 = vpop.permute.xlu1 %1636  ;;  %v1632_v15 = vpop.permute.xlu0 %1631 }
 0x1e3   : > { %v1898_v18 = vadd.f32 %v1897_v29, %v1863_v0  ;;  %v1819_v26 = vadd.f32 %v1818_v42, %v1783_v46  ;;  %v1785_v36 = vmul.f32 %v3162_v7, %v1632_v15  ;;  %v1786_v48 = vmul.f32 %v3160_v4, %v1637_v52 }
 0x1e5   : > { %v1899_v37 = vadd.f32 %v1898_v18, %v1864_v55  ;;  %v1820_v51 = vadd.f32 %v1819_v26, %v1784_v41  ;;  %v1866_v58 = vmul.f32 %v3162_v7, %v1785_v36  ;;  %v1867_v2 = vmul.f32 %v3160_v4, %v1786_v48 }
 0x1e6   : > { %v1647_v49 = vpop.permute.xlu1 %1646  ;;  %v1642_v28 = vpop.permute.xlu0 %1641 }
 0x1e7   : > { %v1900_v14 = vadd.f32 %v1899_v37, %v1865_v60  ;;  %v1821_v56 = vadd.f32 %v1820_v51, %v1785_v36  ;;  %v1787_v33 = vmul.f32 %v3170_v16, %v1642_v28  ;;  %v1788_v3 = vmul.f32 %v3168_v8, %v1647_v49 }
 0x1e9   : > { %v1901_v5 = vadd.f32 %v1900_v14, %v1866_v58  ;;  %v1822_v34 = vadd.f32 %v1821_v56, %v1786_v48  ;;  %v1868_v9 = vmul.f32 %v3170_v16, %v1787_v33  ;;  %v1869_v27 = vmul.f32 %v3168_v8, %v1788_v3 }
 0x1ea   : > { %v1657_v19 = vpop.permute.xlu1 %1656  ;;  %v1652_v1 = vpop.permute.xlu0 %1651 }
 0x1eb   : > { %v1902_v20 = vadd.f32 %v1901_v5, %v1867_v2  ;;  %v1823_v17 = vadd.f32 %v1822_v34, %v1787_v33  ;;  %v1789_v12 = vmul.f32 %v3178_v22, %v1652_v1  ;;  %v1790_v7 = vmul.f32 %v3176_v62, %v1657_v19 }
 0x1ed   : > { %v1903_v31 = vadd.f32 %v1902_v20, %v1868_v9  ;;  %v1824_v32 = vadd.f32 %v1823_v17, %v1788_v3  ;;  %v1870_v41 = vmul.f32 %v3178_v22, %v1789_v12  ;;  %v1871_v52 = vmul.f32 %v3176_v62, %v1790_v7 }
 0x1ee   : > { %v1667_v46 = vpop.permute.xlu1 %1666  ;;  %v1662_v4 = vpop.permute.xlu0 %1661 }
 0x1ef   : > { %v1904_v0 = vadd.f32 %v1903_v31, %v1869_v27  ;;  %v1825_v29 = vadd.f32 %v1824_v32, %v1789_v12  ;;  %v1791_v42 = vmul.f32 %v3186_v6, %v1662_v4  ;;  %v1792_v16 = vmul.f32 %v3184_v40, %v1667_v46 }
 0x1f1   : > { %v1905_v15 = vadd.f32 %v1904_v0, %v1870_v41  ;;  %v1826_v18 = vadd.f32 %v1825_v29, %v1790_v7  ;;  %v1872_v60 = vmul.f32 %v3186_v6, %v1791_v42  ;;  %v1873_v48 = vmul.f32 %v3184_v40, %v1792_v16 }
 0x1f2   : > { %v1677_v26 = vpop.permute.xlu1 %1676  ;;  %v1672_v8 = vpop.permute.xlu0 %1671 }
 0x1f3   : > { %v1906_v55 = vadd.f32 %v1905_v15, %v1871_v52  ;;  %v1827_v36 = vadd.f32 %v1826_v18, %v1791_v42  ;;  %v1793_v37 = vmul.f32 %v3194_v10, %v1672_v8  ;;  %v1794_v22 = vmul.f32 %v3192_v45, %v1677_v26 }
 0x1f5   : > { %v1907_v51 = vadd.f32 %v1906_v55, %v1872_v60  ;;  %v1828_v49 = vadd.f32 %v1827_v36, %v1792_v16  ;;  %v1874_v58 = vmul.f32 %v3194_v10, %v1793_v37  ;;  %v1875_v2 = vmul.f32 %v3192_v45, %v1794_v22 }
 0x1f6   : > { %v1687_v28 = vpop.permute.xlu1 %1686  ;;  %v1682_v62 = vpop.permute.xlu0 %1681 }
 0x1f7   : > { %v1908_v14 = vadd.f32 %v1907_v51, %v1873_v48  ;;  %v1829_v56 = vadd.f32 %v1828_v49, %v1793_v37  ;;  %v1795_v33 = vmul.f32 %v3202_v24, %v1682_v62  ;;  %v1796_v6 = vmul.f32 %v3200_v21, %v1687_v28 }
 0x1f9   : > { %v1909_v5 = vadd.f32 %v1908_v14, %v1874_v58  ;;  %v1830_v3 = vadd.f32 %v1829_v56, %v1794_v22  ;;  %v1876_v20 = vmul.f32 %v3202_v24, %v1795_v33  ;;  %v1877_v9 = vmul.f32 %v3200_v21, %v1796_v6 }
 0x1fa   : > { %v1697_v34 = vpop.permute.xlu1 %1696  ;;  %v1692_v40 = vpop.permute.xlu0 %1691 }
 0x1fb   : > { %v1910_v19 = vadd.f32 %v1909_v5, %v1875_v2  ;;  %v1831_v1 = vadd.f32 %v1830_v3, %v1795_v33  ;;  %v1797_v17 = vmul.f32 %v3210_v63, %v1692_v40  ;;  %v1798_v10 = vmul.f32 %v3208_v43, %v1697_v34 }
 0x1fd   : > { %v1911_v12 = vadd.f32 %v1910_v19, %v1876_v20  ;;  %v1832_v27 = vadd.f32 %v1831_v1, %v1796_v6  ;;  %v1878_v46 = vmul.f32 %v3210_v63, %v1797_v17  ;;  %v1879_v0 = vmul.f32 %v3208_v43, %v1798_v10 }
 0x1fe   : > { %v1707_v31 = vpop.permute.xlu1 %1706  ;;  %v1702_v45 = vpop.permute.xlu0 %1701 }
 0x1ff   : > { %v1912_v7 = vadd.f32 %v1911_v12, %v1877_v9  ;;  %v1833_v32 = vadd.f32 %v1832_v27, %v1797_v17  ;;  %v1799_v4 = vmul.f32 %v3218_v53, %v1702_v45  ;;  %v1800_v24 = vmul.f32 %v3216_v11, %v1707_v31 }
 0x201   : > { %v1913_v29 = vadd.f32 %v1912_v7, %v1878_v46  ;;  %v1834_v41 = vadd.f32 %v1833_v32, %v1798_v10  ;;  %v1880_v16 = vmul.f32 %v3218_v53, %v1799_v4  ;;  %v1881_v26 = vmul.f32 %v3216_v11, %v1800_v24 }
 0x202   : > { %v1717_v42 = vpop.permute.xlu1 %1716  ;;  %v1712_v21 = vpop.permute.xlu0 %1711 }
 0x203   : > { %v1914_v52 = vadd.f32 %v1913_v29, %v1879_v0  ;;  %v1835_v15 = vadd.f32 %v1834_v41, %v1799_v4  ;;  %v1801_v18 = vmul.f32 %v3226_v54, %v1712_v21  ;;  %v1802_v63 = vmul.f32 %v3224_v44, %v1717_v42 }
 0x205   : > { %v1915_v8 = vadd.f32 %v1914_v52, %v1880_v16  ;;  %v1836_v55 = vadd.f32 %v1835_v15, %v1800_v24  ;;  %v1882_v48 = vmul.f32 %v3226_v54, %v1801_v18  ;;  %v1883_v22 = vmul.f32 %v3224_v44, %v1802_v63 }
 0x206   : > { %v1727_v36 = vpop.permute.xlu1 %1726  ;;  %v1722_v43 = vpop.permute.xlu0 %1721 }
 0x207   : > { %v1916_v60 = vadd.f32 %v1915_v8, %v1881_v26  ;;  %v1837_v37 = vadd.f32 %v1836_v55, %v1801_v18  ;;  %v1803_v51 = vmul.f32 %v3234_v57, %v1722_v43  ;;  %v1804_v53 = vmul.f32 %v3232_v47, %v1727_v36 }
 0x209   : > { %v1917_v49 = vadd.f32 %v1916_v60, %v1882_v48  ;;  %v1838_v28 = vadd.f32 %v1837_v37, %v1802_v63  ;;  %v1884_v58 = vmul.f32 %v3234_v57, %v1803_v51  ;;  %v1885_v2 = vmul.f32 %v3232_v47, %v1804_v53 }
 0x20a   : > { %v1737_v62 = vpop.permute.xlu1 %1736  ;;  %v1732_v11 = vpop.permute.xlu0 %1731 }
 0x20b   : > { %v1918_v14 = vadd.f32 %v1917_v49, %v1883_v22  ;;  %v1839_v56 = vadd.f32 %v1838_v28, %v1803_v51  ;;  %v1805_v33 = vmul.f32 %v3242_v59, %v1732_v11  ;;  %v1806_v54 = vmul.f32 %v3240_v50, %v1737_v62 }
 0x20d   : > { %v1919_v5 = vadd.f32 %v1918_v14, %v1884_v58  ;;  %v1840_v6 = vadd.f32 %v1839_v56, %v1804_v53  ;;  %v1886_v19 = vmul.f32 %v3242_v59, %v1805_v33  ;;  %v1887_v20 = vmul.f32 %v3240_v50, %v1806_v54  ;;  %v1815_v58 = vld [vmem:[%s3487_s4] sm:$0x1] }
 0x20e   : > { %v1747_v3 = vpop.permute.xlu1 %1746  ;;  %v1742_v44 = vpop.permute.xlu0 %1741 }
 0x20f   : > { %v1920_v34 = vadd.f32 %v1919_v5, %v1885_v2  ;;  %v1841_v40 = vadd.f32 %v1840_v6, %v1805_v33  ;;  %v1807_v1 = vmul.f32 %v3250_v39, %v1742_v44  ;;  %v1808_v57 = vmul.f32 %v3248_v61, %v1747_v3 }
 0x211   : > { %v1921_v17 = vadd.f32 %v1920_v34, %v1886_v19  ;;  %v1842_v9 = vadd.f32 %v1841_v40, %v1806_v54  ;;  %v1888_v31 = vmul.f32 %v3250_v39, %v1807_v1  ;;  %v1889_v7 = vmul.f32 %v3248_v61, %v1808_v57 }
 0x212   : > { %v1757_v12 = vpop.permute.xlu1 %1756  ;;  %v1752_v47 = vpop.permute.xlu0 %1751 }
 0x213   : > { %v1922_v10 = vadd.f32 %v1921_v17, %v1887_v20  ;;  %v1843_v27 = vadd.f32 %v1842_v9, %v1807_v1  ;;  %v1809_v45 = vmul.f32 %v3258_v30, %v1752_v47  ;;  %v1810_v59 = vmul.f32 %v3256_v23, %v1757_v12 }
 0x215   : > { %v1923_v32 = vadd.f32 %v1922_v10, %v1888_v31  ;;  %v1844_v46 = vadd.f32 %v1843_v27, %v1808_v57  ;;  %v1890_v24 = vmul.f32 %v3258_v30, %v1809_v45  ;;  %v1891_v42 = vmul.f32 %v3256_v23, %v1810_v59 }
 0x216   : > { %v1767_v4 = vpop.permute.xlu1 %1766  ;;  %v1762_v50 = vpop.permute.xlu0 %1761 }
 0x217   : > { %v1924_v0 = vadd.f32 %v1923_v32, %v1889_v7  ;;  %v1845_v29 = vadd.f32 %v1844_v46, %v1809_v45  ;;  %v1811_v41 = vmul.f32 %v3266_v38, %v1762_v50  ;;  %v1812_v39 = vmul.f32 %v3264_v25, %v1767_v4 }
 0x219   : > { %v1925_v21 = vadd.f32 %v1924_v0, %v1890_v24  ;;  %v1846_v52 = vadd.f32 %v1845_v29, %v1810_v59  ;;  %v1892_v26 = vmul.f32 %v3266_v38, %v1811_v41  ;;  %v1893_v63 = vmul.f32 %v3264_v25, %v1812_v39 }
 0x21a   : > { %v1777_v15 = vpop.permute.xlu1 %1776  ;;  %v1772_v61 = vpop.permute.xlu0 %1771 }
 0x21b   : > { %v1926_v16 = vadd.f32 %v1925_v21, %v1891_v42  ;;  %v1847_v18 = vadd.f32 %v1846_v52, %v1811_v41  ;;  %v1813_v8 = vmul.f32 %v3274_v13, %v1772_v61  ;;  %v1814_v30 = vmul.f32 %v3272_v35, %v1777_v15 }
 0x21d   : > { %v1927_v55 = vadd.f32 %v1926_v16, %v1892_v26  ;;  %v1848_v36 = vadd.f32 %v1847_v18, %v1812_v39  ;;  %v1894_v60 = vmul.f32 %v3274_v13, %v1813_v8  ;;  %v1895_v37 = vmul.f32 %v3272_v35, %v1814_v30  ;;  %v1859_v35 = vld [vmem:[%s3488_s5] sm:$0x1] }
 0x21f   : > { %v1928_v43 = vadd.f32 %v1927_v55, %v1893_v63  ;;  %v1849_v23 = vadd.f32 %v1848_v36, %v1813_v8 }
 0x221   : > { %v1850_v48 = vadd.f32 %v1849_v23, %v1814_v30  ;;  %v1929_v51 = vadd.f32 %v1928_v43, %v1894_v60 }
 0x223   : > { %v1851_v22 = vrot.slane %v1850_v48, 4  ;;  %v1930_v49 = vadd.f32 %v1929_v51, %v1895_v37 }
 0x225   : > { %v1852_v53 = vadd.f32 %v1851_v22, %v1850_v48  ;;  %v1931_v38 = vrot.slane %v1930_v49, 4 }
 0x227   : > { %v1853_v28 = vrot.slane %v1852_v53, 2  ;;  %v1932_v62 = vadd.f32 %v1931_v38, %v1930_v49 }
 0x229   : > { %v1854_v11 = vadd.f32 %v1853_v28, %v1852_v53  ;;  %v1933_v25 = vrot.slane %v1932_v62, 2 }
 0x22b   : > { %v1855_v14 = vrot.slane %v1854_v11, 1  ;;  %v1934_v56 = vadd.f32 %v1933_v25, %v1932_v62 }
 0x22d   : > { %v1856_v33 = vadd.f32 %v1855_v14, %v1854_v11  ;;  %v1935_v13 = vrot.slane %v1934_v56, 1 }
 0x22f   : > { %v1857_v2 = vadd.f32 %v1856_v33, %v1815_v58  ;;  %v1936_v5 = vadd.f32 %v1935_v13, %v1934_v56 }
 0x231   : > { %1858 = vst [vmem:[%s3487_s4] sm:$0x1] %v1857_v2  ;;  %v1937_v54 = vadd.f32 %v1936_v5, %v1859_v35 }
 0x233   : > { %1938 = vst [vmem:[%s3488_s5] sm:$0x1] %v1937_v54 }
 0x234 PF: > { %s16_s18 = sadd.s32 1, %s2531_s18  }
 0x235   : > { %p13_p5 = scmp.ge.s32.totalorder %s16_s18, 4  }
 0x237   :  { %15 = sbr.rel (!%p13_p5) target bundleno = 1 (0x1), region = 84 }

// kernel: inconv_forward.6
= control target key start
LH: loop header
LB: loop body
LE: loop exit
PB: predicated region body
PF: predicated region fallthrough
CT: control target
= control target key end

     0   :  { %s2561_s18 = smov 0   ;;  %s3473_s0 = inlined_call_operand.vmem [shape: f32[576,24], index: 0, kind: input, shape index: {}]   ;;  %s3474_s1 = inlined_call_operand.vmem [shape: f32[3,24,128], index: 1, kind: input, shape index: {}]   ;;  %s3475_s2 = inlined_call_operand.vmem [shape: f32[288,1], index: 2, kind: input, shape index: {}]   ;;  %s3476_s3 = inlined_call_operand.vmem [shape: f32[576,128], index: 3, kind: output, shape index: {0}]   ;;  %s3477_s4 = inlined_call_operand.vmem [shape: f32[1,128], index: 4, kind: output, shape index: {1}]   ;;  %s3478_s5 = inlined_call_operand.vmem [shape: f32[1,128], index: 5, kind: output, shape index: {2}]  }
   0x1 LB: > { %s2000_s19 = sadd.s32 4294967295, %s2527_s18   ;;  %p2004_p0 = scmp.ge.s32.totalorder %s2527_s18, 1  ;;  %s2527_s18 = sphi %s2561_s18, %s16_s18  }
   0x2   : > { %p183_p1 = scmp.lt.s32.totalorder %s2527_s18, 3 }
   0x4   : > { %p184_p2 = pnand %p2004_p0, %p183_p1 }
   0x5   : > { %v2007_v0 = vld [vmem:[%s3474_s1 + $0x18] sm:$0xff] (!%p184_p2)  ;;  %v2008_v1 = vld [vmem:[%s3474_s1 + $0x20] sm:$0xff] (!%p184_p2)  ;;  %s211_s26 = smul.u32 (!%p184_p2), 36, %s2000_s19  ;;  %v299_v3 = vlaneseq (!%p184_p2)  ;;  %v339_v5 = vld [vmem:[%s3474_s1 + $0x8] sm:$0xff] (!%p184_p2)  ;;  %vm341_vm0 = vcmask (!%p184_p2), 195584   ;;  %p2121_p4 = scmp.ne.s32.totalorder (!%p184_p2), %s2000_s19, 0 }
   0x6   : > { %187 = sbr.rel (%p184_p2) target bundleno = 564 (0x234), region = 32  ;;  %v338_v2 = vld [vmem:[%s3474_s1] sm:$0xff] (!%p184_p2)  ;;  %v2425_v4 = vpack.c.bf16 (!%p184_p2), %v2008_v1, %v2007_v0  ;;  %v2586_v7 = vld [vmem:[%s3474_s1 + $0x28] sm:$0xff] (!%p184_p2)  ;;  %v340_v8 = vld [vmem:[%s3474_s1 + $0x10] sm:$0xff] (!%p184_p2) }
   0x7   : > { %v2421_v6 = vpack.c.bf16 (!%p184_p2), %v339_v5, %v338_v2  ;;  %p212_p3 = scmp.lt.s32.totalorder (!%p184_p2), %s211_s26, 71  ;;  %v2593_v9 = vshrl.u32 (!%p184_p2), %v299_v3, 7  ;;  %v2082_v10 = vld [vmem:[%s3474_s1 + $0x30] sm:$0xff] (!%p184_p2)  ;;  %v2083_v11 = vld [vmem:[%s3474_s1 + $0x38] sm:$0xff] (!%p184_p2)  ;;  %v2084_v23 = vld [vmem:[%s3474_s1 + $0x40] sm:$0xff] (!%p184_p2) }
   0x8   : > { %2426 = vmatprep.subr.bf16.mxu0 (!%p184_p2), %v2425_v4  ;;  %v2429_v12 = vpack.c.bf16 (!%p184_p2), %v2083_v11, %v2082_v10 }
   0x9   : > { %2428 = vmatpush3.bf16.msra.mxu0 (!%p184_p2), %v2425_v4  ;;  %2422 = vmatprep.subr.bf16.mxu1 (!%p184_p2), %v2421_v6  ;;  %vm301_vm1 = vcmp.lt.s32.totalorder (!%p184_p2), %v2593_v9, 1  ;;  %vm1084_vm2 = vcmp.lt.s32.totalorder (!%p184_p2), %v2593_v9, 7 }
   0xa   : > { %2424 = vmatpush3.bf16.msra.mxu1 (!%p184_p2), %v2421_v6  ;;  %2305 = vmatprep.subr.mxu0 (!%p184_p2), %v2586_v7 }
   0xb   : > { %2245 = vmatprep.subr.mxu1 (!%p184_p2), %v340_v8 }
   0xd   : > { %s3480_s26 = smov (!%p212_p3, %s211_s26), 71  ;;  %2306 = vmatpush3.msra.mxu0 %v2586_v7 }
   0xe   : > { %s2005_s12 = sshll.u32 %s3480_s26, 3  ;;  %2246 = vmatpush3.msra.mxu1 %v340_v8  ;;  %2430 = vmatprep.subr.bf16.mxu0 %v2429_v12 }
   0xf   : > { %s2608_s15 = scalar_lea.vmem %s3473_s0, %s2005_s12  ;;  %2433 = vmatprep.subr.bf16.mxu1 %v2425_v4  ;;  %s3124_s22 = scalar_lea.vmem %s3476_s3, %s2005_s12 }
  0x10   : > { %v2612_v13 = vld [vmem:[%s2608_s15] sm:$0xff]  ;;  %v2615_v14 = vld [vmem:[%s2608_s15 + $0x8] sm:$0xff]  ;;  %v2618_v15 = vld [vmem:[%s2608_s15 + $0x118] sm:$0xff] }
  0x11   : > { %v263_v16 = vrot.slane %v2612_v13, 7  ;;  %2307 = vmatprep.mubr.msk.f32.mxu0 %vm341_vm0, %v2612_v13  ;;  %v264_v17 = vrot.slane %v2615_v14, 7  ;;  %v2626_v18 = vld [vmem:[%s2608_s15 + $0x10] sm:$0xff]  ;;  %v2629_v19 = vld [vmem:[%s2608_s15 + $0x18] sm:$0xff]  ;;  %v298_v20 = vrot.slane %v2618_v15, 7  ;;  %v2636_v22 = vld [vmem:[%s2608_s15 + $0x20] sm:$0xff] }
  0x12   : > { %2308 = vmatmul.mubr.msk.f32.vlgmr.msra.gmra.mrb[0].mxu0 %vm341_vm0, %v2615_v14  ;;  %v265_v21 = vrot.slane %v2626_v18, 7  ;;  %v266_v25 = vrot.slane %v2629_v19, 7  ;;  %v267_v28 = vrot.slane %v2636_v22, 7  ;;  %v2654_v29 = vld [vmem:[%s2608_s15 + $0x28] sm:$0xff]  ;;  %v2658_v30 = vld [vmem:[%s2608_s15 + $0x30] sm:$0xff]  ;;  %v2673_v35 = vld [vmem:[%s2608_s15 + $0x38] sm:$0xff] }
  0x13   : > { %v336_v24 = vsel %vm301_vm1, %v263_v16, %v264_v17  ;;  %2310 = vmatprep.mubr.msk.f32.mxu0 %vm341_vm0, %v2626_v18  ;;  %v337_v26 = vsel %vm301_vm1, %v298_v20, %v263_v16  ;;  %2432 = vmatpush3.bf16.msra.mxu0 %v2429_v12  ;;  %v268_v32 = vrot.slane %v2654_v29, 7  ;;  %v269_v34 = vrot.slane %v2658_v30, 7  ;;  %v2676_v36 = vld [vmem:[%s2608_s15 + $0x40] sm:$0xff]  ;;  %v2692_v41 = vld [vmem:[%s2608_s15 + $0x48] sm:$0xff]  ;;  %v2696_v42 = vld [vmem:[%s2608_s15 + $0x50] sm:$0xff] }
  0x14   : > { %v335_v27 = vsel %vm301_vm1, %v264_v17, %v265_v21  ;;  %2247 = vmatprep.mubr.msk.f32.mxu1 %vm341_vm0, %v337_v26  ;;  %2365 = vmatprep.subr.mxu0 %v2084_v23  ;;  %v334_v31 = vsel %vm301_vm1, %v265_v21, %v266_v25  ;;  %v333_v33 = vsel %vm301_vm1, %v266_v25, %v267_v28  ;;  %v270_v38 = vrot.slane %v2673_v35, 7  ;;  %v2711_v47 = vld [vmem:[%s2608_s15 + $0x58] sm:$0xff]  ;;  %v2714_v48 = vld [vmem:[%s2608_s15 + $0x60] sm:$0xff]  ;;  %v2729_v53 = vld [vmem:[%s2608_s15 + $0x68] sm:$0xff] }
  0x15   : > { %2248 = vmatmul.mubr.msk.f32.vlgmr.msra.gmra.mrb[0].mxu1 %vm341_vm0, %v336_v24  ;;  %v332_v37 = vsel %vm301_vm1, %v267_v28, %v268_v32  ;;  %v331_v39 = vsel %vm301_vm1, %v268_v32, %v269_v34  ;;  %v271_v40 = vrot.slane %v2676_v36, 7  ;;  %v272_v44 = vrot.slane %v2692_v41, 7  ;;  %v2732_v54 = vld [vmem:[%s2608_s15 + $0x70] sm:$0xff]  ;;  %v2738_v55 = vld [vmem:[%s2608_s15 + $0x100] sm:$0xff]  ;;  %v2741_v56 = vld [vmem:[%s2608_s15 + $0x108] sm:$0xff] }
  0x16   : > { %2311 = vmatmul.mubr.msk.f32.gmra.mrb[2].mxu0 %vm341_vm0, %v2629_v19  ;;  %2435 = vmatpush3.bf16.msra.mxu1 %v2425_v4  ;;  %v330_v43 = vsel %vm301_vm1, %v269_v34, %v270_v38  ;;  %v273_v46 = vrot.slane %v2696_v42, 7  ;;  %v274_v50 = vrot.slane %v2711_v47, 7  ;;  %v275_v52 = vrot.slane %v2714_v48, 7  ;;  %v2750_v59 = vld [vmem:[%s2608_s15 + $0x110] sm:$0xff]  ;;  %v2756_v62 = vld [vmem:[%s2608_s15 + $0x78] sm:$0xff]  ;;  %v2759_v63 = vld [vmem:[%s2608_s15 + $0x80] sm:$0xff] }
  0x17   : > { %2250 = vmatprep.mubr.msk.f32.mxu1 %vm341_vm0, %v335_v27  ;;  %2313 = vmatprep.mubr.msk.f32.mxu0 %vm341_vm0, %v2636_v22  ;;  %v329_v45 = vsel %vm301_vm1, %v270_v38, %v271_v40  ;;  %v328_v49 = vsel %vm301_vm1, %v271_v40, %v272_v44  ;;  %v276_v58 = vrot.slane %v2729_v53, 7  ;;  %v277_v61 = vrot.slane %v2732_v54, 7  ;;  %v2818_v26 = vld [vmem:[%s2608_s15 + $0x98] sm:$0xff]  ;;  %v2823_v27 = vld [vmem:[%s2608_s15 + $0xa0] sm:$0xff]  ;;  %v2845_v40 = vld [vmem:[%s2608_s15 + $0xa8] sm:$0xff] }
  0x18   : > { %2366 = vmatpush3.msra.mxu0 %v2084_v23  ;;  %2434 = vmatprep.subr.mxu1 %v2586_v7  ;;  %v327_v51 = vsel %vm301_vm1, %v272_v44, %v273_v46  ;;  %v326_v57 = vsel %vm301_vm1, %v273_v46, %v274_v50  ;;  %v325_v60 = vsel %vm301_vm1, %v274_v50, %v275_v52  ;;  %v295_v0 = vrot.slane %v2738_v55, 7 }
  0x19   : > { %2251 = vmatmul.mubr.msk.f32.gmra.mrb[2].mxu1 %vm341_vm0, %v334_v31  ;;  %v296_v1 = vrot.slane %v2741_v56, 7  ;;  %v1048_v2 = vrot.slane %v2612_v13, 1  ;;  %v297_v3 = vrot.slane %v2750_v59, 7  ;;  %v1049_v4 = vrot.slane %v2615_v14, 1  ;;  %v2799_v14 = vld [vmem:[%s2608_s15 + $0x90] sm:$0xff] }
  0x1a   : > { %2314 = vmatmul.mubr.msk.f32.gmra.mrb[4].mxu0 %vm341_vm0, %v2654_v29  ;;  %2253 = vmatprep.mubr.msk.f32.mxu1 %vm341_vm0, %v333_v33  ;;  %v324_v5 = vsel %vm301_vm1, %v275_v52, %v276_v58  ;;  %v278_v6 = vrot.slane %v2756_v62, 7  ;;  %v323_v10 = vsel %vm301_vm1, %v276_v58, %v277_v61  ;;  %v279_v11 = vrot.slane %v2759_v63, 7 }
  0x1b   : > { %2316 = vmatprep.mubr.msk.f32.mxu0 %vm341_vm0, %v2658_v30  ;;  %2436 = vmatpush3.msra.mxu1 %v2586_v7  ;;  %v2776_v7 = vld [vmem:[%s2608_s15 + $0x88] sm:$0xff]  ;;  %v2782_v8 = vsel %vm301_vm1, %v295_v0, %v296_v1  ;;  %v2789_v12 = vsel %vm301_vm1, %v296_v1, %v297_v3  ;;  %v2795_v13 = vsel %vm301_vm1, %v297_v3, %v298_v20  ;;  %v1050_v17 = vrot.slane %v2626_v18, 1  ;;  %v2885_v1 = vld [vmem:[%s2608_s15 + $0xb8] sm:$0xff] }
  0x1c   : > { %v280_v16 = vrot.slane %v2776_v7, 7  ;;  %v1051_v21 = vrot.slane %v2629_v19, 1  ;;  %v322_v20 = vsel %vm301_vm1, %v277_v61, %v278_v6  ;;  %v321_v23 = vsel %vm301_vm1, %v278_v6, %v279_v11 }
  0x1d   : > { %2254 = vmatmul.mubr.msk.f32.gmra.mrb[4].mxu1 %vm341_vm0, %v332_v37  ;;  %v1119_v24 = vsel %vm1084_vm2, %v1048_v2, %v1049_v4  ;;  %v281_v25 = vrot.slane %v2799_v14, 7  ;;  %v1052_v18 = vrot.slane %v2636_v22, 1  ;;  %v1053_v19 = vrot.slane %v2654_v29, 1 }
  0x1e   : > { %2317 = vmatmul.mubr.msk.f32.gmra.mrb[6].mxu0 %vm341_vm0, %v2673_v35  ;;  %2256 = vmatprep.mubr.msk.f32.mxu1 %vm341_vm0, %v331_v39  ;;  %v320_v28 = vsel %vm301_vm1, %v279_v11, %v280_v16  ;;  %v1080_v31 = vrot.slane %v2738_v55, 1  ;;  %v1081_v32 = vrot.slane %v2741_v56, 1  ;;  %v1082_v22 = vrot.slane %v2750_v59, 1 }
  0x1f   : > { %2319 = vmatprep.mubr.msk.f32.mxu0 %vm341_vm0, %v2676_v36  ;;  %v1118_v29 = vsel %vm1084_vm2, %v1049_v4, %v1050_v17  ;;  %v282_v33 = vrot.slane %v2818_v26, 7  ;;  %v1117_v34 = vsel %vm1084_vm2, %v1050_v17, %v1051_v21  ;;  %v1083_v37 = vrot.slane %v2618_v15, 1  ;;  %v2910_v17 = vld [vmem:[%s2608_s15 + $0xd0] sm:$0xff] }
  0x20   : > { %v319_v38 = vsel %vm301_vm1, %v280_v16, %v281_v25  ;;  %v283_v39 = vrot.slane %v2823_v27, 7  ;;  %v2855_v44 = vsel %vm1084_vm2, %v1081_v32, %v1082_v22  ;;  %v1054_v50 = vrot.slane %v2658_v30, 1  ;;  %v2907_v16 = vld [vmem:[%s2608_s15 + $0xc8] sm:$0xff] }
  0x21   : > { %2257 = vmatmul.mubr.msk.f32.gmra.mrb[6].mxu1 %vm341_vm0, %v330_v43  ;;  %v2851_v43 = vsel %vm1084_vm2, %v1080_v31, %v1081_v32  ;;  %v2862_v46 = vsel %vm1084_vm2, %v1082_v22, %v1083_v37  ;;  %v1116_v52 = vsel %vm1084_vm2, %v1051_v21, %v1052_v18  ;;  %v1055_v58 = vrot.slane %v2673_v35, 1 }
  0x22   : > { %2320 = vmatmul.mubr.msk.f32.gmra.mrb[8].mxu0 %vm341_vm0, %v2692_v41  ;;  %2259 = vmatprep.mubr.msk.f32.mxu1 %vm341_vm0, %v329_v45  ;;  %v2858_v45 = vld [vmem:[%s2608_s15 + $0xb0] sm:$0xff]  ;;  %v1115_v30 = vsel %vm1084_vm2, %v1052_v18, %v1053_v19  ;;  %v1056_v35 = vrot.slane %v2676_v36, 1  ;;  %v1114_v4 = vsel %vm1084_vm2, %v1053_v19, %v1054_v50  ;;  %v1057_v6 = vrot.slane %v2692_v41, 1  ;;  %v2929_v19 = vld [vmem:[%s2608_s15 + $0xd8] sm:$0xff] }
  0x23   : > { %2322 = vmatprep.mubr.msk.f32.mxu0 %vm341_vm0, %v2696_v42  ;;  %v285_v61 = vrot.slane %v2858_v45, 7  ;;  %v1113_v36 = vsel %vm1084_vm2, %v1054_v50, %v1055_v58  ;;  %v1058_v41 = vrot.slane %v2696_v42, 1  ;;  %v289_v18 = vrot.slane %v2910_v17, 7 }
  0x24   : > { %v1111_v42 = vsel %vm1084_vm2, %v1056_v35, %v1057_v6  ;;  %v1062_v50 = vrot.slane %v2732_v54, 1 }
  0x25   : > { %2260 = vmatmul.mubr.msk.f32.gmra.mrb[8].mxu1 %vm341_vm0, %v328_v49  ;;  %v2866_v49 = vsel %vm1084_vm2, %v1083_v37, %v1048_v2  ;;  %v2888_v2 = vld [vmem:[%s2608_s15 + $0xc0] sm:$0xff]  ;;  %v1110_v22 = vsel %vm1084_vm2, %v1057_v6, %v1058_v41 }
  0x26   : > { %2323 = vmatmul.mubr.msk.f32.gmra.mrb[10].mxu0 %vm341_vm0, %v2711_v47  ;;  %2262 = vmatprep.mubr.msk.f32.mxu1 %vm341_vm0, %v327_v51  ;;  %v318_v51 = vsel %vm301_vm1, %v281_v25, %v282_v33  ;;  %v287_v11 = vrot.slane %v2888_v2, 7 }
  0x27   : > { %2325 = vmatprep.mubr.msk.f32.mxu0 %vm341_vm0, %v2714_v48 }
  0x29   : > { %2263 = vmatmul.mubr.msk.f32.gmra.mrb[10].mxu1 %vm341_vm0, %v326_v57  ;;  %v284_v57 = vrot.slane %v2845_v40, 7 }
  0x2a   : > { %2326 = vmatmul.mubr.msk.f32.gmra.mrb[12].mxu0 %vm341_vm0, %v2729_v53  ;;  %2265 = vmatprep.mubr.msk.f32.mxu1 %vm341_vm0, %v325_v60  ;;  %v317_v60 = vsel %vm301_vm1, %v282_v33, %v283_v39  ;;  %v1061_v33 = vrot.slane %v2729_v53, 1 }
  0x2b   : > { %2328 = vmatprep.mubr.msk.f32.mxu0 %vm341_vm0, %v2732_v54  ;;  %v316_v3 = vsel %vm301_vm1, %v283_v39, %v284_v57  ;;  %v2954_v39 = vld [vmem:[%s2608_s15 + $0xf0] sm:$0xff] }
  0x2d   : > { %2266 = vmatmul.mubr.msk.f32.gmra.mrb[12].mxu1 %vm341_vm0, %v324_v5  ;;  %v286_v5 = vrot.slane %v2885_v1, 7 }
  0x2e   : > { %2329 = vmatmul.mubr.msk.f32.gmra.mrb[14].mxu0 %vm341_vm0, %v2756_v62  ;;  %2268 = vmatprep.mubr.msk.f32.mxu1 %vm341_vm0, %v323_v10  ;;  %v315_v10 = vsel %vm301_vm1, %v284_v57, %v285_v61  ;;  %v1063_v57 = vrot.slane %v2756_v62, 1 }
  0x2f   : > { %2331 = vmatprep.mubr.msk.f32.mxu0 %vm341_vm0, %v2759_v63  ;;  %v314_v21 = vsel %vm301_vm1, %v285_v61, %v286_v5  ;;  %v313_v25 = vsel %vm301_vm1, %v286_v5, %v287_v11  ;;  %v1064_v61 = vrot.slane %v2759_v63, 1 }
  0x30   : > { %v1105_v63 = vsel %vm1084_vm2, %v1062_v50, %v1063_v57 }
  0x31   : > { %2269 = vmatmul.mubr.msk.f32.gmra.mrb[14].mxu1 %vm341_vm0, %v322_v20  ;;  %v1112_v20 = vsel %vm1084_vm2, %v1055_v58, %v1056_v35  ;;  %v1106_v35 = vsel %vm1084_vm2, %v1061_v33, %v1062_v50 }
  0x32   : > { %2332 = vmatmul.mubr.msk.f32.gmra.mrb[16].mxu0 %vm341_vm0, %v2776_v7  ;;  %2271 = vmatprep.mubr.msk.f32.mxu1 %vm341_vm0, %v321_v23  ;;  %v288_v23 = vrot.slane %v2907_v16, 7 }
  0x33   : > { %2367 = vmatprep.mubr.msk.f32.mxu0 %vm341_vm0, %v1119_v24  ;;  %v1059_v24 = vrot.slane %v2711_v47, 1  ;;  %v1060_v47 = vrot.slane %v2714_v48, 1 }
  0x34   : > { %v312_v32 = vsel %vm301_vm1, %v287_v11, %v288_v23 }
  0x35   : > { %2272 = vmatmul.mubr.msk.f32.gmra.mrb[16].mxu1 %vm341_vm0, %v320_v28  ;;  %v2932_v28 = vld [vmem:[%s2608_s15 + $0xe0] sm:$0xff]  ;;  %v1109_v48 = vsel %vm1084_vm2, %v1058_v41, %v1059_v24  ;;  %v1107_v54 = vsel %vm1084_vm2, %v1060_v47, %v1061_v33  ;;  %v1067_v41 = vrot.slane %v2818_v26, 1 }
  0x36   : > { %2368 = vmatmul.mubr.msk.f32.vlgmr.msra.gmra.mrb[0].mxu0 %vm341_vm0, %v1118_v29  ;;  %2274 = vmatprep.mubr.msk.f32.mxu1 %vm341_vm0, %v319_v38  ;;  %v290_v29 = vrot.slane %v2929_v19, 7  ;;  %v291_v37 = vrot.slane %v2932_v28, 7  ;;  %v2951_v38 = vld [vmem:[%s2608_s15 + $0xe8] sm:$0xff] }
  0x37   : > { %2370 = vmatprep.mubr.msk.f32.mxu0 %vm341_vm0, %v1117_v34  ;;  %v311_v34 = vsel %vm301_vm1, %v288_v23, %v289_v18  ;;  %v1069_v23 = vrot.slane %v2845_v40, 1 }
  0x38   : > { %v310_v53 = vsel %vm301_vm1, %v289_v18, %v290_v29  ;;  %v309_v58 = vsel %vm301_vm1, %v290_v29, %v291_v37  ;;  %v1071_v18 = vrot.slane %v2885_v1, 1  ;;  %v1075_v29 = vrot.slane %v2929_v19, 1 }
  0x39   : > { %2275 = vmatmul.mubr.msk.f32.gmra.mrb[18].mxu1 %vm341_vm0, %v318_v51  ;;  %v1108_v51 = vsel %vm1084_vm2, %v1059_v24, %v1060_v47 }
  0x3a   : > { %2371 = vmatmul.mubr.msk.f32.gmra.mrb[2].mxu0 %vm341_vm0, %v1116_v52  ;;  %2277 = vmatprep.mubr.msk.f32.mxu1 %vm341_vm0, %v317_v60  ;;  %v292_v52 = vrot.slane %v2951_v38, 7  ;;  %v293_v60 = vrot.slane %v2954_v39, 7 }
  0x3b   : > { %2373 = vmatprep.mubr.msk.f32.mxu0 %vm341_vm0, %v1115_v30  ;;  %v2973_v30 = vld [vmem:[%s2608_s15 + $0xf8] sm:$0xff] }
  0x3c   : > { %v308_v62 = vsel %vm301_vm1, %v291_v37, %v292_v52  ;;  %v307_v5 = vsel %vm301_vm1, %v292_v52, %v293_v60  ;;  %v1079_v37 = vrot.slane %v2973_v30, 1 }
  0x3d   : > { %2278 = vmatmul.mubr.msk.f32.gmra.mrb[20].mxu1 %vm341_vm0, %v316_v3  ;;  %v294_v3 = vrot.slane %v2973_v30, 7 }
  0x3e   : > { %2374 = vmatmul.mubr.msk.f32.gmra.mrb[4].mxu0 %vm341_vm0, %v1114_v4  ;;  %2280 = vmatprep.mubr.msk.f32.mxu1 %vm341_vm0, %v315_v10  ;;  %v1065_v4 = vrot.slane %v2776_v7, 1  ;;  %v1104_v7 = vsel %vm1084_vm2, %v1063_v57, %v1064_v61  ;;  %v1066_v10 = vrot.slane %v2799_v14, 1 }
  0x3f   : > { %2376 = vmatprep.mubr.msk.f32.mxu0 %vm341_vm0, %v1113_v36  ;;  %v306_v6 = vsel %vm301_vm1, %v293_v60, %v294_v3  ;;  %v305_v36 = vsel %vm301_vm1, %v294_v3, %v295_v0 }
  0x40   : > { %v1103_v11 = vsel %vm1084_vm2, %v1064_v61, %v1065_v4  ;;  %v1101_v0 = vsel %vm1084_vm2, %v1066_v10, %v1067_v41 }
  0x41   : > { %2281 = vmatmul.mubr.msk.f32.gmra.mrb[22].mxu1 %vm341_vm0, %v314_v21  ;;  %v1102_v21 = vsel %vm1084_vm2, %v1065_v4, %v1066_v10 }
  0x42   : > { %2377 = vmatmul.mubr.msk.f32.gmra.mrb[6].mxu0 %vm341_vm0, %v1112_v20  ;;  %2283 = vmatprep.mubr.msk.f32.mxu1 %vm341_vm0, %v313_v25  ;;  %v1068_v20 = vrot.slane %v2823_v27, 1  ;;  %v1070_v25 = vrot.slane %v2858_v45, 1 }
  0x43   : > { %2379 = vmatprep.mubr.msk.f32.mxu0 %vm341_vm0, %v1111_v42 }
  0x44   : > { %v1100_v24 = vsel %vm1084_vm2, %v1067_v41, %v1068_v20  ;;  %v1099_v42 = vsel %vm1084_vm2, %v1068_v20, %v1069_v23  ;;  %v1097_v47 = vsel %vm1084_vm2, %v1070_v25, %v1071_v18 }
  0x45   : > { %2284 = vmatmul.mubr.msk.f32.gmra.mrb[24].mxu1 %vm341_vm0, %v312_v32  ;;  %v1073_v32 = vrot.slane %v2907_v16, 1 }
  0x46   : > { %2380 = vmatmul.mubr.msk.f32.gmra.mrb[8].mxu0 %vm341_vm0, %v1110_v22  ;;  %2286 = vmatprep.mubr.msk.f32.mxu1 %vm341_vm0, %v311_v34  ;;  %v1077_v34 = vrot.slane %v2951_v38, 1 }
  0x47   : > { %2382 = vmatprep.mubr.msk.f32.mxu0 %vm341_vm0, %v1109_v48 }
  0x49   : > { %2287 = vmatmul.mubr.msk.f32.gmra.mrb[26].mxu1 %vm341_vm0, %v310_v53 }
  0x4a   : > { %2383 = vmatmul.mubr.msk.f32.gmra.mrb[10].mxu0 %vm341_vm0, %v1108_v51  ;;  %2289 = vmatprep.mubr.msk.f32.mxu1 %vm341_vm0, %v309_v58 }
  0x4b   : > { %2385 = vmatprep.mubr.msk.f32.mxu0 %vm341_vm0, %v1107_v54 }
  0x4d   : > { %2290 = vmatmul.mubr.msk.f32.gmra.mrb[28].mxu1 %vm341_vm0, %v308_v62 }
  0x4e   : > { %2386 = vmatmul.mubr.msk.f32.gmra.mrb[12].mxu0 %vm341_vm0, %v1106_v35  ;;  %2292 = vmatprep.mubr.msk.f32.mxu1 %vm341_vm0, %v307_v5 }
  0x4f   : > { %2388 = vmatprep.mubr.msk.f32.mxu0 %vm341_vm0, %v1105_v63 }
  0x51   : > { %2293 = vmatmul.mubr.msk.f32.gmra.mrb[30].mxu1 %vm341_vm0, %v306_v6 }
  0x52   : > { %2389 = vmatmul.mubr.msk.f32.gmra.mrb[14].mxu0 %vm341_vm0, %v1104_v7  ;;  %2295 = vmatprep.mubr.msk.f32.mxu1 %vm341_vm0, %v305_v36 }
  0x53   : > { %2391 = vmatprep.mubr.msk.f32.mxu0 %vm341_vm0, %v1103_v11 }
  0x55   : > { %2296 = vmatmul.mubr.msk.f32.gmra.mrb[32].mxu1 %vm341_vm0, %v2782_v8  ;;  %v1098_v8 = vsel %vm1084_vm2, %v1069_v23, %v1070_v25 }
  0x56   : > { %2392 = vmatmul.mubr.msk.f32.gmra.mrb[16].mxu0 %vm341_vm0, %v1102_v21  ;;  %2298 = vmatprep.mubr.msk.f32.mxu1 %vm341_vm0, %v2789_v12  ;;  %v1072_v12 = vrot.slane %v2888_v2, 1 }
  0x57   : > { %2394 = vmatprep.mubr.msk.f32.mxu0 %vm341_vm0, %v1101_v0 }
  0x58   : > { %v1095_v22 = vsel %vm1084_vm2, %v1072_v12, %v1073_v32 }
  0x59   : > { %2299 = vmatmul.mubr.msk.f32.gmra.mrb[34].mxu1 %vm341_vm0, %v2795_v13  ;;  %v1096_v13 = vsel %vm1084_vm2, %v1071_v18, %v1072_v12 }
  0x5a   : > { %2395 = vmatmul.mubr.msk.f32.gmra.mrb[18].mxu0 %vm341_vm0, %v1100_v24  ;;  %2334 = vmatprep.mubr.msk.f32.mxu1 %vm341_vm0, %v2799_v14  ;;  %v1074_v14 = vrot.slane %v2910_v17, 1 }
  0x5b   : > { %2397 = vmatprep.mubr.msk.f32.mxu0 %vm341_vm0, %v1099_v42 }
  0x5c   : > { %v1093_v33 = vsel %vm1084_vm2, %v1074_v14, %v1075_v29 }
  0x5d   : > { %2335 = vmatmul.mubr.msk.f32.vlgmr.msra.gmra.mrb[18].mxu1 %vm341_vm0, %v2818_v26  ;;  %v1094_v26 = vsel %vm1084_vm2, %v1073_v32, %v1074_v14 }
  0x5e   : > { %2398 = vmatmul.mubr.msk.f32.gmra.mrb[20].mxu0 %vm341_vm0, %v1098_v8  ;;  %2337 = vmatprep.mubr.msk.f32.mxu1 %vm341_vm0, %v2823_v27  ;;  %v1076_v27 = vrot.slane %v2932_v28, 1 }
  0x5f   : > { %2400 = vmatprep.mubr.msk.f32.mxu0 %vm341_vm0, %v1097_v47 }
  0x60   : > { %v1091_v48 = vsel %vm1084_vm2, %v1076_v27, %v1077_v34 }
  0x61   : > { %2338 = vmatmul.mubr.msk.f32.gmra.mrb[20].mxu1 %vm341_vm0, %v2845_v40  ;;  %v1092_v40 = vsel %vm1084_vm2, %v1075_v29, %v1076_v27 }
  0x62   : > { %2401 = vmatmul.mubr.msk.f32.gmra.mrb[22].mxu0 %vm341_vm0, %v1096_v13  ;;  %2340 = vmatprep.mubr.msk.f32.mxu1 %vm341_vm0, %v2858_v45  ;;  %v1078_v45 = vrot.slane %v2954_v39, 1 }
  0x63   : > { %2403 = vmatprep.mubr.msk.f32.mxu0 %vm341_vm0, %v1095_v22 }
  0x65   : > { %2341 = vmatmul.mubr.msk.f32.gmra.mrb[22].mxu1 %vm341_vm0, %v2885_v1  ;;  %v1090_v1 = vsel %vm1084_vm2, %v1077_v34, %v1078_v45 }
  0x66   : > { %2404 = vmatmul.mubr.msk.f32.gmra.mrb[24].mxu0 %vm341_vm0, %v1094_v26  ;;  %2343 = vmatprep.mubr.msk.f32.mxu1 %vm341_vm0, %v2888_v2  ;;  %v1089_v2 = vsel %vm1084_vm2, %v1078_v45, %v1079_v37 }
  0x67   : > { %2406 = vmatprep.mubr.msk.f32.mxu0 %vm341_vm0, %v1093_v33 }
  0x69   : > { %2344 = vmatmul.mubr.msk.f32.gmra.mrb[24].mxu1 %vm341_vm0, %v2907_v16  ;;  %v1088_v16 = vsel %vm1084_vm2, %v1079_v37, %v1080_v31 }
  0x6a   : > { %2407 = vmatmul.mubr.msk.f32.gmra.mrb[26].mxu0 %vm341_vm0, %v1092_v40  ;;  %2346 = vmatprep.mubr.msk.f32.mxu1 %vm341_vm0, %v2910_v17 }
  0x6b   : > { %2409 = vmatprep.mubr.msk.f32.mxu0 %vm341_vm0, %v1091_v48 }
  0x6d   : > { %2347 = vmatmul.mubr.msk.f32.gmra.mrb[26].mxu1 %vm341_vm0, %v2929_v19 }
  0x6e   : > { %2410 = vmatmul.mubr.msk.f32.gmra.mrb[28].mxu0 %vm341_vm0, %v1090_v1  ;;  %2349 = vmatprep.mubr.msk.f32.mxu1 %vm341_vm0, %v2932_v28 }
  0x6f   : > { %2412 = vmatprep.mubr.msk.f32.mxu0 %vm341_vm0, %v1089_v2 }
  0x71   : > { %2350 = vmatmul.mubr.msk.f32.gmra.mrb[28].mxu1 %vm341_vm0, %v2951_v38 }
  0x72   : > { %2413 = vmatmul.mubr.msk.f32.gmra.mrb[30].mxu0 %vm341_vm0, %v1088_v16  ;;  %2352 = vmatprep.mubr.msk.f32.mxu1 %vm341_vm0, %v2954_v39 }
  0x73   : > { %2415 = vmatprep.mubr.msk.f32.mxu0 %vm341_vm0, %v2851_v43 }
  0x75   : > { %2353 = vmatmul.mubr.msk.f32.gmra.mrb[30].mxu1 %vm341_vm0, %v2973_v30 }
  0x76   : > { %2416 = vmatmul.mubr.msk.f32.gmra.mrb[32].mxu0 %vm341_vm0, %v2855_v44  ;;  %2355 = vmatprep.mubr.msk.f32.mxu1 %vm341_vm0, %v2738_v55 }
  0x77   : > { %2418 = vmatprep.mubr.msk.f32.mxu0 %vm341_vm0, %v2862_v46 }
  0x79   : > { %2356 = vmatmul.mubr.msk.f32.gmra.mrb[32].mxu1 %vm341_vm0, %v2741_v56 }
  0x7a   : > { %2419 = vmatmul.mubr.msk.f32.gmra.mrb[34].mxu0 %vm341_vm0, %v2866_v49  ;;  %2358 = vmatprep.mubr.msk.f32.mxu1 %vm341_vm0, %v2750_v59 }
  0x7d   : > { %2359 = vmatmul.mubr.msk.f32.gmra.mrb[34].mxu1 %vm341_vm0, %v2618_v15 }
  0xe8   : > { %v2249_v9 = vpop.f32.mrb[0].mxu1 }
  0xe9   : > { %v516_v31 = vpop.f32.mrb[1].mxu1 }
  0xec   : > { %v2252_v43 = vpop.f32.mrb[2].mxu1 }
  0xed   : > { %v526_v55 = vpop.f32.mrb[3].mxu1 }
  0xf0   : > { %v2255_v44 = vpop.f32.mrb[4].mxu1 }
  0xf1   : > { %v536_v17 = vpop.f32.mrb[5].mxu1 }
  0xf4   : > { %v2258_v46 = vpop.f32.mrb[6].mxu1 }
  0xf5   : > { %v546_v19 = vpop.f32.mrb[7].mxu1 }
  0xf8   : > { %v2261_v28 = vpop.f32.mrb[8].mxu1 }
  0xf9   : > { %v556_v56 = vpop.f32.mrb[9].mxu1 }
  0xfc   : > { %v2264_v38 = vpop.f32.mrb[10].mxu1 }
  0xfd   : > { %v566_v39 = vpop.f32.mrb[11].mxu1 }
 0x100   : > { %v2267_v49 = vpop.f32.mrb[12].mxu1 }
 0x101   : > { %v576_v50 = vpop.f32.mrb[13].mxu1 }
 0x104   : > { %v2270_v53 = vpop.f32.mrb[14].mxu1 }
 0x105   : > { %v586_v59 = vpop.f32.mrb[15].mxu1 }
 0x108   : > { %v2273_v51 = vpop.f32.mrb[16].mxu1 }
 0x109   : > { %v2369_v15 = vpop.f32.mrb[0].mxu0  ;;  %v596_v52 = vpop.f32.mrb[17].mxu1 }
 0x10a   : > { %v3126_v57 = vadd.f32 %v2369_v15, %v2249_v9  ;;  %v1299_v58 = vpop.f32.mrb[1].mxu0 }
 0x10b   : > { %v3128_v54 = vadd.f32 %v1299_v58, %v516_v31 }
 0x10c   : > { %1515 = vst [vmem:[%s3124_s22 + $0x8] sm:$0xff] %v3126_v57 }
 0x10d   : > { %1514 = vst [vmem:[%s3124_s22] sm:$0xff] %v3128_v54  ;;  %v2372_v60 = vpop.f32.mrb[2].mxu0 }
 0x10e   : > { %v3134_v30 = vadd.f32 %v2372_v60, %v2252_v43  ;;  %v1309_v61 = vpop.f32.mrb[3].mxu0 }
 0x10f   : > { %v3136_v62 = vadd.f32 %v1309_v61, %v526_v55 }
 0x110   : > { %1517 = vst [vmem:[%s3124_s22 + $0x18] sm:$0xff] %v3134_v30 }
 0x111   : > { %1516 = vst [vmem:[%s3124_s22 + $0x10] sm:$0xff] %v3136_v62  ;;  %v2375_v35 = vpop.f32.mrb[4].mxu0 }
 0x112   : > { %v3142_v3 = vadd.f32 %v2375_v35, %v2255_v44  ;;  %v1319_v4 = vpop.f32.mrb[5].mxu0 }
 0x113   : > { %v3144_v5 = vadd.f32 %v1319_v4, %v536_v17 }
 0x114   : > { %1519 = vst [vmem:[%s3124_s22 + $0x28] sm:$0xff] %v3142_v3 }
 0x115   : > { %1518 = vst [vmem:[%s3124_s22 + $0x20] sm:$0xff] %v3144_v5  ;;  %v2378_v63 = vpop.f32.mrb[6].mxu0 }
 0x116   : > { %v3150_v6 = vadd.f32 %v2378_v63, %v2258_v46  ;;  %v1329_v7 = vpop.f32.mrb[7].mxu0 }
 0x117   : > { %v3152_v10 = vadd.f32 %v1329_v7, %v546_v19 }
 0x118   : > { %1521 = vst [vmem:[%s3124_s22 + $0x38] sm:$0xff] %v3150_v6 }
 0x119   : > { %1520 = vst [vmem:[%s3124_s22 + $0x30] sm:$0xff] %v3152_v10  ;;  %v2381_v36 = vpop.f32.mrb[8].mxu0 }
 0x11a   : > { %v3158_v11 = vadd.f32 %v2381_v36, %v2261_v28  ;;  %v1339_v41 = vpop.f32.mrb[9].mxu0 }
 0x11b   : > { %v3160_v21 = vadd.f32 %v1339_v41, %v556_v56 }
 0x11c   : > { %1523 = vst [vmem:[%s3124_s22 + $0x48] sm:$0xff] %v3158_v11 }
 0x11d   : > { %1522 = vst [vmem:[%s3124_s22 + $0x40] sm:$0xff] %v3160_v21  ;;  %v2384_v20 = vpop.f32.mrb[10].mxu0 }
 0x11e   : > { %v3166_v0 = vadd.f32 %v2384_v20, %v2264_v38  ;;  %v1349_v23 = vpop.f32.mrb[11].mxu0 }
 0x11f   : > { %v3168_v24 = vadd.f32 %v1349_v23, %v566_v39 }
 0x120   : > { %1525 = vst [vmem:[%s3124_s22 + $0x58] sm:$0xff] %v3166_v0 }
 0x121   : > { %1524 = vst [vmem:[%s3124_s22 + $0x50] sm:$0xff] %v3168_v24  ;;  %v2387_v25 = vpop.f32.mrb[12].mxu0 }
 0x122   : > { %v3174_v42 = vadd.f32 %v2387_v25, %v2267_v49  ;;  %v1359_v18 = vpop.f32.mrb[13].mxu0 }
 0x123   : > { %v3176_v8 = vadd.f32 %v1359_v18, %v576_v50 }
 0x124   : > { %1527 = vst [vmem:[%s3124_s22 + $0x68] sm:$0xff] %v3174_v42 }
 0x125   : > { %1526 = vst [vmem:[%s3124_s22 + $0x60] sm:$0xff] %v3176_v8  ;;  %v2390_v12 = vpop.f32.mrb[14].mxu0 }
 0x126   : > { %v3182_v47 = vadd.f32 %v2390_v12, %v2270_v53  ;;  %v1369_v32 = vpop.f32.mrb[15].mxu0 }
 0x127   : > { %v3184_v13 = vadd.f32 %v1369_v32, %v586_v59 }
 0x128   : > { %1529 = vst [vmem:[%s3124_s22 + $0x78] sm:$0xff] %v3182_v47 }
 0x129   : > { %1528 = vst [vmem:[%s3124_s22 + $0x70] sm:$0xff] %v3184_v13  ;;  %v2393_v14 = vpop.f32.mrb[16].mxu0 }
 0x12a   : > { %v3190_v22 = vadd.f32 %v2393_v14, %v2273_v51  ;;  %v1379_v29 = vpop.f32.mrb[17].mxu0 }
 0x12b   : > { %v3192_v26 = vadd.f32 %v1379_v29, %v596_v52 }
 0x12c   : > { %1531 = vst [vmem:[%s3124_s22 + $0x88] sm:$0xff] %v3190_v22 }
 0x12d   : > { %1530 = vst [vmem:[%s3124_s22 + $0x80] sm:$0xff] %v3192_v26  ;;  %v2396_v27 = vpop.f32.mrb[18].mxu0 }
 0x12e   : > { %v1389_v33 = vpop.f32.mrb[19].mxu0 }
 0x130   : > { %v2336_v34 = vpop.f32.mrb[18].mxu1 }
 0x131   : > { %v2399_v40 = vpop.f32.mrb[20].mxu0  ;;  %v3198_v45 = vadd.f32 %v2396_v27, %v2336_v34  ;;  %v959_v48 = vpop.f32.mrb[19].mxu1 }
 0x132   : > { %v1399_v37 = vpop.f32.mrb[21].mxu0  ;;  %v3200_v1 = vadd.f32 %v1389_v33, %v959_v48 }
 0x133   : > { %1533 = vst [vmem:[%s3124_s22 + $0x98] sm:$0xff] %v3198_v45 }
 0x134   : > { %1532 = vst [vmem:[%s3124_s22 + $0x90] sm:$0xff] %v3200_v1  ;;  %v2339_v2 = vpop.f32.mrb[20].mxu1 }
 0x135   : > { %v2402_v16 = vpop.f32.mrb[22].mxu0  ;;  %v3206_v9 = vadd.f32 %v2399_v40, %v2339_v2  ;;  %v969_v31 = vpop.f32.mrb[21].mxu1 }
 0x136   : > { %v1409_v43 = vpop.f32.mrb[23].mxu0  ;;  %v3208_v55 = vadd.f32 %v1399_v37, %v969_v31  ;;  %v2529_v31 = vmov (!%p2121_p4), 0.0  }
 0x137   : > { %1535 = vst [vmem:[%s3124_s22 + $0xa8] sm:$0xff] %v3206_v9  ;;  %1554 = vst [vmem:[%s3477_s4] sm:$0x1] (!%p2121_p4), %v2529_v31 }
 0x138   : > { %1534 = vst [vmem:[%s3124_s22 + $0xa0] sm:$0xff] %v3208_v55  ;;  %v2342_v44 = vpop.f32.mrb[22].mxu1  ;;  %1555 = vst [vmem:[%s3478_s5] sm:$0x1] (!%p2121_p4), %v2529_v31 }
 0x139   : > { %v2405_v17 = vpop.f32.mrb[24].mxu0  ;;  %v3214_v46 = vadd.f32 %v2402_v16, %v2342_v44  ;;  %v979_v19 = vpop.f32.mrb[23].mxu1 }
 0x13a   : > { %v1419_v28 = vpop.f32.mrb[25].mxu0  ;;  %v3216_v56 = vadd.f32 %v1409_v43, %v979_v19 }
 0x13b   : > { %1537 = vst [vmem:[%s3124_s22 + $0xb8] sm:$0xff] %v3214_v46 }
 0x13c   : > { %1536 = vst [vmem:[%s3124_s22 + $0xb0] sm:$0xff] %v3216_v56  ;;  %v2345_v38 = vpop.f32.mrb[24].mxu1 }
 0x13d   : > { %v2408_v39 = vpop.f32.mrb[26].mxu0  ;;  %v3222_v49 = vadd.f32 %v2405_v17, %v2345_v38  ;;  %v989_v50 = vpop.f32.mrb[25].mxu1 }
 0x13e   : > { %v1429_v53 = vpop.f32.mrb[27].mxu0  ;;  %v3224_v59 = vadd.f32 %v1419_v28, %v989_v50 }
 0x13f   : > { %1539 = vst [vmem:[%s3124_s22 + $0xc8] sm:$0xff] %v3222_v49 }
 0x140   : > { %1538 = vst [vmem:[%s3124_s22 + $0xc0] sm:$0xff] %v3224_v59  ;;  %v2348_v51 = vpop.f32.mrb[26].mxu1 }
 0x141   : > { %v2411_v15 = vpop.f32.mrb[28].mxu0  ;;  %v3230_v52 = vadd.f32 %v2408_v39, %v2348_v51  ;;  %v999_v58 = vpop.f32.mrb[27].mxu1 }
 0x142   : > { %v1439_v60 = vpop.f32.mrb[29].mxu0  ;;  %v3232_v61 = vadd.f32 %v1429_v53, %v999_v58 }
 0x143   : > { %1541 = vst [vmem:[%s3124_s22 + $0xd8] sm:$0xff] %v3230_v52 }
 0x144   : > { %1540 = vst [vmem:[%s3124_s22 + $0xd0] sm:$0xff] %v3232_v61  ;;  %v2351_v35 = vpop.f32.mrb[28].mxu1 }
 0x145   : > { %v2414_v4 = vpop.f32.mrb[30].mxu0  ;;  %v3238_v63 = vadd.f32 %v2411_v15, %v2351_v35  ;;  %v1009_v7 = vpop.f32.mrb[29].mxu1 }
 0x146   : > { %v1449_v36 = vpop.f32.mrb[31].mxu0  ;;  %v3240_v41 = vadd.f32 %v1439_v60, %v1009_v7 }
 0x147   : > { %1543 = vst [vmem:[%s3124_s22 + $0xe8] sm:$0xff] %v3238_v63 }
 0x148   : > { %1542 = vst [vmem:[%s3124_s22 + $0xe0] sm:$0xff] %v3240_v41  ;;  %v2354_v20 = vpop.f32.mrb[30].mxu1 }
 0x149   : > { %v2417_v23 = vpop.f32.mrb[32].mxu0  ;;  %v3246_v25 = vadd.f32 %v2414_v4, %v2354_v20  ;;  %v1019_v18 = vpop.f32.mrb[31].mxu1 }
 0x14a   : > { %v1459_v12 = vpop.f32.mrb[33].mxu0  ;;  %v3248_v32 = vadd.f32 %v1449_v36, %v1019_v18 }
 0x14b   : > { %1545 = vst [vmem:[%s3124_s22 + $0xf8] sm:$0xff] %v3246_v25 }
 0x14c   : > { %1544 = vst [vmem:[%s3124_s22 + $0xf0] sm:$0xff] %v3248_v32  ;;  %v2357_v14 = vpop.f32.mrb[32].mxu1 }
 0x14d   : > { %v2420_v29 = vpop.f32.mrb[34].mxu0  ;;  %v3254_v27 = vadd.f32 %v2417_v23, %v2357_v14  ;;  %v1029_v33 = vpop.f32.mrb[33].mxu1 }
 0x14e   : > { %v1469_v34 = vpop.f32.mrb[35].mxu0  ;;  %v3256_v40 = vadd.f32 %v1459_v12, %v1029_v33  ;;  %1553 = sbr.rel (%p2121_p4) target bundleno = 341 (0x155), region = 36 }
 0x14f   : > { %1547 = vst [vmem:[%s3124_s22 + $0x108] sm:$0xff] %v3254_v27 }
 0x150   : > { %1546 = vst [vmem:[%s3124_s22 + $0x100] sm:$0xff] %v3256_v40  ;;  %v2360_v48 = vpop.f32.mrb[34].mxu1 }
 0x151   : > { %v3262_v37 = vadd.f32 %v2420_v29, %v2360_v48  ;;  %v1039_v2 = vpop.f32.mrb[35].mxu1 }
 0x152   : > { %v3264_v16 = vadd.f32 %v1469_v34, %v1039_v2 }
 0x153   : > { %1549 = vst [vmem:[%s3124_s22 + $0x118] sm:$0xff] %v3262_v37 }
 0x154   : > { %1548 = vst [vmem:[%s3124_s22 + $0x110] sm:$0xff] %v3264_v16 }
 0x155 PF: > { %v1558_v43 = vld [vmem:[%s3475_s2 + $0x10] sm:$0xff]  ;;  %v1556_v44 = vld [vmem:[%s3475_s2] sm:$0xff]  ;;  %v2530_v17 = vmov 0   ;;  %v1559_v19 = vld [vmem:[%s3475_s2 + $0x18] sm:$0xff] }
 0x156   : > { %2520 = vset.pattern.permute.xlu1 %v2530_v17  ;;  %2519 = vset.pattern.permute.xlu0 %v2530_v17  ;;  %v1557_v28 = vld [vmem:[%s3475_s2 + $0x8] sm:$0xff]  ;;  %v1560_v39 = vld [vmem:[%s3475_s2 + $0x20] sm:$0xff]  ;;  %v1563_v50 = vld [vmem:[%s3475_s2 + $0x38] sm:$0xff] }
 0x157   : > { %1604 = vperm.xlu1 %2520, %v1558_v43   ;;  %1594 = vperm.xlu0 %2519, %v1556_v44   ;;  %v1561_v38 = vld [vmem:[%s3475_s2 + $0x28] sm:$0xff]  ;;  %v1562_v53 = vld [vmem:[%s3475_s2 + $0x30] sm:$0xff]  ;;  %v1564_v15 = vld [vmem:[%s3475_s2 + $0x40] sm:$0xff] }
 0x158   : > { %v1565_v51 = vld [vmem:[%s3475_s2 + $0x48] sm:$0xff]  ;;  %v1567_v58 = vld [vmem:[%s3475_s2 + $0x58] sm:$0xff]  ;;  %v1566_v60 = vld [vmem:[%s3475_s2 + $0x50] sm:$0xff] }
 0x159   : > { %v1569_v35 = vld [vmem:[%s3475_s2 + $0x68] sm:$0xff]  ;;  %v1568_v4 = vld [vmem:[%s3475_s2 + $0x60] sm:$0xff]  ;;  %v1571_v7 = vld [vmem:[%s3475_s2 + $0x78] sm:$0xff] }
 0x15a   : > { %v1570_v36 = vld [vmem:[%s3475_s2 + $0x70] sm:$0xff]  ;;  %v1573_v20 = vld [vmem:[%s3475_s2 + $0x88] sm:$0xff]  ;;  %v1572_v23 = vld [vmem:[%s3475_s2 + $0x80] sm:$0xff] }
 0x15b   : > { %1609 = vperm.xlu1 %2520, %v1559_v19   ;;  %1599 = vperm.xlu0 %2519, %v1557_v28   ;;  %v1575_v18 = vld [vmem:[%s3475_s2 + $0x98] sm:$0xff]  ;;  %v1574_v12 = vld [vmem:[%s3475_s2 + $0x90] sm:$0xff]  ;;  %v1577_v14 = vld [vmem:[%s3475_s2 + $0xa8] sm:$0xff] }
 0x15c   : > { %v1576_v29 = vld [vmem:[%s3475_s2 + $0xa0] sm:$0xff]  ;;  %v1579_v33 = vld [vmem:[%s3475_s2 + $0xb8] sm:$0xff]  ;;  %v1578_v34 = vld [vmem:[%s3475_s2 + $0xb0] sm:$0xff] }
 0x15d   : > { %v1581_v48 = vld [vmem:[%s3475_s2 + $0xc8] sm:$0xff]  ;;  %v1580_v2 = vld [vmem:[%s3475_s2 + $0xc0] sm:$0xff]  ;;  %v1583_v31 = vld [vmem:[%s3475_s2 + $0xd8] sm:$0xff] }
 0x15e   : > { %v1582_v43 = vld [vmem:[%s3475_s2 + $0xd0] sm:$0xff]  ;;  %v1585_v44 = vld [vmem:[%s3475_s2 + $0xe8] sm:$0xff]  ;;  %v1584_v17 = vld [vmem:[%s3475_s2 + $0xe0] sm:$0xff] }
 0x15f   : > { %1619 = vperm.xlu1 %2520, %v1561_v38   ;;  %1614 = vperm.xlu0 %2519, %v1560_v39   ;;  %v1587_v19 = vld [vmem:[%s3475_s2 + $0xf8] sm:$0xff]  ;;  %v1586_v28 = vld [vmem:[%s3475_s2 + $0xf0] sm:$0xff]  ;;  %v1589_v38 = vld [vmem:[%s3475_s2 + $0x108] sm:$0xff] }
 0x160   : > { %v1588_v39 = vld [vmem:[%s3475_s2 + $0x100] sm:$0xff] }
 0x163   : > { %1629 = vperm.xlu1 %2520, %v1563_v50   ;;  %1624 = vperm.xlu0 %2519, %v1562_v53   ;;  %v1591_v50 = vld [vmem:[%s3475_s2 + $0x118] sm:$0xff]  ;;  %v1590_v53 = vld [vmem:[%s3475_s2 + $0x110] sm:$0xff] }
 0x167   : > { %1639 = vperm.xlu1 %2520, %v1565_v51   ;;  %1634 = vperm.xlu0 %2519, %v1564_v15  }
 0x16b   : > { %1649 = vperm.xlu1 %2520, %v1567_v58   ;;  %1644 = vperm.xlu0 %2519, %v1566_v60  }
 0x16f   : > { %1659 = vperm.xlu1 %2520, %v1569_v35   ;;  %1654 = vperm.xlu0 %2519, %v1568_v4  }
 0x173   : > { %1669 = vperm.xlu1 %2520, %v1571_v7   ;;  %1664 = vperm.xlu0 %2519, %v1570_v36  }
 0x177   : > { %1679 = vperm.xlu1 %2520, %v1573_v20   ;;  %1674 = vperm.xlu0 %2519, %v1572_v23  }
 0x17b   : > { %1689 = vperm.xlu1 %2520, %v1575_v18   ;;  %1684 = vperm.xlu0 %2519, %v1574_v12  }
 0x17f   : > { %1699 = vperm.xlu1 %2520, %v1577_v14   ;;  %1694 = vperm.xlu0 %2519, %v1576_v29  }
 0x183   : > { %1709 = vperm.xlu1 %2520, %v1579_v33   ;;  %1704 = vperm.xlu0 %2519, %v1578_v34  }
 0x187   : > { %1719 = vperm.xlu1 %2520, %v1581_v48   ;;  %1714 = vperm.xlu0 %2519, %v1580_v2  }
 0x18b   : > { %1729 = vperm.xlu1 %2520, %v1583_v31   ;;  %1724 = vperm.xlu0 %2519, %v1582_v43  }
 0x18f   : > { %1739 = vperm.xlu1 %2520, %v1585_v44   ;;  %1734 = vperm.xlu0 %2519, %v1584_v17  }
 0x193   : > { %1749 = vperm.xlu1 %2520, %v1587_v19   ;;  %1744 = vperm.xlu0 %2519, %v1586_v28  }
 0x197   : > { %1759 = vperm.xlu1 %2520, %v1589_v38   ;;  %1754 = vperm.xlu0 %2519, %v1588_v39  }
 0x19b   : > { %1769 = vperm.xlu1 %2520, %v1591_v50   ;;  %1764 = vperm.xlu0 %2519, %v1590_v53  }
 0x1d6   : > { %v1605_v51 = vpop.permute.xlu1 %1604  ;;  %v1595_v15 = vpop.permute.xlu0 %1594 }
 0x1d7   : > { %v1772_v58 = vmul.f32 %v3128_v54, %v1595_v15  ;;  %v1774_v4 = vmul.f32 %v3136_v62, %v1605_v51 }
 0x1d9   : > { %v1853_v36 = vmul.f32 %v3128_v54, %v1772_v58  ;;  %v1855_v29 = vmul.f32 %v3136_v62, %v1774_v4 }
 0x1da   : > { %v1610_v60 = vpop.permute.xlu1 %1609  ;;  %v1600_v35 = vpop.permute.xlu0 %1599 }
 0x1db   : > { %v1773_v7 = vmul.f32 %v3126_v57, %v1600_v35  ;;  %v1775_v20 = vmul.f32 %v3134_v30, %v1610_v60 }
 0x1dd   : > { %v1809_v23 = vadd.f32 %v1773_v7, %v1772_v58  ;;  %v1854_v18 = vmul.f32 %v3126_v57, %v1773_v7  ;;  %v1856_v2 = vmul.f32 %v3134_v30, %v1775_v20 }
 0x1de   : > { %v1620_v12 = vpop.permute.xlu1 %1619  ;;  %v1615_v14 = vpop.permute.xlu0 %1614 }
 0x1df   : > { %v1810_v33 = vadd.f32 %v1809_v23, %v1774_v4  ;;  %v1889_v34 = vadd.f32 %v1854_v18, %v1853_v36  ;;  %v1776_v48 = vmul.f32 %v3144_v5, %v1615_v14  ;;  %v1777_v43 = vmul.f32 %v3142_v3, %v1620_v12 }
 0x1e1   : > { %v1890_v31 = vadd.f32 %v1889_v34, %v1855_v29  ;;  %v1811_v44 = vadd.f32 %v1810_v33, %v1775_v20  ;;  %v1857_v57 = vmul.f32 %v3144_v5, %v1776_v48  ;;  %v1858_v62 = vmul.f32 %v3142_v3, %v1777_v43 }
 0x1e2   : > { %v1630_v54 = vpop.permute.xlu1 %1629  ;;  %v1625_v17 = vpop.permute.xlu0 %1624 }
 0x1e3   : > { %v1891_v19 = vadd.f32 %v1890_v31, %v1856_v2  ;;  %v1812_v28 = vadd.f32 %v1811_v44, %v1776_v48  ;;  %v1778_v38 = vmul.f32 %v3152_v10, %v1625_v17  ;;  %v1779_v50 = vmul.f32 %v3150_v6, %v1630_v54 }
 0x1e5   : > { %v1892_v39 = vadd.f32 %v1891_v19, %v1857_v57  ;;  %v1813_v53 = vadd.f32 %v1812_v28, %v1777_v43  ;;  %v1859_v60 = vmul.f32 %v3152_v10, %v1778_v38  ;;  %v1860_v4 = vmul.f32 %v3150_v6, %v1779_v50 }
 0x1e6   : > { %v1640_v51 = vpop.permute.xlu1 %1639  ;;  %v1635_v30 = vpop.permute.xlu0 %1634 }
 0x1e7   : > { %v1893_v15 = vadd.f32 %v1892_v39, %v1858_v62  ;;  %v1814_v58 = vadd.f32 %v1813_v53, %v1778_v38  ;;  %v1780_v35 = vmul.f32 %v3160_v21, %v1635_v30  ;;  %v1781_v5 = vmul.f32 %v3158_v11, %v1640_v51 }
 0x1e9   : > { %v1894_v7 = vadd.f32 %v1893_v15, %v1859_v60  ;;  %v1815_v36 = vadd.f32 %v1814_v58, %v1779_v50  ;;  %v1861_v12 = vmul.f32 %v3160_v21, %v1780_v35  ;;  %v1862_v29 = vmul.f32 %v3158_v11, %v1781_v5 }
 0x1ea   : > { %v1650_v20 = vpop.permute.xlu1 %1649  ;;  %v1645_v3 = vpop.permute.xlu0 %1644 }
 0x1eb   : > { %v1895_v23 = vadd.f32 %v1894_v7, %v1860_v4  ;;  %v1816_v18 = vadd.f32 %v1815_v36, %v1780_v35  ;;  %v1782_v14 = vmul.f32 %v3168_v24, %v1645_v3  ;;  %v1783_v10 = vmul.f32 %v3166_v0, %v1650_v20 }
 0x1ed   : > { %v1896_v33 = vadd.f32 %v1895_v23, %v1861_v12  ;;  %v1817_v34 = vadd.f32 %v1816_v18, %v1781_v5  ;;  %v1863_v43 = vmul.f32 %v3168_v24, %v1782_v14  ;;  %v1864_v54 = vmul.f32 %v3166_v0, %v1783_v10 }
 0x1ee   : > { %v1660_v48 = vpop.permute.xlu1 %1659  ;;  %v1655_v6 = vpop.permute.xlu0 %1654 }
 0x1ef   : > { %v1897_v2 = vadd.f32 %v1896_v33, %v1862_v29  ;;  %v1818_v31 = vadd.f32 %v1817_v34, %v1782_v14  ;;  %v1784_v44 = vmul.f32 %v3176_v8, %v1655_v6  ;;  %v1785_v21 = vmul.f32 %v3174_v42, %v1660_v48 }
 0x1f1   : > { %v1898_v17 = vadd.f32 %v1897_v2, %v1863_v43  ;;  %v1819_v19 = vadd.f32 %v1818_v31, %v1783_v10  ;;  %v1865_v62 = vmul.f32 %v3176_v8, %v1784_v44  ;;  %v1866_v50 = vmul.f32 %v3174_v42, %v1785_v21 }
 0x1f2   : > { %v1670_v28 = vpop.permute.xlu1 %1669  ;;  %v1665_v11 = vpop.permute.xlu0 %1664 }
 0x1f3   : > { %v1899_v57 = vadd.f32 %v1898_v17, %v1864_v54  ;;  %v1820_v38 = vadd.f32 %v1819_v19, %v1784_v44  ;;  %v1786_v39 = vmul.f32 %v3184_v13, %v1665_v11  ;;  %v1787_v24 = vmul.f32 %v3182_v47, %v1670_v28 }
 0x1f5   : > { %v1900_v53 = vadd.f32 %v1899_v57, %v1865_v62  ;;  %v1821_v51 = vadd.f32 %v1820_v38, %v1785_v21  ;;  %v1867_v60 = vmul.f32 %v3184_v13, %v1786_v39  ;;  %v1868_v4 = vmul.f32 %v3182_v47, %v1787_v24 }
 0x1f6   : > { %v1680_v30 = vpop.permute.xlu1 %1679  ;;  %v1675_v0 = vpop.permute.xlu0 %1674 }
 0x1f7   : > { %v1901_v15 = vadd.f32 %v1900_v53, %v1866_v50  ;;  %v1822_v58 = vadd.f32 %v1821_v51, %v1786_v39  ;;  %v1788_v35 = vmul.f32 %v3192_v26, %v1675_v0  ;;  %v1789_v8 = vmul.f32 %v3190_v22, %v1680_v30 }
 0x1f9   : > { %v1902_v7 = vadd.f32 %v1901_v15, %v1867_v60  ;;  %v1823_v5 = vadd.f32 %v1822_v58, %v1787_v24  ;;  %v1869_v23 = vmul.f32 %v3192_v26, %v1788_v35  ;;  %v1870_v12 = vmul.f32 %v3190_v22, %v1789_v8 }
 0x1fa   : > { %v1690_v36 = vpop.permute.xlu1 %1689  ;;  %v1685_v42 = vpop.permute.xlu0 %1684 }
 0x1fb   : > { %v1903_v20 = vadd.f32 %v1902_v7, %v1868_v4  ;;  %v1824_v3 = vadd.f32 %v1823_v5, %v1788_v35  ;;  %v1790_v18 = vmul.f32 %v3200_v1, %v1685_v42  ;;  %v1791_v13 = vmul.f32 %v3198_v45, %v1690_v36 }
 0x1fd   : > { %v1904_v14 = vadd.f32 %v1903_v20, %v1869_v23  ;;  %v1825_v29 = vadd.f32 %v1824_v3, %v1789_v8  ;;  %v1871_v48 = vmul.f32 %v3200_v1, %v1790_v18  ;;  %v1872_v2 = vmul.f32 %v3198_v45, %v1791_v13 }
 0x1fe   : > { %v1700_v33 = vpop.permute.xlu1 %1699  ;;  %v1695_v47 = vpop.permute.xlu0 %1694 }
 0x1ff   : > { %v1905_v10 = vadd.f32 %v1904_v14, %v1870_v12  ;;  %v1826_v34 = vadd.f32 %v1825_v29, %v1790_v18  ;;  %v1792_v6 = vmul.f32 %v3208_v55, %v1695_v47  ;;  %v1793_v26 = vmul.f32 %v3206_v9, %v1700_v33 }
 0x201   : > { %v1906_v31 = vadd.f32 %v1905_v10, %v1871_v48  ;;  %v1827_v43 = vadd.f32 %v1826_v34, %v1791_v13  ;;  %v1873_v21 = vmul.f32 %v3208_v55, %v1792_v6  ;;  %v1874_v28 = vmul.f32 %v3206_v9, %v1793_v26 }
 0x202   : > { %v1710_v44 = vpop.permute.xlu1 %1709  ;;  %v1705_v22 = vpop.permute.xlu0 %1704 }
 0x203   : > { %v1907_v54 = vadd.f32 %v1906_v31, %v1872_v2  ;;  %v1828_v17 = vadd.f32 %v1827_v43, %v1792_v6  ;;  %v1794_v19 = vmul.f32 %v3216_v56, %v1705_v22  ;;  %v1795_v1 = vmul.f32 %v3214_v46, %v1710_v44 }
 0x205   : > { %v1908_v11 = vadd.f32 %v1907_v54, %v1873_v21  ;;  %v1829_v57 = vadd.f32 %v1828_v17, %v1793_v26  ;;  %v1875_v50 = vmul.f32 %v3216_v56, %v1794_v19  ;;  %v1876_v24 = vmul.f32 %v3214_v46, %v1795_v1 }
 0x206   : > { %v1720_v38 = vpop.permute.xlu1 %1719  ;;  %v1715_v45 = vpop.permute.xlu0 %1714 }
 0x207   : > { %v1909_v62 = vadd.f32 %v1908_v11, %v1874_v28  ;;  %v1830_v39 = vadd.f32 %v1829_v57, %v1794_v19  ;;  %v1796_v53 = vmul.f32 %v3224_v59, %v1715_v45  ;;  %v1797_v55 = vmul.f32 %v3222_v49, %v1720_v38 }
 0x209   : > { %v1910_v51 = vadd.f32 %v1909_v62, %v1875_v50  ;;  %v1831_v30 = vadd.f32 %v1830_v39, %v1795_v1  ;;  %v1877_v60 = vmul.f32 %v3224_v59, %v1796_v53  ;;  %v1878_v4 = vmul.f32 %v3222_v49, %v1797_v55 }
 0x20a   : > { %v1730_v0 = vpop.permute.xlu1 %1729  ;;  %v1725_v9 = vpop.permute.xlu0 %1724 }
 0x20b   : > { %v1911_v15 = vadd.f32 %v1910_v51, %v1876_v24  ;;  %v1832_v58 = vadd.f32 %v1831_v30, %v1796_v53  ;;  %v1798_v35 = vmul.f32 %v3232_v61, %v1725_v9  ;;  %v1799_v56 = vmul.f32 %v3230_v52, %v1730_v0 }
 0x20d   : > { %v1912_v7 = vadd.f32 %v1911_v15, %v1877_v60  ;;  %v1833_v8 = vadd.f32 %v1832_v58, %v1797_v55  ;;  %v1879_v20 = vmul.f32 %v3232_v61, %v1798_v35  ;;  %v1880_v23 = vmul.f32 %v3230_v52, %v1799_v56  ;;  %v1808_v60 = vld [vmem:[%s3477_s4] sm:$0x1] }
 0x20e   : > { %v1740_v5 = vpop.permute.xlu1 %1739  ;;  %v1735_v46 = vpop.permute.xlu0 %1734 }
 0x20f   : > { %v1913_v36 = vadd.f32 %v1912_v7, %v1878_v4  ;;  %v1834_v42 = vadd.f32 %v1833_v8, %v1798_v35  ;;  %v1800_v3 = vmul.f32 %v3240_v41, %v1735_v46  ;;  %v1801_v59 = vmul.f32 %v3238_v63, %v1740_v5 }
 0x211   : > { %v1914_v18 = vadd.f32 %v1913_v36, %v1879_v20  ;;  %v1835_v12 = vadd.f32 %v1834_v42, %v1799_v56  ;;  %v1881_v33 = vmul.f32 %v3240_v41, %v1800_v3  ;;  %v1882_v10 = vmul.f32 %v3238_v63, %v1801_v59 }
 0x212   : > { %v1750_v14 = vpop.permute.xlu1 %1749  ;;  %v1745_v49 = vpop.permute.xlu0 %1744 }
 0x213   : > { %v1915_v13 = vadd.f32 %v1914_v18, %v1880_v23  ;;  %v1836_v29 = vadd.f32 %v1835_v12, %v1800_v3  ;;  %v1802_v47 = vmul.f32 %v3248_v32, %v1745_v49  ;;  %v1803_v61 = vmul.f32 %v3246_v25, %v1750_v14 }
 0x215   : > { %v1916_v34 = vadd.f32 %v1915_v13, %v1881_v33  ;;  %v1837_v48 = vadd.f32 %v1836_v29, %v1801_v59  ;;  %v1883_v26 = vmul.f32 %v3248_v32, %v1802_v47  ;;  %v1884_v44 = vmul.f32 %v3246_v25, %v1803_v61 }
 0x216   : > { %v1760_v6 = vpop.permute.xlu1 %1759  ;;  %v1755_v52 = vpop.permute.xlu0 %1754 }
 0x217   : > { %v1917_v2 = vadd.f32 %v1916_v34, %v1882_v10  ;;  %v1838_v31 = vadd.f32 %v1837_v48, %v1802_v47  ;;  %v1804_v43 = vmul.f32 %v3256_v40, %v1755_v52  ;;  %v1805_v41 = vmul.f32 %v3254_v27, %v1760_v6 }
 0x219   : > { %v1918_v22 = vadd.f32 %v1917_v2, %v1883_v26  ;;  %v1839_v54 = vadd.f32 %v1838_v31, %v1803_v61  ;;  %v1885_v28 = vmul.f32 %v3256_v40, %v1804_v43  ;;  %v1886_v1 = vmul.f32 %v3254_v27, %v1805_v41 }
 0x21a   : > { %v1770_v17 = vpop.permute.xlu1 %1769  ;;  %v1765_v63 = vpop.permute.xlu0 %1764 }
 0x21b   : > { %v1919_v21 = vadd.f32 %v1918_v22, %v1884_v44  ;;  %v1840_v19 = vadd.f32 %v1839_v54, %v1804_v43  ;;  %v1806_v11 = vmul.f32 %v3264_v16, %v1765_v63  ;;  %v1807_v32 = vmul.f32 %v3262_v37, %v1770_v17 }
 0x21d   : > { %v1920_v57 = vadd.f32 %v1919_v21, %v1885_v28  ;;  %v1841_v38 = vadd.f32 %v1840_v19, %v1805_v41  ;;  %v1887_v62 = vmul.f32 %v3264_v16, %v1806_v11  ;;  %v1888_v39 = vmul.f32 %v3262_v37, %v1807_v32  ;;  %v1852_v37 = vld [vmem:[%s3478_s5] sm:$0x1] }
 0x21f   : > { %v1921_v45 = vadd.f32 %v1920_v57, %v1886_v1  ;;  %v1842_v25 = vadd.f32 %v1841_v38, %v1806_v11 }
 0x221   : > { %v1843_v50 = vadd.f32 %v1842_v25, %v1807_v32  ;;  %v1922_v53 = vadd.f32 %v1921_v45, %v1887_v62 }
 0x223   : > { %v1844_v24 = vrot.slane %v1843_v50, 4  ;;  %v1923_v51 = vadd.f32 %v1922_v53, %v1888_v39 }
 0x225   : > { %v1845_v55 = vadd.f32 %v1844_v24, %v1843_v50  ;;  %v1924_v40 = vrot.slane %v1923_v51, 4 }
 0x227   : > { %v1846_v30 = vrot.slane %v1845_v55, 2  ;;  %v1925_v0 = vadd.f32 %v1924_v40, %v1923_v51 }
 0x229   : > { %v1847_v9 = vadd.f32 %v1846_v30, %v1845_v55  ;;  %v1926_v27 = vrot.slane %v1925_v0, 2 }
 0x22b   : > { %v1848_v15 = vrot.slane %v1847_v9, 1  ;;  %v1927_v58 = vadd.f32 %v1926_v27, %v1925_v0 }
 0x22d   : > { %v1849_v35 = vadd.f32 %v1848_v15, %v1847_v9  ;;  %v1928_v16 = vrot.slane %v1927_v58, 1 }
 0x22f   : > { %v1850_v4 = vadd.f32 %v1849_v35, %v1808_v60  ;;  %v1929_v7 = vadd.f32 %v1928_v16, %v1927_v58 }
 0x231   : > { %1851 = vst [vmem:[%s3477_s4] sm:$0x1] %v1850_v4  ;;  %v1930_v56 = vadd.f32 %v1929_v7, %v1852_v37 }
 0x233   : > { %1931 = vst [vmem:[%s3478_s5] sm:$0x1] %v1930_v56 }
 0x234 PF: > { %s16_s18 = sadd.s32 1, %s2527_s18  }
 0x235   : > { %p13_p5 = scmp.ge.s32.totalorder %s16_s18, 4  }
 0x237   :  { %15 = sbr.rel (!%p13_p5) target bundleno = 1 (0x1), region = 84 }

</bundles_post_ra>
